<compile_context>
chip_gen: v5e
topology: v5e:2x2
jax: 0.10.0
libtpu: 0.0.40
codegen_flags: <defaults>
</compile_context>

<pallas_src>
import functools
import math

import numpy as np
import jax
import jax.numpy as jnp
from jax.experimental import pallas as pl
from jax.experimental.pallas import tpu as pltpu

# ---- small synthetic Blip2-like config ----
MM_HIDDEN = 32          # qformer_config.hidden_size = mm_hidden_size
TEXT_HIDDEN = 64        # text_config.hidden_size = hidden_size
NUM_QUERY_TOKENS = 8    # config.num_query_tokens
NUM_LAYERS = 2          # qformer_config.num_hidden_layers
NUM_HEADS = 4
HEAD_DIM = MM_HIDDEN // NUM_HEADS
INTERMEDIATE = 64       # qformer_config.intermediate_size
CROSS_FREQ = 2          # cross_attention_frequency (layer 0 has x-attn)
ENC_HIDDEN = 32         # encoder_hidden_size == image-feature dim
LN_EPS = 1e-12          # qformer_config.layer_norm_eps
ATTN_SCALE = 1.0 / math.sqrt(HEAD_DIM)
LANES = 128


# --------------------------- parameter packing -------------------------------

class _SlabBuilder:
    """Packs many small tensors into one lane-dense (rows, 128) slab.

    Each tensor starts at a row offset aligned to `row_align` so every
    in-kernel static slice is sublane-tile aligned for the slab dtype.
    """

    def __init__(self, out_dtype, row_align):
        self.out_dtype = out_dtype
        self.row_align = row_align
        self._rows = 0
        self._items = []

    def add(self, arr):
        arr = np.asarray(arr, dtype=np.float32)
        if arr.ndim == 1:
            arr = arr[None, :]
        r, c = arr.shape
        assert c <= LANES, (r, c)
        off = self._rows
        self._items.append((off, arr))
        self._rows += ((r + self.row_align - 1) // self.row_align) * self.row_align
        return (off, r, c)

    def build(self):
        rows = max(self._rows, self.row_align)
        slab = np.zeros((rows, LANES), dtype=np.float32)
        for off, arr in self._items:
            slab[off:off + arr.shape[0], :arr.shape[1]] = arr
        return jnp.asarray(slab).astype(self.out_dtype)


def pack_params(params):
    """Fold constants and pack all parameters into two lane-dense slabs.

    Returns (weight_slab[bf16], scalar_slab[f32], layout); `layout` is a
    nested dict of static (row_offset, rows, cols) slots used by the kernel.
    """
    wsb = _SlabBuilder(jnp.bfloat16, 16)     # bf16 tiles are (16, 128)
    ssb = _SlabBuilder(jnp.float32, 8)       # f32 tiles are (8, 128)

    def np32(x):
        return np.asarray(jax.device_get(x), dtype=np.float32)

    def dense(wb, scale=1.0):
        return {"w": wsb.add(np32(wb[0]) * scale),
                "b": ssb.add(np32(wb[1]) * scale)}

    def fused_qkv(wb):
        # Fold the attention scale into the Q columns (first MM_HIDDEN) only.
        w = np32(wb[0]).copy()
        b = np32(wb[1]).copy()
        w[:, :MM_HIDDEN] *= ATTN_SCALE
        b[:, :MM_HIDDEN] *= ATTN_SCALE
        return {"w": wsb.add(w), "b": ssb.add(b)}

    def lnorm(gb):
        return {"g": ssb.add(np32(gb[0])), "b": ssb.add(np32(gb[1]))}

    # Embeddings LayerNorm(query_tokens) is input-independent -> precompute.
    qt = np32(params["query_tokens"]).reshape(NUM_QUERY_TOKENS, MM_HIDDEN)
    g, b = np32(params["emb_ln"][0]), np32(params["emb_ln"][1])
    mu = qt.mean(-1, keepdims=True)
    var = ((qt - mu) ** 2).mean(-1, keepdims=True)
    h0 = (qt - mu) / np.sqrt(var + LN_EPS) * g + b

    layout = {"h0": ssb.add(h0), "layers": []}
    for li, layer in enumerate(params["layers"]):
        L = {
            "self": {
                "qkv": fused_qkv(layer["self"]["qkv"]),
                "o": dense(layer["self"]["o"]),
                "ln": lnorm(layer["self"]["ln"]),
            },
            "ffn_in": dense(layer["ffn_in"]),
            "ffn_out": dense(layer["ffn_out"]),
            "ffn_ln": lnorm(layer["ffn_ln"]),
            "has_cross": li % CROSS_FREQ == 0,
        }
        if L["has_cross"]:
            c = layer["cross"]
            L["cross"] = {
                "q": dense(c["q"], scale=ATTN_SCALE),   # scale folded into W and b
                "kv": dense(c["kv"]),
                "o": dense(c["o"]),
                "ln": lnorm(c["ln"]),
            }
        layout["layers"].append(L)
    layout["proj"] = dense(params["proj"])
    return wsb.build(), ssb.build(), layout


# ------------------------------ fused kernel --------------------------------

def _fused_qformer_kernel(img_ref, w_ref, s_ref, out_ref, *, layout, batch,
                          num_patches):
    f32, bf16 = jnp.float32, jnp.bfloat16
    H, T, NH, HD = MM_HIDDEN, NUM_QUERY_TOKENS, NUM_HEADS, HEAD_DIM

    def wget(slot):
        off, r, c = slot
        return w_ref[off:off + r, :c]                    # bf16 (r, c)

    def sget(slot):
        off, r, c = slot
        return s_ref[off:off + r, :c]                    # f32 (r, c)

    def lin(x, slots, act=None):
        y = jnp.dot(x.astype(bf16), wget(slots["w"]),
                    preferred_element_type=f32) + sget(slots["b"])
        if act == "gelu":
            # TODO(synk): PyTorch nn.GELU is exact erf-GELU; the tanh
            # approximation is used in-kernel (~1e-3 level divergence).
            y = jax.nn.gelu(y, approximate=True)
        return y

    def layernorm(x, slots):
        mean = jnp.mean(x, axis=-1, keepdims=True)
        var = jnp.mean(jnp.square(x - mean), axis=-1, keepdims=True)
        return ((x - mean) * jax.lax.rsqrt(var + LN_EPS)
                * sget(slots["g"]) + sget(slots["b"]))

    def gather_heads(x3, base):
        # (B, seq, C) -> (B*NH, seq, HD): heads go to the leading batch dim so
        # scores/context are ONE batched einsum each (no per-head matmul loop).
        seq = x3.shape[1]
        hs = [x3[:, :, base + h * HD: base + (h + 1) * HD] for h in range(NH)]
        return jnp.stack(hs, axis=1).reshape(batch * NH, seq, HD)

    def attention(qh, kh, vh, o_slots):
        # qh: (B*NH, T, HD); kh/vh: (B*NH, S, HD).  1/sqrt(head_dim) is
        # pre-folded into the Q projection weights/bias.
        tq = qh.shape[1]
        s = jnp.einsum("gtd,gsd->gts", qh.astype(bf16), kh.astype(bf16),
                       preferred_element_type=f32)
        s = s - jnp.max(s, axis=-1, keepdims=True)       # kept for robustness
        e = jnp.exp(s)
        p = e * pl.reciprocal(jnp.sum(e, axis=-1, keepdims=True), approx=True)
        ctx = jnp.einsum("gts,gsd->gtd", p.astype(bf16), vh.astype(bf16),
                         preferred_element_type=f32)
        ctx4 = ctx.reshape(batch, NH, tq, HD)
        merged = jnp.concatenate([ctx4[:, h] for h in range(NH)],
                                 axis=-1).reshape(batch * tq, H)
        return jnp.dot(merged.astype(bf16), wget(o_slots["w"]),
                       preferred_element_type=f32) + sget(o_slots["b"])

    # ---- embeddings: LayerNorm(query_tokens) precomputed host-side ----
    h0 = sget(layout["h0"])                              # (T, H) f32
    hidden = jnp.broadcast_to(h0[None], (batch, T, H)).reshape(batch * T, H)

    img2d = img_ref[...].astype(f32).reshape(batch * num_patches, ENC_HIDDEN)

    # ---- QFormer layers (static unroll) ----
    for L in layout["layers"]:
        # --- self attention (fused QKV projection) ---
        qkv3 = lin(hidden, L["self"]["qkv"]).reshape(batch, T, 3 * H)
        attn = attention(gather_heads(qkv3, 0),
                         gather_heads(qkv3, H),
                         gather_heads(qkv3, 2 * H),
                         L["self"]["o"])
        hidden = layernorm(attn + hidden, L["self"]["ln"])

        # --- cross attention to the image features (layer 0 only) ---
        if L["has_cross"]:
            C = L["cross"]
            q3 = lin(hidden, C["q"]).reshape(batch, T, H)
            kv3 = lin(img2d, C["kv"]).reshape(batch, num_patches, 2 * H)
            attn = attention(gather_heads(q3, 0),
                             gather_heads(kv3, 0),
                             gather_heads(kv3, H),
                             C["o"])
            hidden = layernorm(attn + hidden, C["ln"])

        # --- GELU MLP ---
        inter = lin(hidden, L["ffn_in"], act="gelu")
        hidden = layernorm(lin(inter, L["ffn_out"]) + hidden, L["ffn_ln"])

    # ---- language projection ----
    proj = lin(hidden, layout["proj"])                   # (B*T, TEXT_HIDDEN)
    out_ref[...] = proj.reshape(batch, T, TEXT_HIDDEN).astype(out_ref.dtype)


# ------------------------------- wrapper -------------------------------------

def qformer_proj_forward(packed, image_features):
    weight_slab, scalar_slab, layout = packed
    B, P, E = image_features.shape
    assert E == ENC_HIDDEN
    kernel = functools.partial(_fused_qformer_kernel, layout=layout,
                               batch=B, num_patches=P)
    vmem = pl.BlockSpec(memory_space=pltpu.MemorySpace.VMEM)
    return pl.pallas_call(
        kernel,
        out_shape=jax.ShapeDtypeStruct((B, NUM_QUERY_TOKENS, TEXT_HIDDEN),
                                       jnp.float32),
        in_specs=[vmem, vmem, vmem],
        out_specs=vmem,
    )(image_features, weight_slab, scalar_slab)


# ------------------------- deterministic parameters --------------------------

def init_params(key):
    keys = iter(jax.random.split(key, 128))

    def dense(n_in, n_out):
        w = jax.random.normal(next(keys), (n_in, n_out), jnp.float32) * 0.02
        b = jnp.zeros((1, n_out), jnp.float32)
        return (w, b)

    def fused_dense(n_in, n_outs):
        pairs = [dense(n_in, n) for n in n_outs]
        w = jnp.concatenate([p_[0] for p_ in pairs], axis=1)
        b = jnp.concatenate([p_[1] for p_ in pairs], axis=1)
        return (w, b)

    def ln(n):
        return (jnp.ones((1, n), jnp.float32), jnp.zeros((1, n), jnp.float32))

    params = {
        "query_tokens": jax.random.normal(
            next(keys), (1, NUM_QUERY_TOKENS, MM_HIDDEN), jnp.float32) * 0.02,
        "emb_ln": ln(MM_HIDDEN),
        "layers": [],
        "proj": dense(MM_HIDDEN, TEXT_HIDDEN),
    }
    for li in range(NUM_LAYERS):
        layer = {
            "self": {
                "qkv": fused_dense(MM_HIDDEN, [MM_HIDDEN] * 3),   # Q|K|V fused
                "o": dense(MM_HIDDEN, MM_HIDDEN),
                "ln": ln(MM_HIDDEN),
            },
            "ffn_in": dense(MM_HIDDEN, INTERMEDIATE),
            "ffn_out": dense(INTERMEDIATE, MM_HIDDEN),
            "ffn_ln": ln(MM_HIDDEN),
        }
        if li % CROSS_FREQ == 0:
            layer["cross"] = {
                "q": dense(MM_HIDDEN, MM_HIDDEN),
                "kv": fused_dense(ENC_HIDDEN, [MM_HIDDEN] * 2),   # K|V fused
                "o": dense(MM_HIDDEN, MM_HIDDEN),
                "ln": ln(MM_HIDDEN),
            }
        params["layers"].append(layer)
    return params


# ----------------------------------- main ------------------------------------

if __name__ == "__main__":
    key = jax.random.PRNGKey(0)
    pkey, xkey = jax.random.split(key)
    params = init_params(pkey)
    packed = pack_params(params)   # two lane-dense slabs + static layout

    B, P = 2, 16
    image_features = jax.random.normal(xkey, (B, P, ENC_HIDDEN), jnp.float32)

    out = qformer_proj_forward(packed, image_features)
    out = jax.block_until_ready(out)

    assert out.shape == (B, NUM_QUERY_TOKENS, TEXT_HIDDEN), out.shape
    assert jnp.all(jnp.isfinite(out))
    print("KERNEL_OK")
</pallas_src>

<mosaic_0001>
module attributes {stable_mosaic.version = 11 : i64} {
  func.func @_fused_qformer_kernel(%arg0: memref<2x16x32xf32, #tpu.memory_space<vmem>>, %arg1: memref<448x128xbf16, #tpu.memory_space<vmem>>, %arg2: memref<184x128xf32, #tpu.memory_space<vmem>>, %arg3: memref<2x8x64xf32, #tpu.memory_space<vmem>>) attributes {dimension_semantics = [], scalar_prefetch = 0 : i64, scratch_operands = 0 : i64, tpu.core_type = #tpu.core_type<tc>} {
    %c0 = arith.constant 0 : index
    %c0_0 = arith.constant 0 : index
    %0 = vector.load %arg2[%c0, %c0_0] : memref<184x128xf32, #tpu.memory_space<vmem>>, vector<8x32xf32>
    %1 = vector.shape_cast %0 : vector<8x32xf32> to vector<1x8x32xf32>
    %2 = vector.shape_cast %1 : vector<1x8x32xf32> to vector<1x8x32xf32>
    %3 = vector.broadcast %2 : vector<1x8x32xf32> to vector<2x8x32xf32>
    %4 = vector.shape_cast %3 : vector<2x8x32xf32> to vector<16x32xf32>
    %c0_1 = arith.constant 0 : index
    %c0_2 = arith.constant 0 : index
    %c0_3 = arith.constant 0 : index
    %5 = vector.load %arg0[%c0_1, %c0_2, %c0_3] : memref<2x16x32xf32, #tpu.memory_space<vmem>>, vector<2x16x32xf32>
    %6 = vector.shape_cast %5 : vector<2x16x32xf32> to vector<32x32xf32>
    %7 = arith.truncf %4 : vector<16x32xf32> to vector<16x32xbf16>
    %c0_4 = arith.constant 0 : index
    %c0_5 = arith.constant 0 : index
    %8 = vector.load %arg1[%c0_4, %c0_5] : memref<448x128xbf16, #tpu.memory_space<vmem>>, vector<32x96xbf16>
    %cst = arith.constant dense<0.000000e+00> : vector<16x96xf32>
    %9 = tpu.matmul %7, %8, %cst {dimension_numbers = #tpu.dot_dimension_numbers<[1], [0], [0], [1], [0, 0, 1, 1], [], []>} : vector<16x32xbf16>, vector<32x96xbf16>, vector<16x96xf32> -> vector<16x96xf32>
    %c8 = arith.constant 8 : index
    %c0_6 = arith.constant 0 : index
    %10 = vector.load %arg2[%c8, %c0_6] : memref<184x128xf32, #tpu.memory_space<vmem>>, vector<1x96xf32>
    %11 = vector.broadcast %10 : vector<1x96xf32> to vector<16x96xf32>
    %12 = arith.addf %9, %11 : vector<16x96xf32>
    %13 = vector.shape_cast %12 : vector<16x96xf32> to vector<2x8x96xf32>
    %14 = vector.extract_strided_slice %13 {offsets = [0, 0, 0], sizes = [2, 8, 8], strides = [1, 1, 1]} : vector<2x8x96xf32> to vector<2x8x8xf32>
    %15 = vector.extract_strided_slice %13 {offsets = [0, 0, 8], sizes = [2, 8, 8], strides = [1, 1, 1]} : vector<2x8x96xf32> to vector<2x8x8xf32>
    %16 = vector.extract_strided_slice %13 {offsets = [0, 0, 16], sizes = [2, 8, 8], strides = [1, 1, 1]} : vector<2x8x96xf32> to vector<2x8x8xf32>
    %17 = vector.extract_strided_slice %13 {offsets = [0, 0, 24], sizes = [2, 8, 8], strides = [1, 1, 1]} : vector<2x8x96xf32> to vector<2x8x8xf32>
    %18 = vector.shape_cast %14 : vector<2x8x8xf32> to vector<2x1x8x8xf32>
    %19 = vector.shape_cast %15 : vector<2x8x8xf32> to vector<2x1x8x8xf32>
    %20 = vector.shape_cast %16 : vector<2x8x8xf32> to vector<2x1x8x8xf32>
    %21 = vector.shape_cast %17 : vector<2x8x8xf32> to vector<2x1x8x8xf32>
    %22 = tpu.concatenate %18, %19, %20, %21 in 1 : vector<2x1x8x8xf32>, vector<2x1x8x8xf32>, vector<2x1x8x8xf32>, vector<2x1x8x8xf32> -> vector<2x4x8x8xf32>
    %23 = vector.shape_cast %22 : vector<2x4x8x8xf32> to vector<8x8x8xf32>
    %24 = vector.extract_strided_slice %13 {offsets = [0, 0, 32], sizes = [2, 8, 8], strides = [1, 1, 1]} : vector<2x8x96xf32> to vector<2x8x8xf32>
    %25 = vector.extract_strided_slice %13 {offsets = [0, 0, 40], sizes = [2, 8, 8], strides = [1, 1, 1]} : vector<2x8x96xf32> to vector<2x8x8xf32>
    %26 = vector.extract_strided_slice %13 {offsets = [0, 0, 48], sizes = [2, 8, 8], strides = [1, 1, 1]} : vector<2x8x96xf32> to vector<2x8x8xf32>
    %27 = vector.extract_strided_slice %13 {offsets = [0, 0, 56], sizes = [2, 8, 8], strides = [1, 1, 1]} : vector<2x8x96xf32> to vector<2x8x8xf32>
    %28 = vector.shape_cast %24 : vector<2x8x8xf32> to vector<2x1x8x8xf32>
    %29 = vector.shape_cast %25 : vector<2x8x8xf32> to vector<2x1x8x8xf32>
    %30 = vector.shape_cast %26 : vector<2x8x8xf32> to vector<2x1x8x8xf32>
    %31 = vector.shape_cast %27 : vector<2x8x8xf32> to vector<2x1x8x8xf32>
    %32 = tpu.concatenate %28, %29, %30, %31 in 1 : vector<2x1x8x8xf32>, vector<2x1x8x8xf32>, vector<2x1x8x8xf32>, vector<2x1x8x8xf32> -> vector<2x4x8x8xf32>
    %33 = vector.shape_cast %32 : vector<2x4x8x8xf32> to vector<8x8x8xf32>
    %34 = vector.extract_strided_slice %13 {offsets = [0, 0, 64], sizes = [2, 8, 8], strides = [1, 1, 1]} : vector<2x8x96xf32> to vector<2x8x8xf32>
    %35 = vector.extract_strided_slice %13 {offsets = [0, 0, 72], sizes = [2, 8, 8], strides = [1, 1, 1]} : vector<2x8x96xf32> to vector<2x8x8xf32>
    %36 = vector.extract_strided_slice %13 {offsets = [0, 0, 80], sizes = [2, 8, 8], strides = [1, 1, 1]} : vector<2x8x96xf32> to vector<2x8x8xf32>
    %37 = vector.extract_strided_slice %13 {offsets = [0, 0, 88], sizes = [2, 8, 8], strides = [1, 1, 1]} : vector<2x8x96xf32> to vector<2x8x8xf32>
    %38 = vector.shape_cast %34 : vector<2x8x8xf32> to vector<2x1x8x8xf32>
    %39 = vector.shape_cast %35 : vector<2x8x8xf32> to vector<2x1x8x8xf32>
    %40 = vector.shape_cast %36 : vector<2x8x8xf32> to vector<2x1x8x8xf32>
    %41 = vector.shape_cast %37 : vector<2x8x8xf32> to vector<2x1x8x8xf32>
    %42 = tpu.concatenate %38, %39, %40, %41 in 1 : vector<2x1x8x8xf32>, vector<2x1x8x8xf32>, vector<2x1x8x8xf32>, vector<2x1x8x8xf32> -> vector<2x4x8x8xf32>
    %43 = vector.shape_cast %42 : vector<2x4x8x8xf32> to vector<8x8x8xf32>
    %44 = arith.truncf %23 : vector<8x8x8xf32> to vector<8x8x8xbf16>
    %45 = arith.truncf %33 : vector<8x8x8xf32> to vector<8x8x8xbf16>
    "tpu.trace_start"() <{level = 10 : i32, message = "gtd,gsd->gts"}> : () -> ()
    %cst_7 = arith.constant dense<0.000000e+00> : vector<8x8x8xf32>
    %46 = tpu.matmul %44, %45, %cst_7 {dimension_numbers = #tpu.dot_dimension_numbers<[2], [2], [1], [1], [0, 0, 0, 1, 1, 1], [0], [0]>} : vector<8x8x8xbf16>, vector<8x8x8xbf16>, vector<8x8x8xf32> -> vector<8x8x8xf32>
    "tpu.trace_stop"() : () -> ()
    %cst_8 = arith.constant dense<0xFF800000> : vector<8x8xf32>
    %47 = vector.multi_reduction <maximumf>, %46, %cst_8 [2] : vector<8x8x8xf32> to vector<8x8xf32>
    %48 = vector.shape_cast %47 : vector<8x8xf32> to vector<8x8x1xf32>
    %49 = vector.broadcast %48 : vector<8x8x1xf32> to vector<8x8x8xf32>
    %50 = arith.subf %46, %49 : vector<8x8x8xf32>
    %51 = math.exp %50 : vector<8x8x8xf32>
    %cst_9 = arith.constant dense<0.000000e+00> : vector<8x8xf32>
    %52 = vector.multi_reduction <add>, %51, %cst_9 [2] : vector<8x8x8xf32> to vector<8x8xf32>
    %53 = vector.shape_cast %52 : vector<8x8xf32> to vector<8x8x1xf32>
    %54 = tpu.reciprocal %53 {approx = true} : vector<8x8x1xf32> -> vector<8x8x1xf32>
    %55 = vector.broadcast %54 : vector<8x8x1xf32> to vector<8x8x8xf32>
    %56 = arith.mulf %51, %55 : vector<8x8x8xf32>
    %57 = arith.truncf %56 : vector<8x8x8xf32> to vector<8x8x8xbf16>
    %58 = arith.truncf %43 : vector<8x8x8xf32> to vector<8x8x8xbf16>
    "tpu.trace_start"() <{level = 10 : i32, message = "gts,gsd->gtd"}> : () -> ()
    %cst_10 = arith.constant dense<0.000000e+00> : vector<8x8x8xf32>
    %59 = tpu.matmul %57, %58, %cst_10 {dimension_numbers = #tpu.dot_dimension_numbers<[2], [1], [1], [2], [0, 0, 0, 1, 1, 2], [0], [0]>} : vector<8x8x8xbf16>, vector<8x8x8xbf16>, vector<8x8x8xf32> -> vector<8x8x8xf32>
    "tpu.trace_stop"() : () -> ()
    %60 = vector.shape_cast %59 : vector<8x8x8xf32> to vector<2x4x8x8xf32>
    %61 = vector.extract_strided_slice %60 {offsets = [0, 0, 0, 0], sizes = [2, 1, 8, 8], strides = [1, 1, 1, 1]} : vector<2x4x8x8xf32> to vector<2x1x8x8xf32>
    %62 = vector.shape_cast %61 : vector<2x1x8x8xf32> to vector<2x8x8xf32>
    %63 = vector.extract_strided_slice %60 {offsets = [0, 1, 0, 0], sizes = [2, 1, 8, 8], strides = [1, 1, 1, 1]} : vector<2x4x8x8xf32> to vector<2x1x8x8xf32>
    %64 = vector.shape_cast %63 : vector<2x1x8x8xf32> to vector<2x8x8xf32>
    %65 = vector.extract_strided_slice %60 {offsets = [0, 2, 0, 0], sizes = [2, 1, 8, 8], strides = [1, 1, 1, 1]} : vector<2x4x8x8xf32> to vector<2x1x8x8xf32>
    %66 = vector.shape_cast %65 : vector<2x1x8x8xf32> to vector<2x8x8xf32>
    %67 = vector.extract_strided_slice %60 {offsets = [0, 3, 0, 0], sizes = [2, 1, 8, 8], strides = [1, 1, 1, 1]} : vector<2x4x8x8xf32> to vector<2x1x8x8xf32>
    %68 = vector.shape_cast %67 : vector<2x1x8x8xf32> to vector<2x8x8xf32>
    %69 = tpu.concatenate %62, %64, %66, %68 in 2 : vector<2x8x8xf32>, vector<2x8x8xf32>, vector<2x8x8xf32>, vector<2x8x8xf32> -> vector<2x8x32xf32>
    %70 = vector.shape_cast %69 : vector<2x8x32xf32> to vector<16x32xf32>
    %71 = arith.truncf %70 : vector<16x32xf32> to vector<16x32xbf16>
    %c32 = arith.constant 32 : index
    %c0_11 = arith.constant 0 : index
    %72 = vector.load %arg1[%c32, %c0_11] : memref<448x128xbf16, #tpu.memory_space<vmem>>, vector<32x32xbf16>
    %cst_12 = arith.constant dense<0.000000e+00> : vector<16x32xf32>
    %73 = tpu.matmul %71, %72, %cst_12 {dimension_numbers = #tpu.dot_dimension_numbers<[1], [0], [0], [1], [0, 0, 1, 1], [], []>} : vector<16x32xbf16>, vector<32x32xbf16>, vector<16x32xf32> -> vector<16x32xf32>
    %c16 = arith.constant 16 : index
    %c0_13 = arith.constant 0 : index
    %74 = vector.load %arg2[%c16, %c0_13] : memref<184x128xf32, #tpu.memory_space<vmem>>, vector<1x32xf32>
    %75 = vector.broadcast %74 : vector<1x32xf32> to vector<16x32xf32>
    %76 = arith.addf %73, %75 : vector<16x32xf32>
    %77 = arith.addf %76, %4 : vector<16x32xf32>
    %cst_14 = arith.constant dense<0.000000e+00> : vector<16xf32>
    %78 = vector.multi_reduction <add>, %77, %cst_14 [1] : vector<16x32xf32> to vector<16xf32>
    %79 = vector.shape_cast %78 : vector<16xf32> to vector<16x1xf32>
    %cst_15 = arith.constant 3.200000e+01 : f32
    %80 = vector.broadcast %cst_15 : f32 to vector<16x1xf32>
    %81 = arith.divf %79, %80 : vector<16x1xf32>
    %82 = vector.broadcast %81 : vector<16x1xf32> to vector<16x32xf32>
    %83 = arith.subf %77, %82 : vector<16x32xf32>
    %84 = arith.mulf %83, %83 : vector<16x32xf32>
    %cst_16 = arith.constant dense<0.000000e+00> : vector<16xf32>
    %85 = vector.multi_reduction <add>, %84, %cst_16 [1] : vector<16x32xf32> to vector<16xf32>
    %86 = vector.shape_cast %85 : vector<16xf32> to vector<16x1xf32>
    %cst_17 = arith.constant 3.200000e+01 : f32
    %87 = vector.broadcast %cst_17 : f32 to vector<16x1xf32>
    %88 = arith.divf %86, %87 : vector<16x1xf32>
    %89 = vector.broadcast %81 : vector<16x1xf32> to vector<16x32xf32>
    %90 = arith.subf %77, %89 : vector<16x32xf32>
    %cst_18 = arith.constant 9.99999996E-13 : f32
    %91 = vector.broadcast %cst_18 : f32 to vector<16x1xf32>
    %92 = arith.addf %88, %91 : vector<16x1xf32>
    %93 = math.rsqrt %92 : vector<16x1xf32>
    %94 = vector.broadcast %93 : vector<16x1xf32> to vector<16x32xf32>
    %95 = arith.mulf %90, %94 : vector<16x32xf32>
    %c24 = arith.constant 24 : index
    %c0_19 = arith.constant 0 : index
    %96 = vector.load %arg2[%c24, %c0_19] : memref<184x128xf32, #tpu.memory_space<vmem>>, vector<1x32xf32>
    %97 = vector.broadcast %96 : vector<1x32xf32> to vector<16x32xf32>
    %98 = arith.mulf %95, %97 : vector<16x32xf32>
    %c32_20 = arith.constant 32 : index
    %c0_21 = arith.constant 0 : index
    %99 = vector.load %arg2[%c32_20, %c0_21] : memref<184x128xf32, #tpu.memory_space<vmem>>, vector<1x32xf32>
    %100 = vector.broadcast %99 : vector<1x32xf32> to vector<16x32xf32>
    %101 = arith.addf %98, %100 : vector<16x32xf32>
    %102 = arith.truncf %101 : vector<16x32xf32> to vector<16x32xbf16>
    %c160 = arith.constant 160 : index
    %c0_22 = arith.constant 0 : index
    %103 = vector.load %arg1[%c160, %c0_22] : memref<448x128xbf16, #tpu.memory_space<vmem>>, vector<32x32xbf16>
    %cst_23 = arith.constant dense<0.000000e+00> : vector<16x32xf32>
    %104 = tpu.matmul %102, %103, %cst_23 {dimension_numbers = #tpu.dot_dimension_numbers<[1], [0], [0], [1], [0, 0, 1, 1], [], []>} : vector<16x32xbf16>, vector<32x32xbf16>, vector<16x32xf32> -> vector<16x32xf32>
    %c72 = arith.constant 72 : index
    %c0_24 = arith.constant 0 : index
    %105 = vector.load %arg2[%c72, %c0_24] : memref<184x128xf32, #tpu.memory_space<vmem>>, vector<1x32xf32>
    %106 = vector.broadcast %105 : vector<1x32xf32> to vector<16x32xf32>
    %107 = arith.addf %104, %106 : vector<16x32xf32>
    %108 = vector.shape_cast %107 : vector<16x32xf32> to vector<2x8x32xf32>
    %109 = arith.truncf %6 : vector<32x32xf32> to vector<32x32xbf16>
    %c192 = arith.constant 192 : index
    %c0_25 = arith.constant 0 : index
    %110 = vector.load %arg1[%c192, %c0_25] : memref<448x128xbf16, #tpu.memory_space<vmem>>, vector<32x64xbf16>
    %cst_26 = arith.constant dense<0.000000e+00> : vector<32x64xf32>
    %111 = tpu.matmul %109, %110, %cst_26 {dimension_numbers = #tpu.dot_dimension_numbers<[1], [0], [0], [1], [0, 0, 1, 1], [], []>} : vector<32x32xbf16>, vector<32x64xbf16>, vector<32x64xf32> -> vector<32x64xf32>
    %c80 = arith.constant 80 : index
    %c0_27 = arith.constant 0 : index
    %112 = vector.load %arg2[%c80, %c0_27] : memref<184x128xf32, #tpu.memory_space<vmem>>, vector<1x64xf32>
    %113 = vector.broadcast %112 : vector<1x64xf32> to vector<32x64xf32>
    %114 = arith.addf %111, %113 : vector<32x64xf32>
    %115 = vector.shape_cast %114 : vector<32x64xf32> to vector<2x16x64xf32>
    %116 = vector.extract_strided_slice %108 {offsets = [0, 0, 0], sizes = [2, 8, 8], strides = [1, 1, 1]} : vector<2x8x32xf32> to vector<2x8x8xf32>
    %117 = vector.extract_strided_slice %108 {offsets = [0, 0, 8], sizes = [2, 8, 8], strides = [1, 1, 1]} : vector<2x8x32xf32> to vector<2x8x8xf32>
    %118 = vector.extract_strided_slice %108 {offsets = [0, 0, 16], sizes = [2, 8, 8], strides = [1, 1, 1]} : vector<2x8x32xf32> to vector<2x8x8xf32>
    %119 = vector.extract_strided_slice %108 {offsets = [0, 0, 24], sizes = [2, 8, 8], strides = [1, 1, 1]} : vector<2x8x32xf32> to vector<2x8x8xf32>
    %120 = vector.shape_cast %116 : vector<2x8x8xf32> to vector<2x1x8x8xf32>
    %121 = vector.shape_cast %117 : vector<2x8x8xf32> to vector<2x1x8x8xf32>
    %122 = vector.shape_cast %118 : vector<2x8x8xf32> to vector<2x1x8x8xf32>
    %123 = vector.shape_cast %119 : vector<2x8x8xf32> to vector<2x1x8x8xf32>
    %124 = tpu.concatenate %120, %121, %122, %123 in 1 : vector<2x1x8x8xf32>, vector<2x1x8x8xf32>, vector<2x1x8x8xf32>, vector<2x1x8x8xf32> -> vector<2x4x8x8xf32>
    %125 = vector.shape_cast %124 : vector<2x4x8x8xf32> to vector<8x8x8xf32>
    %126 = vector.extract_strided_slice %115 {offsets = [0, 0, 0], sizes = [2, 16, 8], strides = [1, 1, 1]} : vector<2x16x64xf32> to vector<2x16x8xf32>
    %127 = vector.extract_strided_slice %115 {offsets = [0, 0, 8], sizes = [2, 16, 8], strides = [1, 1, 1]} : vector<2x16x64xf32> to vector<2x16x8xf32>
    %128 = vector.extract_strided_slice %115 {offsets = [0, 0, 16], sizes = [2, 16, 8], strides = [1, 1, 1]} : vector<2x16x64xf32> to vector<2x16x8xf32>
    %129 = vector.extract_strided_slice %115 {offsets = [0, 0, 24], sizes = [2, 16, 8], strides = [1, 1, 1]} : vector<2x16x64xf32> to vector<2x16x8xf32>
    %130 = vector.shape_cast %126 : vector<2x16x8xf32> to vector<2x1x16x8xf32>
    %131 = vector.shape_cast %127 : vector<2x16x8xf32> to vector<2x1x16x8xf32>
    %132 = vector.shape_cast %128 : vector<2x16x8xf32> to vector<2x1x16x8xf32>
    %133 = vector.shape_cast %129 : vector<2x16x8xf32> to vector<2x1x16x8xf32>
    %134 = tpu.concatenate %130, %131, %132, %133 in 1 : vector<2x1x16x8xf32>, vector<2x1x16x8xf32>, vector<2x1x16x8xf32>, vector<2x1x16x8xf32> -> vector<2x4x16x8xf32>
    %135 = vector.shape_cast %134 : vector<2x4x16x8xf32> to vector<8x16x8xf32>
    %136 = vector.extract_strided_slice %115 {offsets = [0, 0, 32], sizes = [2, 16, 8], strides = [1, 1, 1]} : vector<2x16x64xf32> to vector<2x16x8xf32>
    %137 = vector.extract_strided_slice %115 {offsets = [0, 0, 40], sizes = [2, 16, 8], strides = [1, 1, 1]} : vector<2x16x64xf32> to vector<2x16x8xf32>
    %138 = vector.extract_strided_slice %115 {offsets = [0, 0, 48], sizes = [2, 16, 8], strides = [1, 1, 1]} : vector<2x16x64xf32> to vector<2x16x8xf32>
    %139 = vector.extract_strided_slice %115 {offsets = [0, 0, 56], sizes = [2, 16, 8], strides = [1, 1, 1]} : vector<2x16x64xf32> to vector<2x16x8xf32>
    %140 = vector.shape_cast %136 : vector<2x16x8xf32> to vector<2x1x16x8xf32>
    %141 = vector.shape_cast %137 : vector<2x16x8xf32> to vector<2x1x16x8xf32>
    %142 = vector.shape_cast %138 : vector<2x16x8xf32> to vector<2x1x16x8xf32>
    %143 = vector.shape_cast %139 : vector<2x16x8xf32> to vector<2x1x16x8xf32>
    %144 = tpu.concatenate %140, %141, %142, %143 in 1 : vector<2x1x16x8xf32>, vector<2x1x16x8xf32>, vector<2x1x16x8xf32>, vector<2x1x16x8xf32> -> vector<2x4x16x8xf32>
    %145 = vector.shape_cast %144 : vector<2x4x16x8xf32> to vector<8x16x8xf32>
    %146 = arith.truncf %125 : vector<8x8x8xf32> to vector<8x8x8xbf16>
    %147 = arith.truncf %135 : vector<8x16x8xf32> to vector<8x16x8xbf16>
    "tpu.trace_start"() <{level = 10 : i32, message = "gtd,gsd->gts"}> : () -> ()
    %cst_28 = arith.constant dense<0.000000e+00> : vector<8x8x16xf32>
    %148 = tpu.matmul %146, %147, %cst_28 {dimension_numbers = #tpu.dot_dimension_numbers<[2], [2], [1], [1], [0, 0, 0, 1, 1, 1], [0], [0]>} : vector<8x8x8xbf16>, vector<8x16x8xbf16>, vector<8x8x16xf32> -> vector<8x8x16xf32>
    "tpu.trace_stop"() : () -> ()
    %cst_29 = arith.constant dense<0xFF800000> : vector<8x8xf32>
    %149 = vector.multi_reduction <maximumf>, %148, %cst_29 [2] : vector<8x8x16xf32> to vector<8x8xf32>
    %150 = vector.shape_cast %149 : vector<8x8xf32> to vector<8x8x1xf32>
    %151 = vector.broadcast %150 : vector<8x8x1xf32> to vector<8x8x16xf32>
    %152 = arith.subf %148, %151 : vector<8x8x16xf32>
    %153 = math.exp %152 : vector<8x8x16xf32>
    %cst_30 = arith.constant dense<0.000000e+00> : vector<8x8xf32>
    %154 = vector.multi_reduction <add>, %153, %cst_30 [2] : vector<8x8x16xf32> to vector<8x8xf32>
    %155 = vector.shape_cast %154 : vector<8x8xf32> to vector<8x8x1xf32>
    %156 = tpu.reciprocal %155 {approx = true} : vector<8x8x1xf32> -> vector<8x8x1xf32>
    %157 = vector.broadcast %156 : vector<8x8x1xf32> to vector<8x8x16xf32>
    %158 = arith.mulf %153, %157 : vector<8x8x16xf32>
    %159 = arith.truncf %158 : vector<8x8x16xf32> to vector<8x8x16xbf16>
    %160 = arith.truncf %145 : vector<8x16x8xf32> to vector<8x16x8xbf16>
    "tpu.trace_start"() <{level = 10 : i32, message = "gts,gsd->gtd"}> : () -> ()
    %cst_31 = arith.constant dense<0.000000e+00> : vector<8x8x8xf32>
    %161 = tpu.matmul %159, %160, %cst_31 {dimension_numbers = #tpu.dot_dimension_numbers<[2], [1], [1], [2], [0, 0, 0, 1, 1, 2], [0], [0]>} : vector<8x8x16xbf16>, vector<8x16x8xbf16>, vector<8x8x8xf32> -> vector<8x8x8xf32>
    "tpu.trace_stop"() : () -> ()
    %162 = vector.shape_cast %161 : vector<8x8x8xf32> to vector<2x4x8x8xf32>
    %163 = vector.extract_strided_slice %162 {offsets = [0, 0, 0, 0], sizes = [2, 1, 8, 8], strides = [1, 1, 1, 1]} : vector<2x4x8x8xf32> to vector<2x1x8x8xf32>
    %164 = vector.shape_cast %163 : vector<2x1x8x8xf32> to vector<2x8x8xf32>
    %165 = vector.extract_strided_slice %162 {offsets = [0, 1, 0, 0], sizes = [2, 1, 8, 8], strides = [1, 1, 1, 1]} : vector<2x4x8x8xf32> to vector<2x1x8x8xf32>
    %166 = vector.shape_cast %165 : vector<2x1x8x8xf32> to vector<2x8x8xf32>
    %167 = vector.extract_strided_slice %162 {offsets = [0, 2, 0, 0], sizes = [2, 1, 8, 8], strides = [1, 1, 1, 1]} : vector<2x4x8x8xf32> to vector<2x1x8x8xf32>
    %168 = vector.shape_cast %167 : vector<2x1x8x8xf32> to vector<2x8x8xf32>
    %169 = vector.extract_strided_slice %162 {offsets = [0, 3, 0, 0], sizes = [2, 1, 8, 8], strides = [1, 1, 1, 1]} : vector<2x4x8x8xf32> to vector<2x1x8x8xf32>
    %170 = vector.shape_cast %169 : vector<2x1x8x8xf32> to vector<2x8x8xf32>
    %171 = tpu.concatenate %164, %166, %168, %170 in 2 : vector<2x8x8xf32>, vector<2x8x8xf32>, vector<2x8x8xf32>, vector<2x8x8xf32> -> vector<2x8x32xf32>
    %172 = vector.shape_cast %171 : vector<2x8x32xf32> to vector<16x32xf32>
    %173 = arith.truncf %172 : vector<16x32xf32> to vector<16x32xbf16>
    %c224 = arith.constant 224 : index
    %c0_32 = arith.constant 0 : index
    %174 = vector.load %arg1[%c224, %c0_32] : memref<448x128xbf16, #tpu.memory_space<vmem>>, vector<32x32xbf16>
    %cst_33 = arith.constant dense<0.000000e+00> : vector<16x32xf32>
    %175 = tpu.matmul %173, %174, %cst_33 {dimension_numbers = #tpu.dot_dimension_numbers<[1], [0], [0], [1], [0, 0, 1, 1], [], []>} : vector<16x32xbf16>, vector<32x32xbf16>, vector<16x32xf32> -> vector<16x32xf32>
    %c88 = arith.constant 88 : index
    %c0_34 = arith.constant 0 : index
    %176 = vector.load %arg2[%c88, %c0_34] : memref<184x128xf32, #tpu.memory_space<vmem>>, vector<1x32xf32>
    %177 = vector.broadcast %176 : vector<1x32xf32> to vector<16x32xf32>
    %178 = arith.addf %175, %177 : vector<16x32xf32>
    %179 = arith.addf %178, %101 : vector<16x32xf32>
    %cst_35 = arith.constant dense<0.000000e+00> : vector<16xf32>
    %180 = vector.multi_reduction <add>, %179, %cst_35 [1] : vector<16x32xf32> to vector<16xf32>
    %181 = vector.shape_cast %180 : vector<16xf32> to vector<16x1xf32>
    %cst_36 = arith.constant 3.200000e+01 : f32
    %182 = vector.broadcast %cst_36 : f32 to vector<16x1xf32>
    %183 = arith.divf %181, %182 : vector<16x1xf32>
    %184 = vector.broadcast %183 : vector<16x1xf32> to vector<16x32xf32>
    %185 = arith.subf %179, %184 : vector<16x32xf32>
    %186 = arith.mulf %185, %185 : vector<16x32xf32>
    %cst_37 = arith.constant dense<0.000000e+00> : vector<16xf32>
    %187 = vector.multi_reduction <add>, %186, %cst_37 [1] : vector<16x32xf32> to vector<16xf32>
    %188 = vector.shape_cast %187 : vector<16xf32> to vector<16x1xf32>
    %cst_38 = arith.constant 3.200000e+01 : f32
    %189 = vector.broadcast %cst_38 : f32 to vector<16x1xf32>
    %190 = arith.divf %188, %189 : vector<16x1xf32>
    %191 = vector.broadcast %183 : vector<16x1xf32> to vector<16x32xf32>
    %192 = arith.subf %179, %191 : vector<16x32xf32>
    %cst_39 = arith.constant 9.99999996E-13 : f32
    %193 = vector.broadcast %cst_39 : f32 to vector<16x1xf32>
    %194 = arith.addf %190, %193 : vector<16x1xf32>
    %195 = math.rsqrt %194 : vector<16x1xf32>
    %196 = vector.broadcast %195 : vector<16x1xf32> to vector<16x32xf32>
    %197 = arith.mulf %192, %196 : vector<16x32xf32>
    %c96 = arith.constant 96 : index
    %c0_40 = arith.constant 0 : index
    %198 = vector.load %arg2[%c96, %c0_40] : memref<184x128xf32, #tpu.memory_space<vmem>>, vector<1x32xf32>
    %199 = vector.broadcast %198 : vector<1x32xf32> to vector<16x32xf32>
    %200 = arith.mulf %197, %199 : vector<16x32xf32>
    %c104 = arith.constant 104 : index
    %c0_41 = arith.constant 0 : index
    %201 = vector.load %arg2[%c104, %c0_41] : memref<184x128xf32, #tpu.memory_space<vmem>>, vector<1x32xf32>
    %202 = vector.broadcast %201 : vector<1x32xf32> to vector<16x32xf32>
    %203 = arith.addf %200, %202 : vector<16x32xf32>
    %204 = arith.truncf %203 : vector<16x32xf32> to vector<16x32xbf16>
    %c64 = arith.constant 64 : index
    %c0_42 = arith.constant 0 : index
    %205 = vector.load %arg1[%c64, %c0_42] : memref<448x128xbf16, #tpu.memory_space<vmem>>, vector<32x64xbf16>
    %cst_43 = arith.constant dense<0.000000e+00> : vector<16x64xf32>
    %206 = tpu.matmul %204, %205, %cst_43 {dimension_numbers = #tpu.dot_dimension_numbers<[1], [0], [0], [1], [0, 0, 1, 1], [], []>} : vector<16x32xbf16>, vector<32x64xbf16>, vector<16x64xf32> -> vector<16x64xf32>
    %c40 = arith.constant 40 : index
    %c0_44 = arith.constant 0 : index
    %207 = vector.load %arg2[%c40, %c0_44] : memref<184x128xf32, #tpu.memory_space<vmem>>, vector<1x64xf32>
    %208 = vector.broadcast %207 : vector<1x64xf32> to vector<16x64xf32>
    %209 = arith.addf %206, %208 : vector<16x64xf32>
    %210 = arith.mulf %209, %209 : vector<16x64xf32>
    %211 = arith.mulf %209, %210 : vector<16x64xf32>
    %cst_45 = arith.constant 4.471500e-02 : f32
    %212 = vector.broadcast %cst_45 : f32 to vector<16x64xf32>
    %213 = arith.mulf %212, %211 : vector<16x64xf32>
    %214 = arith.addf %209, %213 : vector<16x64xf32>
    %cst_46 = arith.constant 0.797884583 : f32
    %215 = vector.broadcast %cst_46 : f32 to vector<16x64xf32>
    %216 = arith.mulf %215, %214 : vector<16x64xf32>
    %217 = math.tanh %216 : vector<16x64xf32>
    %cst_47 = arith.constant 1.000000e+00 : f32
    %218 = vector.broadcast %cst_47 : f32 to vector<16x64xf32>
    %219 = arith.addf %218, %217 : vector<16x64xf32>
    %cst_48 = arith.constant 5.000000e-01 : f32
    %220 = vector.broadcast %cst_48 : f32 to vector<16x64xf32>
    %221 = arith.mulf %220, %219 : vector<16x64xf32>
    %222 = arith.mulf %209, %221 : vector<16x64xf32>
    %223 = arith.truncf %222 : vector<16x64xf32> to vector<16x64xbf16>
    %c96_49 = arith.constant 96 : index
    %c0_50 = arith.constant 0 : index
    %224 = vector.load %arg1[%c96_49, %c0_50] : memref<448x128xbf16, #tpu.memory_space<vmem>>, vector<64x32xbf16>
    %cst_51 = arith.constant dense<0.000000e+00> : vector<16x32xf32>
    %225 = tpu.matmul %223, %224, %cst_51 {dimension_numbers = #tpu.dot_dimension_numbers<[1], [0], [0], [1], [0, 0, 1, 1], [], []>} : vector<16x64xbf16>, vector<64x32xbf16>, vector<16x32xf32> -> vector<16x32xf32>
    %c48 = arith.constant 48 : index
    %c0_52 = arith.constant 0 : index
    %226 = vector.load %arg2[%c48, %c0_52] : memref<184x128xf32, #tpu.memory_space<vmem>>, vector<1x32xf32>
    %227 = vector.broadcast %226 : vector<1x32xf32> to vector<16x32xf32>
    %228 = arith.addf %225, %227 : vector<16x32xf32>
    %229 = arith.addf %228, %203 : vector<16x32xf32>
    %cst_53 = arith.constant dense<0.000000e+00> : vector<16xf32>
    %230 = vector.multi_reduction <add>, %229, %cst_53 [1] : vector<16x32xf32> to vector<16xf32>
    %231 = vector.shape_cast %230 : vector<16xf32> to vector<16x1xf32>
    %cst_54 = arith.constant 3.200000e+01 : f32
    %232 = vector.broadcast %cst_54 : f32 to vector<16x1xf32>
    %233 = arith.divf %231, %232 : vector<16x1xf32>
    %234 = vector.broadcast %233 : vector<16x1xf32> to vector<16x32xf32>
    %235 = arith.subf %229, %234 : vector<16x32xf32>
    %236 = arith.mulf %235, %235 : vector<16x32xf32>
    %cst_55 = arith.constant dense<0.000000e+00> : vector<16xf32>
    %237 = vector.multi_reduction <add>, %236, %cst_55 [1] : vector<16x32xf32> to vector<16xf32>
    %238 = vector.shape_cast %237 : vector<16xf32> to vector<16x1xf32>
    %cst_56 = arith.constant 3.200000e+01 : f32
    %239 = vector.broadcast %cst_56 : f32 to vector<16x1xf32>
    %240 = arith.divf %238, %239 : vector<16x1xf32>
    %241 = vector.broadcast %233 : vector<16x1xf32> to vector<16x32xf32>
    %242 = arith.subf %229, %241 : vector<16x32xf32>
    %cst_57 = arith.constant 9.99999996E-13 : f32
    %243 = vector.broadcast %cst_57 : f32 to vector<16x1xf32>
    %244 = arith.addf %240, %243 : vector<16x1xf32>
    %245 = math.rsqrt %244 : vector<16x1xf32>
    %246 = vector.broadcast %245 : vector<16x1xf32> to vector<16x32xf32>
    %247 = arith.mulf %242, %246 : vector<16x32xf32>
    %c56 = arith.constant 56 : index
    %c0_58 = arith.constant 0 : index
    %248 = vector.load %arg2[%c56, %c0_58] : memref<184x128xf32, #tpu.memory_space<vmem>>, vector<1x32xf32>
    %249 = vector.broadcast %248 : vector<1x32xf32> to vector<16x32xf32>
    %250 = arith.mulf %247, %249 : vector<16x32xf32>
    %c64_59 = arith.constant 64 : index
    %c0_60 = arith.constant 0 : index
    %251 = vector.load %arg2[%c64_59, %c0_60] : memref<184x128xf32, #tpu.memory_space<vmem>>, vector<1x32xf32>
    %252 = vector.broadcast %251 : vector<1x32xf32> to vector<16x32xf32>
    %253 = arith.addf %250, %252 : vector<16x32xf32>
    %254 = arith.truncf %253 : vector<16x32xf32> to vector<16x32xbf16>
    %c256 = arith.constant 256 : index
    %c0_61 = arith.constant 0 : index
    %255 = vector.load %arg1[%c256, %c0_61] : memref<448x128xbf16, #tpu.memory_space<vmem>>, vector<32x96xbf16>
    %cst_62 = arith.constant dense<0.000000e+00> : vector<16x96xf32>
    %256 = tpu.matmul %254, %255, %cst_62 {dimension_numbers = #tpu.dot_dimension_numbers<[1], [0], [0], [1], [0, 0, 1, 1], [], []>} : vector<16x32xbf16>, vector<32x96xbf16>, vector<16x96xf32> -> vector<16x96xf32>
    %c112 = arith.constant 112 : index
    %c0_63 = arith.constant 0 : index
    %257 = vector.load %arg2[%c112, %c0_63] : memref<184x128xf32, #tpu.memory_space<vmem>>, vector<1x96xf32>
    %258 = vector.broadcast %257 : vector<1x96xf32> to vector<16x96xf32>
    %259 = arith.addf %256, %258 : vector<16x96xf32>
    %260 = vector.shape_cast %259 : vector<16x96xf32> to vector<2x8x96xf32>
    %261 = vector.extract_strided_slice %260 {offsets = [0, 0, 0], sizes = [2, 8, 8], strides = [1, 1, 1]} : vector<2x8x96xf32> to vector<2x8x8xf32>
    %262 = vector.extract_strided_slice %260 {offsets = [0, 0, 8], sizes = [2, 8, 8], strides = [1, 1, 1]} : vector<2x8x96xf32> to vector<2x8x8xf32>
    %263 = vector.extract_strided_slice %260 {offsets = [0, 0, 16], sizes = [2, 8, 8], strides = [1, 1, 1]} : vector<2x8x96xf32> to vector<2x8x8xf32>
    %264 = vector.extract_strided_slice %260 {offsets = [0, 0, 24], sizes = [2, 8, 8], strides = [1, 1, 1]} : vector<2x8x96xf32> to vector<2x8x8xf32>
    %265 = vector.shape_cast %261 : vector<2x8x8xf32> to vector<2x1x8x8xf32>
    %266 = vector.shape_cast %262 : vector<2x8x8xf32> to vector<2x1x8x8xf32>
    %267 = vector.shape_cast %263 : vector<2x8x8xf32> to vector<2x1x8x8xf32>
    %268 = vector.shape_cast %264 : vector<2x8x8xf32> to vector<2x1x8x8xf32>
    %269 = tpu.concatenate %265, %266, %267, %268 in 1 : vector<2x1x8x8xf32>, vector<2x1x8x8xf32>, vector<2x1x8x8xf32>, vector<2x1x8x8xf32> -> vector<2x4x8x8xf32>
    %270 = vector.shape_cast %269 : vector<2x4x8x8xf32> to vector<8x8x8xf32>
    %271 = vector.extract_strided_slice %260 {offsets = [0, 0, 32], sizes = [2, 8, 8], strides = [1, 1, 1]} : vector<2x8x96xf32> to vector<2x8x8xf32>
    %272 = vector.extract_strided_slice %260 {offsets = [0, 0, 40], sizes = [2, 8, 8], strides = [1, 1, 1]} : vector<2x8x96xf32> to vector<2x8x8xf32>
    %273 = vector.extract_strided_slice %260 {offsets = [0, 0, 48], sizes = [2, 8, 8], strides = [1, 1, 1]} : vector<2x8x96xf32> to vector<2x8x8xf32>
    %274 = vector.extract_strided_slice %260 {offsets = [0, 0, 56], sizes = [2, 8, 8], strides = [1, 1, 1]} : vector<2x8x96xf32> to vector<2x8x8xf32>
    %275 = vector.shape_cast %271 : vector<2x8x8xf32> to vector<2x1x8x8xf32>
    %276 = vector.shape_cast %272 : vector<2x8x8xf32> to vector<2x1x8x8xf32>
    %277 = vector.shape_cast %273 : vector<2x8x8xf32> to vector<2x1x8x8xf32>
    %278 = vector.shape_cast %274 : vector<2x8x8xf32> to vector<2x1x8x8xf32>
    %279 = tpu.concatenate %275, %276, %277, %278 in 1 : vector<2x1x8x8xf32>, vector<2x1x8x8xf32>, vector<2x1x8x8xf32>, vector<2x1x8x8xf32> -> vector<2x4x8x8xf32>
    %280 = vector.shape_cast %279 : vector<2x4x8x8xf32> to vector<8x8x8xf32>
    %281 = vector.extract_strided_slice %260 {offsets = [0, 0, 64], sizes = [2, 8, 8], strides = [1, 1, 1]} : vector<2x8x96xf32> to vector<2x8x8xf32>
    %282 = vector.extract_strided_slice %260 {offsets = [0, 0, 72], sizes = [2, 8, 8], strides = [1, 1, 1]} : vector<2x8x96xf32> to vector<2x8x8xf32>
    %283 = vector.extract_strided_slice %260 {offsets = [0, 0, 80], sizes = [2, 8, 8], strides = [1, 1, 1]} : vector<2x8x96xf32> to vector<2x8x8xf32>
    %284 = vector.extract_strided_slice %260 {offsets = [0, 0, 88], sizes = [2, 8, 8], strides = [1, 1, 1]} : vector<2x8x96xf32> to vector<2x8x8xf32>
    %285 = vector.shape_cast %281 : vector<2x8x8xf32> to vector<2x1x8x8xf32>
    %286 = vector.shape_cast %282 : vector<2x8x8xf32> to vector<2x1x8x8xf32>
    %287 = vector.shape_cast %283 : vector<2x8x8xf32> to vector<2x1x8x8xf32>
    %288 = vector.shape_cast %284 : vector<2x8x8xf32> to vector<2x1x8x8xf32>
    %289 = tpu.concatenate %285, %286, %287, %288 in 1 : vector<2x1x8x8xf32>, vector<2x1x8x8xf32>, vector<2x1x8x8xf32>, vector<2x1x8x8xf32> -> vector<2x4x8x8xf32>
    %290 = vector.shape_cast %289 : vector<2x4x8x8xf32> to vector<8x8x8xf32>
    %291 = arith.truncf %270 : vector<8x8x8xf32> to vector<8x8x8xbf16>
    %292 = arith.truncf %280 : vector<8x8x8xf32> to vector<8x8x8xbf16>
    "tpu.trace_start"() <{level = 10 : i32, message = "gtd,gsd->gts"}> : () -> ()
    %cst_64 = arith.constant dense<0.000000e+00> : vector<8x8x8xf32>
    %293 = tpu.matmul %291, %292, %cst_64 {dimension_numbers = #tpu.dot_dimension_numbers<[2], [2], [1], [1], [0, 0, 0, 1, 1, 1], [0], [0]>} : vector<8x8x8xbf16>, vector<8x8x8xbf16>, vector<8x8x8xf32> -> vector<8x8x8xf32>
    "tpu.trace_stop"() : () -> ()
    %cst_65 = arith.constant dense<0xFF800000> : vector<8x8xf32>
    %294 = vector.multi_reduction <maximumf>, %293, %cst_65 [2] : vector<8x8x8xf32> to vector<8x8xf32>
    %295 = vector.shape_cast %294 : vector<8x8xf32> to vector<8x8x1xf32>
    %296 = vector.broadcast %295 : vector<8x8x1xf32> to vector<8x8x8xf32>
    %297 = arith.subf %293, %296 : vector<8x8x8xf32>
    %298 = math.exp %297 : vector<8x8x8xf32>
    %cst_66 = arith.constant dense<0.000000e+00> : vector<8x8xf32>
    %299 = vector.multi_reduction <add>, %298, %cst_66 [2] : vector<8x8x8xf32> to vector<8x8xf32>
    %300 = vector.shape_cast %299 : vector<8x8xf32> to vector<8x8x1xf32>
    %301 = tpu.reciprocal %300 {approx = true} : vector<8x8x1xf32> -> vector<8x8x1xf32>
    %302 = vector.broadcast %301 : vector<8x8x1xf32> to vector<8x8x8xf32>
    %303 = arith.mulf %298, %302 : vector<8x8x8xf32>
    %304 = arith.truncf %303 : vector<8x8x8xf32> to vector<8x8x8xbf16>
    %305 = arith.truncf %290 : vector<8x8x8xf32> to vector<8x8x8xbf16>
    "tpu.trace_start"() <{level = 10 : i32, message = "gts,gsd->gtd"}> : () -> ()
    %cst_67 = arith.constant dense<0.000000e+00> : vector<8x8x8xf32>
    %306 = tpu.matmul %304, %305, %cst_67 {dimension_numbers = #tpu.dot_dimension_numbers<[2], [1], [1], [2], [0, 0, 0, 1, 1, 2], [0], [0]>} : vector<8x8x8xbf16>, vector<8x8x8xbf16>, vector<8x8x8xf32> -> vector<8x8x8xf32>
    "tpu.trace_stop"() : () -> ()
    %307 = vector.shape_cast %306 : vector<8x8x8xf32> to vector<2x4x8x8xf32>
    %308 = vector.extract_strided_slice %307 {offsets = [0, 0, 0, 0], sizes = [2, 1, 8, 8], strides = [1, 1, 1, 1]} : vector<2x4x8x8xf32> to vector<2x1x8x8xf32>
    %309 = vector.shape_cast %308 : vector<2x1x8x8xf32> to vector<2x8x8xf32>
    %310 = vector.extract_strided_slice %307 {offsets = [0, 1, 0, 0], sizes = [2, 1, 8, 8], strides = [1, 1, 1, 1]} : vector<2x4x8x8xf32> to vector<2x1x8x8xf32>
    %311 = vector.shape_cast %310 : vector<2x1x8x8xf32> to vector<2x8x8xf32>
    %312 = vector.extract_strided_slice %307 {offsets = [0, 2, 0, 0], sizes = [2, 1, 8, 8], strides = [1, 1, 1, 1]} : vector<2x4x8x8xf32> to vector<2x1x8x8xf32>
    %313 = vector.shape_cast %312 : vector<2x1x8x8xf32> to vector<2x8x8xf32>
    %314 = vector.extract_strided_slice %307 {offsets = [0, 3, 0, 0], sizes = [2, 1, 8, 8], strides = [1, 1, 1, 1]} : vector<2x4x8x8xf32> to vector<2x1x8x8xf32>
    %315 = vector.shape_cast %314 : vector<2x1x8x8xf32> to vector<2x8x8xf32>
    %316 = tpu.concatenate %309, %311, %313, %315 in 2 : vector<2x8x8xf32>, vector<2x8x8xf32>, vector<2x8x8xf32>, vector<2x8x8xf32> -> vector<2x8x32xf32>
    %317 = vector.shape_cast %316 : vector<2x8x32xf32> to vector<16x32xf32>
    %318 = arith.truncf %317 : vector<16x32xf32> to vector<16x32xbf16>
    %c288 = arith.constant 288 : index
    %c0_68 = arith.constant 0 : index
    %319 = vector.load %arg1[%c288, %c0_68] : memref<448x128xbf16, #tpu.memory_space<vmem>>, vector<32x32xbf16>
    %cst_69 = arith.constant dense<0.000000e+00> : vector<16x32xf32>
    %320 = tpu.matmul %318, %319, %cst_69 {dimension_numbers = #tpu.dot_dimension_numbers<[1], [0], [0], [1], [0, 0, 1, 1], [], []>} : vector<16x32xbf16>, vector<32x32xbf16>, vector<16x32xf32> -> vector<16x32xf32>
    %c120 = arith.constant 120 : index
    %c0_70 = arith.constant 0 : index
    %321 = vector.load %arg2[%c120, %c0_70] : memref<184x128xf32, #tpu.memory_space<vmem>>, vector<1x32xf32>
    %322 = vector.broadcast %321 : vector<1x32xf32> to vector<16x32xf32>
    %323 = arith.addf %320, %322 : vector<16x32xf32>
    %324 = arith.addf %323, %253 : vector<16x32xf32>
    %cst_71 = arith.constant dense<0.000000e+00> : vector<16xf32>
    %325 = vector.multi_reduction <add>, %324, %cst_71 [1] : vector<16x32xf32> to vector<16xf32>
    %326 = vector.shape_cast %325 : vector<16xf32> to vector<16x1xf32>
    %cst_72 = arith.constant 3.200000e+01 : f32
    %327 = vector.broadcast %cst_72 : f32 to vector<16x1xf32>
    %328 = arith.divf %326, %327 : vector<16x1xf32>
    %329 = vector.broadcast %328 : vector<16x1xf32> to vector<16x32xf32>
    %330 = arith.subf %324, %329 : vector<16x32xf32>
    %331 = arith.mulf %330, %330 : vector<16x32xf32>
    %cst_73 = arith.constant dense<0.000000e+00> : vector<16xf32>
    %332 = vector.multi_reduction <add>, %331, %cst_73 [1] : vector<16x32xf32> to vector<16xf32>
    %333 = vector.shape_cast %332 : vector<16xf32> to vector<16x1xf32>
    %cst_74 = arith.constant 3.200000e+01 : f32
    %334 = vector.broadcast %cst_74 : f32 to vector<16x1xf32>
    %335 = arith.divf %333, %334 : vector<16x1xf32>
    %336 = vector.broadcast %328 : vector<16x1xf32> to vector<16x32xf32>
    %337 = arith.subf %324, %336 : vector<16x32xf32>
    %cst_75 = arith.constant 9.99999996E-13 : f32
    %338 = vector.broadcast %cst_75 : f32 to vector<16x1xf32>
    %339 = arith.addf %335, %338 : vector<16x1xf32>
    %340 = math.rsqrt %339 : vector<16x1xf32>
    %341 = vector.broadcast %340 : vector<16x1xf32> to vector<16x32xf32>
    %342 = arith.mulf %337, %341 : vector<16x32xf32>
    %c128 = arith.constant 128 : index
    %c0_76 = arith.constant 0 : index
    %343 = vector.load %arg2[%c128, %c0_76] : memref<184x128xf32, #tpu.memory_space<vmem>>, vector<1x32xf32>
    %344 = vector.broadcast %343 : vector<1x32xf32> to vector<16x32xf32>
    %345 = arith.mulf %342, %344 : vector<16x32xf32>
    %c136 = arith.constant 136 : index
    %c0_77 = arith.constant 0 : index
    %346 = vector.load %arg2[%c136, %c0_77] : memref<184x128xf32, #tpu.memory_space<vmem>>, vector<1x32xf32>
    %347 = vector.broadcast %346 : vector<1x32xf32> to vector<16x32xf32>
    %348 = arith.addf %345, %347 : vector<16x32xf32>
    %349 = arith.truncf %348 : vector<16x32xf32> to vector<16x32xbf16>
    %c320 = arith.constant 320 : index
    %c0_78 = arith.constant 0 : index
    %350 = vector.load %arg1[%c320, %c0_78] : memref<448x128xbf16, #tpu.memory_space<vmem>>, vector<32x64xbf16>
    %cst_79 = arith.constant dense<0.000000e+00> : vector<16x64xf32>
    %351 = tpu.matmul %349, %350, %cst_79 {dimension_numbers = #tpu.dot_dimension_numbers<[1], [0], [0], [1], [0, 0, 1, 1], [], []>} : vector<16x32xbf16>, vector<32x64xbf16>, vector<16x64xf32> -> vector<16x64xf32>
    %c144 = arith.constant 144 : index
    %c0_80 = arith.constant 0 : index
    %352 = vector.load %arg2[%c144, %c0_80] : memref<184x128xf32, #tpu.memory_space<vmem>>, vector<1x64xf32>
    %353 = vector.broadcast %352 : vector<1x64xf32> to vector<16x64xf32>
    %354 = arith.addf %351, %353 : vector<16x64xf32>
    %355 = arith.mulf %354, %354 : vector<16x64xf32>
    %356 = arith.mulf %354, %355 : vector<16x64xf32>
    %cst_81 = arith.constant 4.471500e-02 : f32
    %357 = vector.broadcast %cst_81 : f32 to vector<16x64xf32>
    %358 = arith.mulf %357, %356 : vector<16x64xf32>
    %359 = arith.addf %354, %358 : vector<16x64xf32>
    %cst_82 = arith.constant 0.797884583 : f32
    %360 = vector.broadcast %cst_82 : f32 to vector<16x64xf32>
    %361 = arith.mulf %360, %359 : vector<16x64xf32>
    %362 = math.tanh %361 : vector<16x64xf32>
    %cst_83 = arith.constant 1.000000e+00 : f32
    %363 = vector.broadcast %cst_83 : f32 to vector<16x64xf32>
    %364 = arith.addf %363, %362 : vector<16x64xf32>
    %cst_84 = arith.constant 5.000000e-01 : f32
    %365 = vector.broadcast %cst_84 : f32 to vector<16x64xf32>
    %366 = arith.mulf %365, %364 : vector<16x64xf32>
    %367 = arith.mulf %354, %366 : vector<16x64xf32>
    %368 = arith.truncf %367 : vector<16x64xf32> to vector<16x64xbf16>
    %c352 = arith.constant 352 : index
    %c0_85 = arith.constant 0 : index
    %369 = vector.load %arg1[%c352, %c0_85] : memref<448x128xbf16, #tpu.memory_space<vmem>>, vector<64x32xbf16>
    %cst_86 = arith.constant dense<0.000000e+00> : vector<16x32xf32>
    %370 = tpu.matmul %368, %369, %cst_86 {dimension_numbers = #tpu.dot_dimension_numbers<[1], [0], [0], [1], [0, 0, 1, 1], [], []>} : vector<16x64xbf16>, vector<64x32xbf16>, vector<16x32xf32> -> vector<16x32xf32>
    %c152 = arith.constant 152 : index
    %c0_87 = arith.constant 0 : index
    %371 = vector.load %arg2[%c152, %c0_87] : memref<184x128xf32, #tpu.memory_space<vmem>>, vector<1x32xf32>
    %372 = vector.broadcast %371 : vector<1x32xf32> to vector<16x32xf32>
    %373 = arith.addf %370, %372 : vector<16x32xf32>
    %374 = arith.addf %373, %348 : vector<16x32xf32>
    %cst_88 = arith.constant dense<0.000000e+00> : vector<16xf32>
    %375 = vector.multi_reduction <add>, %374, %cst_88 [1] : vector<16x32xf32> to vector<16xf32>
    %376 = vector.shape_cast %375 : vector<16xf32> to vector<16x1xf32>
    %cst_89 = arith.constant 3.200000e+01 : f32
    %377 = vector.broadcast %cst_89 : f32 to vector<16x1xf32>
    %378 = arith.divf %376, %377 : vector<16x1xf32>
    %379 = vector.broadcast %378 : vector<16x1xf32> to vector<16x32xf32>
    %380 = arith.subf %374, %379 : vector<16x32xf32>
    %381 = arith.mulf %380, %380 : vector<16x32xf32>
    %cst_90 = arith.constant dense<0.000000e+00> : vector<16xf32>
    %382 = vector.multi_reduction <add>, %381, %cst_90 [1] : vector<16x32xf32> to vector<16xf32>
    %383 = vector.shape_cast %382 : vector<16xf32> to vector<16x1xf32>
    %cst_91 = arith.constant 3.200000e+01 : f32
    %384 = vector.broadcast %cst_91 : f32 to vector<16x1xf32>
    %385 = arith.divf %383, %384 : vector<16x1xf32>
    %386 = vector.broadcast %378 : vector<16x1xf32> to vector<16x32xf32>
    %387 = arith.subf %374, %386 : vector<16x32xf32>
    %cst_92 = arith.constant 9.99999996E-13 : f32
    %388 = vector.broadcast %cst_92 : f32 to vector<16x1xf32>
    %389 = arith.addf %385, %388 : vector<16x1xf32>
    %390 = math.rsqrt %389 : vector<16x1xf32>
    %391 = vector.broadcast %390 : vector<16x1xf32> to vector<16x32xf32>
    %392 = arith.mulf %387, %391 : vector<16x32xf32>
    %c160_93 = arith.constant 160 : index
    %c0_94 = arith.constant 0 : index
    %393 = vector.load %arg2[%c160_93, %c0_94] : memref<184x128xf32, #tpu.memory_space<vmem>>, vector<1x32xf32>
    %394 = vector.broadcast %393 : vector<1x32xf32> to vector<16x32xf32>
    %395 = arith.mulf %392, %394 : vector<16x32xf32>
    %c168 = arith.constant 168 : index
    %c0_95 = arith.constant 0 : index
    %396 = vector.load %arg2[%c168, %c0_95] : memref<184x128xf32, #tpu.memory_space<vmem>>, vector<1x32xf32>
    %397 = vector.broadcast %396 : vector<1x32xf32> to vector<16x32xf32>
    %398 = arith.addf %395, %397 : vector<16x32xf32>
    %399 = arith.truncf %398 : vector<16x32xf32> to vector<16x32xbf16>
    %c416 = arith.constant 416 : index
    %c0_96 = arith.constant 0 : index
    %400 = vector.load %arg1[%c416, %c0_96] : memref<448x128xbf16, #tpu.memory_space<vmem>>, vector<32x64xbf16>
    %cst_97 = arith.constant dense<0.000000e+00> : vector<16x64xf32>
    %401 = tpu.matmul %399, %400, %cst_97 {dimension_numbers = #tpu.dot_dimension_numbers<[1], [0], [0], [1], [0, 0, 1, 1], [], []>} : vector<16x32xbf16>, vector<32x64xbf16>, vector<16x64xf32> -> vector<16x64xf32>
    %c176 = arith.constant 176 : index
    %c0_98 = arith.constant 0 : index
    %402 = vector.load %arg2[%c176, %c0_98] : memref<184x128xf32, #tpu.memory_space<vmem>>, vector<1x64xf32>
    %403 = vector.broadcast %402 : vector<1x64xf32> to vector<16x64xf32>
    %404 = arith.addf %401, %403 : vector<16x64xf32>
    %405 = vector.shape_cast %404 : vector<16x64xf32> to vector<2x8x64xf32>
    %c0_99 = arith.constant 0 : index
    %c0_100 = arith.constant 0 : index
    %c0_101 = arith.constant 0 : index
    %406 = vector.load %arg3[%c0_99, %c0_100, %c0_101] : memref<2x8x64xf32, #tpu.memory_space<vmem>>, vector<2x8x64xf32>
    tpu.vector_store %arg3[%c0_99, %c0_100, %c0_101], %405 {strides = array<i32>} : memref<2x8x64xf32, #tpu.memory_space<vmem>>, vector<2x8x64xf32>,
    return
  }
}

</mosaic_0001>

<bundles_post_ra>
// kernel: tpu_custom_call.1
= control target key start
LH: loop header
LB: loop body
LE: loop exit
PB: predicated region body
PF: predicated region fallthrough
CT: control target
= control target key end

     0   :  { %8 = vsyncpa [#allocation3], 0  ;;  %s3545_s0 = inlined_call_operand.hbm [shape: f32[2,16,32], index: 0, kind: input, shape index: {}]   ;;  %s3546_s1 = inlined_call_operand.hbm [shape: bf16[448,128], index: 1, kind: input, shape index: {}]   ;;  %s3547_s2 = inlined_call_operand.hbm [shape: f32[184,128], index: 2, kind: input, shape index: {}]   ;;  %s3548_s3 = inlined_call_operand.hbm [shape: f32[2,8,64], index: 3, kind: output, shape index: {}]  }
   0x1   :  { %9 = vsyncpa [#allocation6], 0  ;;  %s28_s14 = sshll.u32 %s3546_s1, 4  ;;  %s29_s14 = int_to_ptr.hbm [resolvable:$true] %s28_s14 }
   0x2   :  { %10 = vsyncpa [#allocation4], 0  ;;  %s3005_s15 = smov [#allocation5]   ;;  %s15_s19 = sshll.u32 %s3545_s0, 4  ;;  %s16_s19 = int_to_ptr.hbm [resolvable:$true] %s15_s19 }
   0x3   :  { %s30_s16 = sshll.u32 %s3005_s15, 4  ;;  %s3006_s20 = smov 64   ;;  %s31_s16 = int_to_ptr.vmem [resolvable:$true] %s30_s16 }
   0x4   :  { %s3007_s21 = smov 4   ;;  %s3008_s22 = smov [#allocation2]  }
   0x5   :  { %36 = dma.hbm_to_vmem [thread:$0]  %s29_s14, 3584, %s31_s16, [#allocation6], %s3006_s20, %s3006_s20, %s3007_s21  }
   0x6   :  { %s17_s23 = sshll.u32 %s3008_s22, 4  ;;  %s3009_s24 = smov 128   ;;  %s18_s23 = int_to_ptr.vmem [resolvable:$true] %s17_s23 }
   0x7   :  { %s3010_s1 = smov 8   ;;  %s41_s27 = sshll.u32 %s3547_s2, 4  ;;  %s42_s27 = int_to_ptr.hbm [resolvable:$true] %s41_s27 }
   0x8   :  { %23 = dma.hbm_to_vmem [thread:$0]  %s16_s19, 512, %s18_s23, [#allocation3], %s3009_s24, %s3009_s24, %s3010_s1  }
   0x9   :  { %s3011_s0 = smov [#allocation7]  }
   0xa   :  { %s43_s28 = sshll.u32 %s3011_s0, 4  ;;  %s44_s28 = int_to_ptr.vmem [resolvable:$true] %s43_s28 }
   0xb   :  { %49 = dma.hbm_to_vmem [thread:$0]  %s42_s27, 2944, %s44_s28, [#allocation6], %s3009_s24, %s3009_s24, %s3010_s1  }
   0xc   :  { %2999 = dma.done.wait [#allocation3], 512  }
   0xd   :  { %3000 = vsyncadd [#allocation3], 4294966784 }
   0xe   :  { %3001 = dma.done.wait [#allocation6], 6528  }
   0xf   :  { %3002 = vsyncadd [#allocation6], 4294960768  ;;  %v2638_v0 = vld [vmem:[#allocation5 + $0x8] sm:$0xff]  ;;  %v2637_v1 = vld [vmem:[#allocation5] sm:$0xff]  ;;  %vm87_vm0 = vcmask 261120   ;;  %s3012_s2 = smov 104  }
  0x10   :  { %v3057_v2 = vld [vmem:[#allocation7] sm:$0xff]  ;;  %97 = vmatpush.bf16.msra.mxu0 %v2638_v0  ;;  %v2755_v4 = vld [vmem:[#allocation7 + $0x8] ss:$0 sm:$0xff]  ;;  %s3013_s29 = smov 120   ;;  %s3014_s30 = smov 112   ;;  %vm138_vm1 = vcmask 64512  }
  0x11   :  { %v68_v3 = vpack.c.bf16 %v3057_v2, %v3057_v2  ;;  %s3015_s4 = smov 96   ;;  %vm427_vm2 = vcmask 1043456   ;;  %s3016_s5 = smov 16   ;;  %vm617_vm3 = vcmask 130048   ;;  %vm620_vm4 = vcmask 195584  }
  0x12   :  { %s3017_s6 = smov 24   ;;  %s3019_s7 = smov [#allocation8]  }
  0x13   :  { %s2448_s8 = sshll.u32 %s3019_s7, 4  ;;  %s2450_s11 = sshll.u32 %s3548_s3, 4  ;;  %s2449_s8 = int_to_ptr.vmem [resolvable:$true] %s2448_s8  ;;  %s2451_s11 = int_to_ptr.hbm [resolvable:$true] %s2450_s11 }
  0x14   :  { %98 = vmatpush.bf16.msra.mxu0 %v2637_v1 }
  0x17   :  { %2472 = vmatmul.msk.bf16.vlgmr.msra.gmra.mxu0 %vm87_vm0, %v68_v3 }
  0x94   :  { %v100_v5 = vpop.f32.mrf.mxu0 }
  0x95   :  { %v101_v6 = vadd.f32 %v2755_v4, %v100_v5 }
  0x97   :  { %119 = vrot.lane.b32.xlu1 %v101_v6, %s3012_s2  ;;  %107 = vrot.lane.b32.xlu0 %v101_v6, %s3013_s29  ;;  %v125_v29 = vpack.c.bf16 %v101_v6, %v101_v6 }
  0x99   :  { %v134_v32 = vunpack.c.l.b16 %v125_v29 }
  0x9b   :  { %v3088_v34 = vpack.c.b16 %v134_v32, %v134_v32 }
  0x9c   :  { %v102_v7 = vpop.f32.mrf.mxu0 }
  0x9d   :  { %v103_v8 = vadd.f32 %v2755_v4, %v102_v7 }
  0x9f   :  { %115 = vrot.lane.b32.xlu2 %v103_v8, %s3014_s30  ;;  %109 = vrot.lane.b32.xlu1 %v103_v8, %s3013_s29  ;;  %v129_v36 = vpack.c.bf16 %v103_v8, %v103_v8 }
  0xa0   :  { %113 = vrot.lane.b32.xlu0 %v101_v6, %s3014_s30 }
  0xa1   :  { %v231_v37 = vunpack.c.l.b16 %v129_v36 }
  0xa3   :  { %v3096_v38 = vpack.c.b16 %v231_v37, %v231_v37 }
  0xa7   :  { %121 = vrot.lane.b32.xlu2 %v103_v8, %s3012_s2 }
  0xf9   :  { %v116_v9 = vpop.permute.xlu2 %115 }
  0xfa   :  { %v131_v30 = vpack.c.bf16 %v116_v9, %v116_v9 }
  0xfc   :  { %v279_v33 = vunpack.c.l.b16 %v131_v30 }
  0xfe   :  { %v3090_v35 = vpack.c.b16 %v279_v33, %v279_v33 }
 0x101   :  { %v122_v14 = vpop.permute.xlu2 %121 }
 0x102   :  { %v132_v17 = vpack.c.bf16 %v122_v14, %v122_v14 }
 0x104   :  { %v303_v21 = vunpack.c.l.b16 %v132_v17 }
 0x106   :  { %v3076_v27 = vpack.c.b16 %v303_v21, %v303_v21 }
 0x109   :  { %v120_v10 = vpop.permute.xlu1 %119  ;;  %v108_v11 = vpop.permute.xlu0 %107 }
 0x10a   :  { %v128_v12 = vpack.c.bf16 %v120_v10, %v120_v10  ;;  %v126_v13 = vpack.c.bf16 %v108_v11, %v108_v11 }
 0x10c   :  { %v207_v15 = vunpack.c.l.b16 %v128_v12  ;;  %v159_v16 = vunpack.c.l.b16 %v126_v13 }
 0x10e   :  { %v3068_v18 = vpack.c.b16 %v207_v15, %v207_v15  ;;  %v3070_v19 = vpack.c.b16 %v159_v16, %v159_v16 }
 0x110   :  { %209 = vrot.lane.b32.xlu2 %v3068_v18, %s3015_s4  ;;  %161 = vrot.lane.b32.xlu0 %v3070_v19, %s3015_s4 }
 0x111   :  { %v110_v20 = vpop.permute.xlu1 %109 }
 0x112   :  { %v130_v22 = vpack.c.bf16 %v110_v20, %v110_v20  ;;  %v114_v23 = vpop.permute.xlu0 %113 }
 0x113   :  { %v127_v24 = vpack.c.bf16 %v114_v23, %v114_v23 }
 0x114   :  { %v255_v25 = vunpack.c.l.b16 %v130_v22 }
 0x115   :  { %v183_v26 = vunpack.c.l.b16 %v127_v24 }
 0x116   :  { %v3078_v28 = vpack.c.b16 %v255_v25, %v255_v25 }
 0x117   :  { %v3080_v31 = vpack.c.b16 %v183_v26, %v183_v26 }
 0x118   :  { %305 = vrot.lane.b32.xlu2 %v3076_v27, %s3015_s4  ;;  %257 = vrot.lane.b32.xlu0 %v3078_v28, %s3015_s4 }
 0x119   :  { %185 = vrot.lane.b32.xlu1 %v3080_v31, %s3015_s4 }
 0x120   :  { %136 = vrot.lane.b32.xlu0 %v3088_v34, %s3015_s4 }
 0x121   :  { %281 = vrot.lane.b32.xlu1 %v3090_v35, %s3015_s4 }
 0x129   :  { %233 = vrot.lane.b32.xlu1 %v3096_v38, %s3015_s4 }
 0x16a   :  { %v210_v39 = vpop.permute.xlu2 %209 }
 0x16b   :  { %v215_v40 = vsel %vm138_vm1, %v210_v39, 0 }
 0x16c   :  { %224 = vmatpush.bf16.xpose.msrb.mxu0 %v215_v40 }
 0x172   :  { %v306_v41 = vpop.permute.xlu2 %305 }
 0x173   :  { %v311_v42 = vsel %vm138_vm1, %v306_v41, 0  ;;  %2476 = vmatmul.msk.bf16.vlgmr.msrb.gmra.mxu0 %vm138_vm1, %v128_v12 }
 0x174   :  { %320 = vmatpush.bf16.xpose.msra.mxu0 %v311_v42 }
 0x182   :  { %v162_v43 = vpop.permute.xlu0 %161 }
 0x183   :  { %2480 = vmatmul.msk.bf16.vlgmr.msra.gmra.mxu0 %vm138_vm1, %v132_v17  ;;  %v167_v44 = vsel %vm138_vm1, %v162_v43, 0 }
 0x184   :  { %176 = vmatpush.bf16.xpose.msra.mxu2 %v167_v44 }
 0x18a   :  { %v258_v45 = vpop.permute.xlu0 %257 }
 0x18b   :  { %v186_v46 = vpop.permute.xlu1 %185  ;;  %2474 = vmatmul.msk.bf16.vlgmr.msra.gmra.mxu2 %vm138_vm1, %v126_v13  ;;  %v263_v47 = vsel %vm138_vm1, %v258_v45, 0 }
 0x18c   :  { %v191_v48 = vsel %vm138_vm1, %v186_v46, 0  ;;  %272 = vmatpush.bf16.xpose.msrb.mxu2 %v263_v47 }
 0x18d   :  { %200 = vmatpush.bf16.xpose.msra.mxu3 %v191_v48 }
 0x192   :  { %v137_v49 = vpop.permute.xlu0 %136 }
 0x193   :  { %v282_v50 = vpop.permute.xlu1 %281  ;;  %v143_v51 = vsel %vm138_vm1, %v137_v49, 0 }
 0x194   :  { %2475 = vmatmul.msk.bf16.vlgmr.msra.gmra.mxu3 %vm138_vm1, %v127_v24  ;;  %152 = vmatpush.bf16.xpose.msra.mxu1 %v143_v51  ;;  %v287_v52 = vsel %vm138_vm1, %v282_v50, 0 }
 0x195   :  { %296 = vmatpush.bf16.xpose.msrb.mxu3 %v287_v52 }
 0x19b   :  { %v234_v53 = vpop.permute.xlu1 %233  ;;  %2473 = vmatmul.msk.bf16.vlgmr.msra.gmra.mxu1 %vm138_vm1, %v125_v29  ;;  %2478 = vmatmul.msk.bf16.vlgmr.msrb.gmra.mxu2 %vm138_vm1, %v130_v22 }
 0x19c   :  { %v239_v54 = vsel %vm138_vm1, %v234_v53, 0 }
 0x19d   :  { %248 = vmatpush.bf16.xpose.msrb.mxu1 %v239_v54 }
 0x1a4   :  { %2479 = vmatmul.msk.bf16.vlgmr.msrb.gmra.mxu3 %vm138_vm1, %v131_v30 }
 0x1ab   :  { %2477 = vmatmul.msk.bf16.vlgmr.msrb.gmra.mxu1 %vm138_vm1, %v129_v36 }
 0x1f0   :  { %v226_v55 = vpop.f32.mrf.mxu0 }
 0x1f1   :  { %v335_v8 = vsel %vm138_vm1, %v226_v55, -inf }
 0x1f8   :  { %v228_v56 = vpop.f32.mrf.mxu0 }
 0x200   :  { %v3116_v57 = vpop.f32.mrf.mxu0 }
 0x201   :  { %v347_v6 = vsel %vm138_vm1, %v3116_v57, -inf }
 0x208   :  { %v324_v58 = vpop.f32.mrf.mxu0 }
 0x20e   :  { %v178_v59 = vpop.f32.mrf.mxu2 }
 0x20f   :  { %v329_v60 = vsel %vm138_vm1, %v178_v59, -inf }
 0x210   :  { %330 = vmax.xlane.f32.xlu2 %v329_v60 }
 0x216   :  { %v180_v61 = vpop.f32.mrf.mxu2 }
 0x217   :  { %v202_v62 = vpop.f32.mrf.mxu3 }
 0x218   :  { %v332_v63 = vsel %vm138_vm1, %v202_v62, -inf  ;;  %v3120_v0 = vpop.f32.mrf.mxu1 }
 0x219   :  { %333 = vmax.xlane.f32.xlu0 %v332_v63  ;;  %v326_v1 = vsel %vm138_vm1, %v3120_v0, -inf }
 0x21a   :  { %327 = vmax.xlane.f32.xlu1 %v326_v1 }
 0x21e   :  { %v274_v3 = vpop.f32.mrf.mxu2 }
 0x21f   :  { %v204_v4 = vpop.f32.mrf.mxu3  ;;  %v341_v5 = vsel %vm138_vm1, %v274_v3, -inf }
 0x220   :  { %342 = vmax.xlane.f32.xlu2 %v341_v5  ;;  %v156_v7 = vpop.f32.mrf.mxu1 }
 0x221   :  { %348 = vmax.xlane.f32.xlu0 %v347_v6 }
 0x222   :  { %336 = vmax.xlane.f32.xlu1 %v335_v8 }
 0x226   :  { %v276_v9 = vpop.f32.mrf.mxu2 }
 0x227   :  { %v298_v10 = vpop.f32.mrf.mxu3 }
 0x228   :  { %v344_v11 = vsel %vm138_vm1, %v298_v10, -inf  ;;  %v3129_v12 = vpop.f32.mrf.mxu1 }
 0x229   :  { %345 = vmax.xlane.f32.xlu2 %v344_v11  ;;  %v338_v13 = vsel %vm138_vm1, %v3129_v12, -inf }
 0x22a   :  { %339 = vmax.xlane.f32.xlu0 %v338_v13 }
 0x22f   :  { %v300_v14 = vpop.f32.mrf.mxu3 }
 0x230   :  { %v252_v15 = vpop.f32.mrf.mxu1 }
 0x23e   :  { %486 = vrot.lane.b32.xlu0 %v3068_v18, %s3006_s20 }
 0x246   :  { %528 = vrot.lane.b32.xlu0 %v3078_v28, %s3006_s20 }
 0x24e   :  { %549 = vrot.lane.b32.xlu0 %v3090_v35, %s3006_s20 }
 0x283   :  { %v331_v16 = vpop.xlane.xlu2 %330 }
 0x284   :  { %v351_v17 = vsub.f32 %v178_v59, %v331_v16 }
 0x286   :  { %v360_v20 = vmul.f32 1.442695, %v351_v17 }
 0x288   :  { %2777 = vpow2.f32 %v360_v20 }
 0x28c   :  { %v334_v21 = vpop.xlane.xlu0 %333 }
 0x28d   :  { %v352_v22 = vsub.f32 %v202_v62, %v334_v21  ;;  %v328_v23 = vpop.xlane.xlu1 %327 }
 0x28e   :  { %v3139_v24 = vpop.eup %2777  ;;  %v350_v50 = vsub.f32 %v3120_v0, %v328_v23 }
 0x28f   :  { %v362_v25 = vmul.f32 1.442695, %v352_v22  ;;  %v377_v26 = vsel %vm138_vm1, %v3139_v24, 0.0 }
 0x290   :  { %378 = vadd.xlane.f32.xlu2 %v377_v26  ;;  %v358_v51 = vmul.f32 1.442695, %v350_v50 }
 0x291   :  { %2779 = vpow2.f32 %v362_v25 }
 0x293   :  { %v343_v18 = vpop.xlane.xlu2 %342 }
 0x294   :  { %v355_v28 = vsub.f32 %v274_v3, %v343_v18  ;;  %v349_v41 = vpop.xlane.xlu0 %348 }
 0x295   :  { %v337_v29 = vpop.xlane.xlu1 %336  ;;  %v357_v52 = vsub.f32 %v3116_v57, %v349_v41 }
 0x296   :  { %v368_v30 = vmul.f32 1.442695, %v355_v28  ;;  %v353_v32 = vsub.f32 %v226_v55, %v337_v29 }
 0x297   :  { %v3143_v33 = vpop.eup %2779 }
 0x298   :  { %2781 = vpow2.f32 %v368_v30  ;;  %v364_v35 = vmul.f32 1.442695, %v353_v32  ;;  %v380_v36 = vsel %vm138_vm1, %v3143_v33, 0.0 }
 0x299   :  { %381 = vadd.xlane.f32.xlu0 %v380_v36 }
 0x29a   :  { %2783 = vpow2.f32 %v364_v35 }
 0x29c   :  { %v346_v46 = vpop.xlane.xlu2 %345 }
 0x29d   :  { %v340_v43 = vpop.xlane.xlu0 %339  ;;  %v356_v47 = vsub.f32 %v298_v10, %v346_v46 }
 0x29e   :  { %v2782_v37 = vpop.eup %2781 }
 0x29f   :  { %v389_v39 = vsel %vm138_vm1, %v2782_v37, 0.0  ;;  %v370_v48 = vmul.f32 1.442695, %v356_v47 }
 0x2a0   :  { %v2784_v40 = vpop.eup %2783 }
 0x2a1   :  { %390 = vadd.xlane.f32.xlu0 %v389_v39  ;;  %v383_v42 = vsel %vm138_vm1, %v2784_v40, 0.0  ;;  %2785 = vpow2.f32 %v370_v48 }
 0x2a2   :  { %384 = vadd.xlane.f32.xlu1 %v383_v42  ;;  %2787 = vpow2.f32 %v358_v51 }
 0x2a7   :  { %v3156_v49 = vpop.eup %2785 }
 0x2a8   :  { %444 = vrot.lane.b32.xlu2 %v3070_v19, %s3006_s20  ;;  %v392_v19 = vsel %vm138_vm1, %v3156_v49, 0.0  ;;  %v3162_v53 = vpop.eup %2787 }
 0x2a9   :  { %v374_v54 = vsel %vm138_vm1, %v3162_v53, 0.0 }
 0x2b0   :  { %v487_v44 = vpop.permute.xlu0 %486 }
 0x2b1   :  { %v492_v45 = vsel %vm427_vm2, %v487_v44, 0 }
 0x2b2   :  { %501 = vmatpush.bf16.msrb.mxu0 %v492_v45 }
 0x2b5   :  { %570 = vrot.lane.b32.xlu0 %v3076_v27, %s3006_s20  ;;  %v372_v27 = vmul.f32 1.442695, %v357_v52 }
 0x2b7   :  { %2789 = vpow2.f32 %v372_v27 }
 0x2b8   :  { %v529_v60 = vpop.permute.xlu0 %528 }
 0x2bb   :  { %465 = vrot.lane.b32.xlu1 %v3080_v31, %s3006_s20  ;;  %v354_v31 = vsub.f32 %v3129_v12, %v340_v43 }
 0x2bd   :  { %v366_v55 = vmul.f32 1.442695, %v354_v31  ;;  %v3167_v56 = vpop.eup %2789 }
 0x2be   :  { %v395_v58 = vsel %vm138_vm1, %v3167_v56, 0.0 }
 0x2bf   :  { %2791 = vpow2.f32 %v366_v55 }
 0x2c0   :  { %v550_v62 = vpop.permute.xlu0 %549 }
 0x2c1   :  { %v555_v21 = vsel %vm427_vm2, %v550_v62, 0  ;;  %v2640_v62 = vld [vmem:[#allocation5 + $0x18] sm:$0xff] }
 0x2c5   :  { %v3171_v57 = vpop.eup %2791 }
 0x2c6   :  { %v386_v59 = vsel %vm138_vm1, %v3171_v57, 0.0 }
 0x2d1   :  { %393 = vadd.xlane.f32.xlu2 %v392_v19 }
 0x2df   :  { %375 = vadd.xlane.f32.xlu0 %v374_v54 }
 0x2e5   :  { %396 = vadd.xlane.f32.xlu1 %v395_v58 }
 0x2e9   :  { %422 = vrot.lane.b32.xlu2 %v3088_v34, %s3006_s20  ;;  %v534_v34 = vsel %vm427_vm2, %v529_v60, 0 }
 0x2ed   :  { %387 = vadd.xlane.f32.xlu1 %v386_v59 }
 0x303   :  { %v379_v61 = vpop.xlane.xlu2 %378 }
 0x304   :  { %2793 = vrcp.f32 %v379_v61 }
 0x306   :  { %507 = vrot.lane.b32.xlu1 %v3096_v38, %s3006_s20 }
 0x30a   :  { %v2794_v63 = vpop.eup %2793 }
 0x30b   :  { %v407_v0 = vmul.f32 %v2794_v63, %v3139_v24  ;;  %v445_v1 = vpop.permute.xlu2 %444  ;;  %v2639_v63 = vld [vmem:[#allocation5 + $0x10] sm:$0xff] }
 0x30c   :  { %v450_v3 = vsel %vm427_vm2, %v445_v1, 0  ;;  %v382_v4 = vpop.xlane.xlu0 %381 }
 0x30d   :  { %v415_v5 = vpack.c.bf16 %v407_v0, %v407_v0  ;;  %459 = vmatpush.bf16.msra.mxu2 %v450_v3 }
 0x310   :  { %2482 = vmatmul.msk.bf16.vlgmr.msra.gmra.mxu2 %vm138_vm1, %v415_v5 }
 0x311   :  { %543 = vmatpush.bf16.msrb.mxu2 %v534_v34 }
 0x314   :  { %v391_v6 = vpop.xlane.xlu0 %390 }
 0x315   :  { %2795 = vrcp.f32 %v391_v6  ;;  %v385_v7 = vpop.xlane.xlu1 %384 }
 0x316   :  { %2797 = vrcp.f32 %v385_v7 }
 0x317   :  { %2799 = vrcp.f32 %v382_v4 }
 0x31b   :  { %v2796_v8 = vpop.eup %2795 }
 0x31c   :  { %v2798_v38 = vpop.eup %2797  ;;  %v411_v9 = vmul.f32 %v2796_v8, %v2782_v37 }
 0x31d   :  { %v409_v10 = vmul.f32 %v2798_v38, %v2784_v40  ;;  %v2800_v15 = vpop.eup %2799 }
 0x31e   :  { %v419_v11 = vpack.c.bf16 %v411_v9, %v411_v9  ;;  %v408_v16 = vmul.f32 %v2800_v15, %v3143_v33  ;;  %v2644_v15 = vld [vmem:[#allocation5 + $0x68] sm:$0xff] }
 0x31f   :  { %v417_v12 = vpack.c.bf16 %v409_v10, %v409_v10 }
 0x320   :  { %2486 = vmatmul.msk.bf16.vlgmr.msrb.gmra.mxu2 %vm138_vm1, %v419_v11  ;;  %v416_v22 = vpack.c.bf16 %v408_v16, %v408_v16  ;;  %v2643_v16 = vld [vmem:[#allocation5 + $0x60] sm:$0xff] }
 0x321   :  { %2484 = vmatmul.msk.bf16.vlgmr.msrb.gmra.mxu0 %vm138_vm1, %v417_v12 }
 0x327   :  { %v571_v13 = vpop.permute.xlu0 %570 }
 0x328   :  { %v576_v14 = vsel %vm427_vm2, %v571_v13, 0 }
 0x329   :  { %585 = vmatpush.bf16.msra.mxu0 %v576_v14 }
 0x32d   :  { %v466_v17 = vpop.permute.xlu1 %465 }
 0x32e   :  { %v471_v20 = vsel %vm427_vm2, %v466_v17, 0  ;;  %v2756_v17 = vld [vmem:[#allocation7 + $0x10] ss:$0 sm:$0xff] }
 0x32f   :  { %480 = vmatpush.bf16.msra.mxu3 %v471_v20 }
 0x332   :  { %2483 = vmatmul.msk.bf16.vlgmr.msra.gmra.mxu3 %vm138_vm1, %v416_v22 }
 0x333   :  { %564 = vmatpush.bf16.msrb.mxu3 %v555_v21 }
 0x337   :  { %788 = vmatpush.bf16.msra.mxu3 %v2644_v15 }
 0x33b   :  { %789 = vmatpush.bf16.msra.mxu3 %v2643_v16 }
 0x344   :  { %v394_v23 = vpop.xlane.xlu2 %393 }
 0x345   :  { %2801 = vrcp.f32 %v394_v23 }
 0x34b   :  { %v2802_v24 = vpop.eup %2801 }
 0x34c   :  { %v412_v25 = vmul.f32 %v2802_v24, %v3156_v49  ;;  %v423_v26 = vpop.permute.xlu2 %422 }
 0x34d   :  { %v429_v18 = vsel %vm427_vm2, %v423_v26, 0 }
 0x34e   :  { %v420_v28 = vpack.c.bf16 %v412_v25, %v412_v25  ;;  %438 = vmatpush.bf16.msra.mxu1 %v429_v18 }
 0x350   :  { %2487 = vmatmul.msk.bf16.vlgmr.msrb.gmra.mxu3 %vm138_vm1, %v420_v28  ;;  %v64_v28 = vld [vmem:[#allocation2] sm:$0xff] }
 0x352   :  { %v376_v29 = vpop.xlane.xlu0 %375 }
 0x353   :  { %2803 = vrcp.f32 %v376_v29  ;;  %v65_v29 = vld [vmem:[#allocation2 + $0x8] sm:$0xff] }
 0x358   :  { %v397_v30 = vpop.xlane.xlu1 %396 }
 0x359   :  { %v2804_v32 = vpop.eup %2803  ;;  %2805 = vrcp.f32 %v397_v30  ;;  %v756_v30 = vpack.c.bf16 %v65_v29, %v64_v28 }
 0x35a   :  { %v406_v33 = vmul.f32 %v2804_v32, %v3162_v53  ;;  %v3018_v32 = vmov 32.0  }
 0x35c   :  { %v414_v35 = vpack.c.bf16 %v406_v33, %v406_v33 }
 0x35e   :  { %2481 = vmatmul.msk.bf16.vlgmr.msra.gmra.mxu1 %vm138_vm1, %v414_v35 }
 0x35f   :  { %v2806_v36 = vpop.eup %2805 }
 0x360   :  { %v413_v37 = vmul.f32 %v2806_v36, %v3167_v56  ;;  %v388_v40 = vpop.xlane.xlu1 %387  ;;  %2515 = vmatmul.msk.bf16.vlgmr.msra.gmra.mxu3 %vm87_vm0, %v756_v30 }
 0x361   :  { %2807 = vrcp.f32 %v388_v40 }
 0x362   :  { %v421_v39 = vpack.c.bf16 %v413_v37, %v413_v37  ;;  %2809 = vrcp.f32 %v3018_v32 }
 0x364   :  { %2488 = vmatmul.msk.bf16.vlgmr.msra.gmra.mxu0 %vm138_vm1, %v421_v39 }
 0x367   :  { %v2808_v41 = vpop.eup %2807 }
 0x368   :  { %v410_v42 = vmul.f32 %v2808_v41, %v3171_v57  ;;  %v2810_v33 = vpop.eup %2809 }
 0x369   :  { %v668_v35 = vmul.f32 32.0, %v2810_v33  ;;  %vm672_vm5 = vweird.f32 %v2810_v33 }
 0x36a   :  { %v418_v45 = vpack.c.bf16 %v410_v42, %v410_v42 }
 0x36b   :  { %v669_v36 = vsub.f32 1.0, %v668_v35 }
 0x36d   :  { %v670_v37 = vmul.f32 %v2810_v33, %v669_v36 }
 0x36f   :  { %v671_v39 = vadd.f32 %v2810_v33, %v670_v37 }
 0x371   :  { %v3215_v40 = vsel %vm672_vm5, %v2810_v33, %v671_v39 }
 0x378   :  { %v508_v43 = vpop.permute.xlu1 %507 }
 0x379   :  { %v513_v44 = vsel %vm427_vm2, %v508_v43, 0 }
 0x37a   :  { %522 = vmatpush.bf16.msrb.mxu1 %v513_v44 }
 0x37d   :  { %2485 = vmatmul.msk.bf16.vlgmr.msrb.gmra.mxu1 %vm138_vm1, %v418_v45 }
 0x37e   :  { %651 = vmatpush.bf16.msra.mxu1 %v2640_v62 }
 0x382   :  { %652 = vmatpush.bf16.msra.mxu1 %v2639_v63 }
 0x393   :  { %v461_v46 = vpop.f32.mrf.mxu2 }
 0x39b   :  { %v463_v47 = vpop.f32.mrf.mxu2 }
 0x39e   :  { %v503_v48 = vpop.f32.mrf.mxu0 }
 0x3a3   :  { %v545_v49 = vpop.f32.mrf.mxu2 }
 0x3a4   :  { %v2680_v50 = vpack.i.bf16 %v545_v49, %v461_v46 }
 0x3a6   :  { %v505_v19 = vpop.f32.mrf.mxu0  ;;  %2681 = vrot.lane.b32.xlu2 %v2680_v50, %s3010_s1  ;;  %v66_v50 = vld [vmem:[#allocation2 + $0x10] sm:$0xff] }
 0x3a7   :  { %v67_v19 = vld [vmem:[#allocation2 + $0x18] sm:$0xff] }
 0x3ab   :  { %v547_v51 = vpop.f32.mrf.mxu2 }
 0x3ac   :  { %v757_v51 = vpack.c.bf16 %v67_v19, %v66_v50 }
 0x3ae   :  { %2516 = vmatmul.msk.bf16.gmra.mxu3 %vm87_vm0, %v757_v51 }
 0x3b5   :  { %v482_v52 = vpop.f32.mrf.mxu3 }
 0x3bd   :  { %v484_v27 = vpop.f32.mrf.mxu3 }
 0x3be   :  { %v2759_v27 = vld [vmem:[#allocation7 + $0x50] ss:$0 sm:$0xff] }
 0x3d3   :  { %v566_v53 = vpop.f32.mrf.mxu3 }
 0x3d4   :  { %v2685_v31 = vpack.i.bf16 %v566_v53, %v482_v52 }
 0x3d6   :  { %2686 = vrot.lane.b32.xlu2 %v2685_v31, %s3016_s5  ;;  %v2642_v31 = vld [vmem:[#allocation5 + $0x58] sm:$0xff] }
 0x3d7   :  { %748 = vmatpush.bf16.msra.mxu2 %v2642_v31 }
 0x3db   :  { %v440_v54 = vpop.f32.mrf.mxu1  ;;  %v568_v55 = vpop.f32.mrf.mxu3 }
 0x3e1   :  { %v587_v56 = vpop.f32.mrf.mxu0 }
 0x3e2   :  { %v2690_v58 = vpack.i.bf16 %v587_v56, %v503_v48 }
 0x3e3   :  { %v442_v57 = vpop.f32.mrf.mxu1  ;;  %v791_v52 = vpop.f32.mrf.mxu3 }
 0x3e4   :  { %2691 = vrot.lane.b32.xlu1 %v2690_v58, %s3017_s6  ;;  %v792_v55 = vadd.f32 %v2759_v27, %v791_v52 }
 0x3e9   :  { %v589_v59 = vpop.f32.mrf.mxu0 }
 0x3eb   :  { %v793_v53 = vpop.f32.mrf.mxu3 }
 0x3ec   :  { %v794_v56 = vadd.f32 %v2759_v27, %v793_v53 }
 0x3ee   :  { %v2695_v57 = vpack.i.bf16 %v794_v56, %v792_v55  ;;  %v870_v62 = vpack.c.bf16 %v794_v56, %v794_v56 }
 0x3fa   :  { %v524_v60 = vpop.f32.mrf.mxu1 }
 0x400   :  { %v2682_v0 = vpop.permute.xlu2 %2681 }
 0x401   :  { %v2684_v3 = vunpack.i.h.bf16 %v2682_v0  ;;  %v2683_v4 = vunpack.i.l.bf16 %v2682_v0 }
 0x402   :  { %v526_v61 = vpop.f32.mrf.mxu1 }
 0x403   :  { %v615_v7 = vsel %vm138_vm1, %v440_v54, %v2683_v4  ;;  %v616_v8 = vsel %vm138_vm1, %v524_v60, %v2684_v3  ;;  %v2641_v60 = vld [vmem:[#allocation5 + $0x50] sm:$0xff]  ;;  %v869_v61 = vpack.c.bf16 %v792_v55, %v792_v55  ;;  %v888_v3 = vunpack.c.l.b16 %v870_v62 }
 0x404   :  { %749 = vmatpush.bf16.msra.mxu2 %v2641_v60 }
 0x430   :  { %v2687_v1 = vpop.permute.xlu2 %2686 }
 0x431   :  { %v2689_v34 = vunpack.i.h.bf16 %v2687_v1  ;;  %v2688_v5 = vunpack.i.l.bf16 %v2687_v1  ;;  %v887_v1 = vunpack.c.l.b16 %v869_v61  ;;  %v796_v30 = vpop.f32.mrf.mxu3 }
 0x432   :  { %v797_v33 = vadd.f32 %v2759_v27, %v796_v30 }
 0x433   :  { %v618_v10 = vsel %vm617_vm3, %v615_v7, %v2688_v5  ;;  %v619_v11 = vsel %vm617_vm3, %v616_v8, %v2689_v34  ;;  %v3225_v5 = vpack.c.b16 %v888_v3, %v887_v1 }
 0x434   :  { %v877_v39 = vpack.c.bf16 %v797_v33, %v797_v33 }
 0x435   :  { %v894_v7 = vsel %vm138_vm1, %v3225_v5, 0 }
 0x436   :  { %903 = vmatpush.bf16.xpose.msrb.mxu0 %v894_v7 }
 0x439   :  { %v798_v35 = vpop.f32.mrf.mxu3 }
 0x43a   :  { %v799_v36 = vadd.f32 %v2759_v27, %v798_v35 }
 0x43c   :  { %v2715_v37 = vpack.i.bf16 %v799_v36, %v797_v33 }
 0x456   :  { %v2692_v6 = vpop.permute.xlu1 %2691 }
 0x457   :  { %v2694_v38 = vunpack.i.h.bf16 %v2692_v6  ;;  %v2693_v9 = vunpack.i.l.bf16 %v2692_v6 }
 0x459   :  { %v621_v12 = vsel %vm620_vm4, %v618_v10, %v2693_v9  ;;  %v622_v13 = vsel %vm620_vm4, %v619_v11, %v2694_v38 }
 0x45a   :  { %v623_v14 = vpack.c.bf16 %v622_v13, %v621_v12 }
 0x45c   :  { %2497 = vmatmul.msk.bf16.vlgmr.msra.gmra.mxu1 %vm87_vm0, %v623_v14 }
 0x4d9   :  { %v654_v20 = vpop.f32.mrf.mxu1 }
 0x4da   :  { %v655_v21 = vadd.f32 %v2756_v17, %v654_v20 }
 0x4dc   :  { %v659_v22 = vadd.f32 %v655_v21, %v3057_v2 }
 0x4de   :  { %v661_v23 = vsel %vm87_vm0, %v659_v22, 0.0 }
 0x4df   :  { %662 = vadd.xlane.f32.xlu0 %v661_v23  ;;  %v2758_v23 = vld [vmem:[#allocation7 + $0x20] ss:$0 sm:$0xff] }
 0x4e1   :  { %v656_v24 = vpop.f32.mrf.mxu1 }
 0x4e2   :  { %v657_v25 = vadd.f32 %v2756_v17, %v656_v24  ;;  %v2757_v17 = vld [vmem:[#allocation7 + $0x18] ss:$0 sm:$0xff] }
 0x4e4   :  { %v660_v26 = vadd.f32 %v657_v25, %v3057_v2 }
 0x4e6   :  { %v664_v18 = vsel %vm87_vm0, %v660_v26, 0.0 }
 0x4e7   :  { %665 = vadd.xlane.f32.xlu2 %v664_v18 }
 0x552   :  { %v663_v41 = vpop.xlane.xlu0 %662 }
 0x553   :  { %v674_v2 = vmul.f32 %v3215_v40, %v663_v41  ;;  %v878_v41 = vpack.c.bf16 %v799_v36, %v799_v36 }
 0x555   :  { %v676_v42 = vsub.f32 %v659_v22, %v674_v2 }
 0x557   :  { %v678_v43 = vmul.f32 %v676_v42, %v676_v42 }
 0x559   :  { %v680_v44 = vsel %vm87_vm0, %v678_v43, 0.0  ;;  %v984_v43 = vunpack.c.l.b16 %v878_v41 }
 0x55a   :  { %v666_v45 = vpop.xlane.xlu2 %665  ;;  %681 = vadd.xlane.f32.xlu1 %v680_v44 }
 0x55b   :  { %v675_v46 = vmul.f32 %v3215_v40, %v666_v45 }
 0x55d   :  { %v677_v47 = vsub.f32 %v660_v26, %v675_v46 }
 0x55f   :  { %v679_v48 = vmul.f32 %v677_v47, %v677_v47 }
 0x561   :  { %v683_v49 = vsel %vm87_vm0, %v679_v48, 0.0 }
 0x562   :  { %684 = vadd.xlane.f32.xlu0 %v683_v49 }
 0x573   :  { %2716 = vrot.lane.b32.xlu1 %v2715_v37, %s3013_s29 }
 0x576   :  { %2696 = vrot.lane.b32.xlu0 %v2695_v57, %s3014_s30 }
 0x57e   :  { %2701 = vrot.lane.b32.xlu0 %v2695_v57, %s3013_s29 }
 0x586   :  { %2711 = vrot.lane.b32.xlu0 %v2695_v57, %s3012_s2 }
 0x58e   :  { %843 = vrot.lane.b32.xlu0 %v799_v36, %s3014_s30 }
 0x5cd   :  { %v682_v54 = vpop.xlane.xlu1 %681 }
 0x5ce   :  { %v686_v58 = vmul.f32 %v682_v54, %v3215_v40 }
 0x5d0   :  { %v688_v59 = vadd.f32 1e-12, %v686_v58 }
 0x5d2   :  { %2811 = vrsqrt.f32 %v688_v59  ;;  %vm696_vm7 = vweird.f32 %v688_v59 }
 0x5d5   :  { %v685_v63 = vpop.xlane.xlu0 %684 }
 0x5d6   :  { %v687_v0 = vmul.f32 %v685_v63, %v3215_v40 }
 0x5d8   :  { %v2812_v4 = vpop.eup %2811  ;;  %v689_v34 = vadd.f32 1e-12, %v687_v0 }
 0x5d9   :  { %v691_v6 = vmul.f32 %v2812_v4, %v688_v59  ;;  %vm697_vm6 = vweird.f32 %v2812_v4 }
 0x5da   :  { %2813 = vrsqrt.f32 %v689_v34  ;;  %vm698_vm8 = vmor %vm696_vm7, %vm697_vm6  ;;  %vm706_vm10 = vweird.f32 %v689_v34  ;;  %vm1534_vm7 = vcmask 523264  }
 0x5db   :  { %v692_v8 = vmul.f32 %v2812_v4, %v691_v6 }
 0x5dd   :  { %v693_v38 = vmul.f32 0.5, %v692_v8 }
 0x5df   :  { %v694_v9 = vsub.f32 1.5, %v693_v38 }
 0x5e0   :  { %v2814_v10 = vpop.eup %2813 }
 0x5e1   :  { %v695_v11 = vmul.f32 %v2812_v4, %v694_v9  ;;  %v701_v12 = vmul.f32 %v2814_v10, %v689_v34  ;;  %vm707_vm9 = vweird.f32 %v2814_v10 }
 0x5e2   :  { %vm708_vm11 = vmor %vm706_vm10, %vm707_vm9 }
 0x5e3   :  { %v702_v13 = vmul.f32 %v2814_v10, %v701_v12  ;;  %v699_v14 = vsel %vm698_vm8, %v2812_v4, %v695_v11  ;;  %v2760_v4 = vld [vmem:[#allocation7 + $0x48] ss:$0 sm:$0xff] }
 0x5e4   :  { %v710_v20 = vmul.f32 %v699_v14, %v676_v42  ;;  %v983_v42 = vunpack.c.l.b16 %v877_v39 }
 0x5e5   :  { %v703_v15 = vmul.f32 0.5, %v702_v13  ;;  %v2717_v11 = vpop.permute.xlu1 %2716 }
 0x5e6   :  { %v714_v24 = vmul.f32 %v2757_v17, %v710_v20  ;;  %v3240_v48 = vpack.c.b16 %v984_v43, %v983_v42  ;;  %v2719_v12 = vunpack.i.h.bf16 %v2717_v11  ;;  %v2718_v13 = vunpack.i.l.bf16 %v2717_v11 }
 0x5e7   :  { %v704_v16 = vsub.f32 1.5, %v703_v15 }
 0x5e8   :  { %v3231_v18 = vadd.f32 %v2758_v23, %v714_v24  ;;  %v2697_v32 = vpop.permute.xlu0 %2696  ;;  %v990_v51 = vsel %vm138_vm1, %v3240_v48, 0  ;;  %v880_v14 = vpack.c.bf16 %v2719_v12, %v2719_v12  ;;  %v879_v15 = vpack.c.bf16 %v2718_v13, %v2718_v13 }
 0x5e9   :  { %v705_v21 = vmul.f32 %v2814_v10, %v704_v16  ;;  %v2699_v27 = vunpack.i.h.bf16 %v2697_v32  ;;  %v2698_v53 = vunpack.i.l.bf16 %v2697_v32 }
 0x5ea   :  { %v1008_v16 = vunpack.c.l.b16 %v880_v14 }
 0x5eb   :  { %v709_v22 = vsel %vm708_vm11, %v2814_v10, %v705_v21  ;;  %v874_v31 = vpack.c.bf16 %v2699_v27, %v2699_v27  ;;  %v873_v54 = vpack.c.bf16 %v2698_v53, %v2698_v53 }
 0x5ec   :  { %v711_v25 = vmul.f32 %v709_v22, %v677_v47 }
 0x5ed   :  { %v936_v55 = vunpack.c.l.b16 %v874_v31  ;;  %v935_v56 = vunpack.c.l.b16 %v873_v54 }
 0x5ee   :  { %v715_v26 = vmul.f32 %v2757_v17, %v711_v25  ;;  %v1007_v17 = vunpack.c.l.b16 %v879_v15 }
 0x5ef   :  { %v3245_v60 = vpack.c.b16 %v936_v55, %v935_v56 }
 0x5f0   :  { %v3233_v28 = vadd.f32 %v2758_v23, %v715_v26  ;;  %v2702_v2 = vpop.permute.xlu0 %2701  ;;  %v3262_v20 = vpack.c.b16 %v1008_v16, %v1007_v17 }
 0x5f1   :  { %v2704_v44 = vunpack.i.h.bf16 %v2702_v2  ;;  %v2703_v45 = vunpack.i.l.bf16 %v2702_v2  ;;  %v942_v1 = vsel %vm138_vm1, %v3245_v60, 0 }
 0x5f2   :  { %v720_v29 = vpack.c.bf16 %v3233_v28, %v3231_v18  ;;  %951 = vmatpush.bf16.xpose.msrb.mxu2 %v942_v1  ;;  %v1014_v21 = vsel %vm138_vm1, %v3262_v20, 0 }
 0x5f3   :  { %v872_v46 = vpack.c.bf16 %v2704_v44, %v2704_v44  ;;  %v871_v47 = vpack.c.bf16 %v2703_v45, %v2703_v45 }
 0x5f4   :  { %2506 = vmatmul.msk.bf16.vlgmr.msra.gmra.mxu2 %vm87_vm0, %v720_v29 }
 0x5f5   :  { %v912_v49 = vunpack.c.l.b16 %v872_v46  ;;  %v911_v50 = vunpack.c.l.b16 %v871_v47 }
 0x5f7   :  { %v913_v19 = vpack.c.b16 %v912_v49, %v911_v50 }
 0x5f8   :  { %v2712_v58 = vpop.permute.xlu0 %2711 }
 0x5f9   :  { %v918_v52 = vsel %vm138_vm1, %v913_v19, 0  ;;  %v2714_v57 = vunpack.i.h.bf16 %v2712_v58  ;;  %v2713_v59 = vunpack.i.l.bf16 %v2712_v58 }
 0x5fa   :  { %927 = vmatpush.bf16.xpose.msrb.mxu1 %v918_v52  ;;  %1023 = vmatpush.bf16.xpose.msra.mxu2 %v1014_v21 }
 0x5fb   :  { %v876_v61 = vpack.c.bf16 %v2714_v57, %v2714_v57  ;;  %v875_v62 = vpack.c.bf16 %v2713_v59, %v2713_v59 }
 0x5fd   :  { %v960_v63 = vunpack.c.l.b16 %v876_v61  ;;  %v959_v0 = vunpack.c.l.b16 %v875_v62 }
 0x5ff   :  { %v3249_v3 = vpack.c.b16 %v960_v63, %v959_v0 }
 0x600   :  { %v844_v22 = vpop.permute.xlu0 %843 }
 0x601   :  { %v966_v34 = vsel %vm138_vm1, %v3249_v3, 0  ;;  %v882_v23 = vpack.c.bf16 %v844_v22, %v844_v22 }
 0x602   :  { %999 = vmatpush.bf16.xpose.msra.mxu1 %v990_v51  ;;  %975 = vmatpush.bf16.xpose.msra.mxu0 %v966_v34 }
 0x603   :  { %v1032_v29 = vunpack.c.l.b16 %v882_v23 }
 0x677   :  { %v751_v6 = vpop.f32.mrf.mxu2 }
 0x678   :  { %v752_v7 = vadd.f32 %v2760_v4, %v751_v6 }
 0x67a   :  { %v861_v8 = vpack.c.bf16 %v752_v7, %v752_v7  ;;  %803 = vrot.lane.b32.xlu0 %v752_v7, %s3013_s29  ;;  %v2705_v38 = vpack.i.bf16 %v797_v33, %v752_v7 }
 0x67c   :  { %2706 = vrot.lane.b32.xlu2 %v2705_v38, %s3014_s30  ;;  %2517 = vmatmul.msk.bf16.vlgmr.msrb.gmra.mxu0 %vm138_vm1, %v861_v8 }
 0x67f   :  { %v753_v9 = vpop.f32.mrf.mxu2 }
 0x680   :  { %v754_v10 = vadd.f32 %v2760_v4, %v753_v9 }
 0x682   :  { %811 = vrot.lane.b32.xlu1 %v754_v10, %s3014_s30  ;;  %805 = vrot.lane.b32.xlu0 %v754_v10, %s3013_s29  ;;  %v865_v56 = vpack.c.bf16 %v754_v10, %v754_v10 }
 0x684   :  { %2721 = vrot.lane.b32.xlu2 %v2705_v38, %s3012_s2 }
 0x68a   :  { %817 = vrot.lane.b32.xlu0 %v754_v10, %s3012_s2 }
 0x68c   :  { %855 = vrot.lane.b32.xlu2 %v799_v36, %s3012_s2 }
 0x692   :  { %1192 = vrot.lane.b32.xlu0 %v913_v19, %s3015_s4 }
 0x6d6   :  { %v2707_v24 = vpop.permute.xlu2 %2706 }
 0x6d7   :  { %v2709_v25 = vunpack.i.h.bf16 %v2707_v24  ;;  %v2708_v26 = vunpack.i.l.bf16 %v2707_v24 }
 0x6d9   :  { %v881_v30 = vpack.c.bf16 %v2709_v25, %v2709_v25  ;;  %v863_v32 = vpack.c.bf16 %v2708_v26, %v2708_v26 }
 0x6db   :  { %v1031_v33 = vunpack.c.l.b16 %v881_v30  ;;  %2519 = vmatmul.msk.bf16.vlgmr.msrb.gmra.mxu2 %vm138_vm1, %v863_v32 }
 0x6dd   :  { %v3267_v35 = vpack.c.b16 %v1032_v29, %v1031_v33 }
 0x6de   :  { %v2722_v36 = vpop.permute.xlu2 %2721 }
 0x6df   :  { %v2723_v37 = vunpack.i.l.bf16 %v2722_v36  ;;  %v1038_v39 = vsel %vm138_vm1, %v3267_v35, 0  ;;  %v2724_v41 = vunpack.i.h.bf16 %v2722_v36 }
 0x6e0   :  { %1047 = vmatpush.bf16.xpose.msrb.mxu3 %v1038_v39 }
 0x6e1   :  { %v864_v2 = vpack.c.bf16 %v2723_v37, %v2723_v37  ;;  %v883_v42 = vpack.c.bf16 %v2724_v41, %v2724_v41 }
 0x6e3   :  { %2520 = vmatmul.msk.bf16.vlgmr.msra.gmra.mxu0 %vm138_vm1, %v864_v2  ;;  %v1055_v45 = vunpack.c.l.b16 %v883_v42 }
 0x6e6   :  { %v856_v43 = vpop.permute.xlu2 %855 }
 0x6e7   :  { %v884_v44 = vpack.c.bf16 %v856_v43, %v856_v43 }
 0x6e9   :  { %v1056_v46 = vunpack.c.l.b16 %v884_v44 }
 0x6eb   :  { %v3272_v47 = vpack.c.b16 %v1056_v46, %v1055_v45 }
 0x6ec   :  { %v804_v49 = vpop.permute.xlu0 %803 }
 0x6ed   :  { %v862_v50 = vpack.c.bf16 %v804_v49, %v804_v49  ;;  %v1062_v19 = vsel %vm138_vm1, %v3272_v47, 0 }
 0x6ee   :  { %1071 = vmatpush.bf16.xpose.msrb.mxu0 %v1062_v19 }
 0x6ef   :  { %2518 = vmatmul.msk.bf16.vlgmr.msrb.gmra.mxu1 %vm138_vm1, %v862_v50 }
 0x6f4   :  { %v812_v51 = vpop.permute.xlu1 %811  ;;  %v806_v52 = vpop.permute.xlu0 %805 }
 0x6f5   :  { %v867_v27 = vpack.c.bf16 %v812_v51, %v812_v51  ;;  %v866_v53 = vpack.c.bf16 %v806_v52, %v806_v52 }
 0x6f7   :  { %2522 = vmatmul.msk.bf16.vlgmr.msra.gmra.mxu2 %vm138_vm1, %v866_v53  ;;  %2523 = vmatmul.msk.bf16.vlgmr.msrb.gmra.mxu3 %vm138_vm1, %v867_v27 }
 0x6f9   :  { %v3279_v31 = vpop.f32.mrf.mxu0 }
 0x6fa   :  { %v1077_v54 = vsel %vm617_vm3, %v3279_v31, -inf }
 0x6fb   :  { %1078 = vmax.xlane.f32.xlu1 %v1077_v54 }
 0x6fc   :  { %v818_v55 = vpop.permute.xlu0 %817 }
 0x6fd   :  { %v868_v58 = vpack.c.bf16 %v818_v55, %v818_v55 }
 0x6ff   :  { %2521 = vmatmul.msk.bf16.vlgmr.msra.gmra.mxu1 %vm138_vm1, %v865_v56  ;;  %2524 = vmatmul.msk.bf16.vlgmr.msrb.gmra.mxu0 %vm138_vm1, %v868_v58 }
 0x701   :  { %v907_v57 = vpop.f32.mrf.mxu0 }
 0x704   :  { %v1193_v59 = vpop.permute.xlu0 %1192 }
 0x705   :  { %1205 = vmatpush.bf16.msrb.mxu2 %v1193_v59 }
 0x75e   :  { %v953_v61 = vpop.f32.mrf.mxu2 }
 0x75f   :  { %v1083_v62 = vsel %vm617_vm3, %v953_v61, -inf }
 0x760   :  { %v977_v63 = vpop.f32.mrf.mxu0  ;;  %1084 = vmax.xlane.f32.xlu2 %v1083_v62 }
 0x761   :  { %v1086_v0 = vsel %vm617_vm3, %v977_v63, -inf }
 0x762   :  { %1087 = vmax.xlane.f32.xlu0 %v1086_v0 }
 0x766   :  { %v955_v1 = vpop.f32.mrf.mxu2 }
 0x768   :  { %v979_v4 = vpop.f32.mrf.mxu0 }
 0x76c   :  { %v929_v34 = vpop.f32.mrf.mxu1 }
 0x76d   :  { %v1080_v6 = vsel %vm617_vm3, %v929_v34, -inf }
 0x76e   :  { %1081 = vmax.xlane.f32.xlu1 %v1080_v6  ;;  %v1079_v30 = vpop.xlane.xlu1 %1078 }
 0x774   :  { %v931_v7 = vpop.f32.mrf.mxu1 }
 0x77a   :  { %v1025_v8 = vpop.f32.mrf.mxu2  ;;  %v1049_v38 = vpop.f32.mrf.mxu3 }
 0x77b   :  { %v1095_v9 = vsel %vm617_vm3, %v1049_v38, -inf  ;;  %v1092_v10 = vsel %vm617_vm3, %v1025_v8, -inf }
 0x77c   :  { %v3290_v11 = vpop.f32.mrf.mxu1  ;;  %v1073_v12 = vpop.f32.mrf.mxu0  ;;  %1096 = vmax.xlane.f32.xlu2 %v1095_v9  ;;  %1093 = vmax.xlane.f32.xlu1 %v1092_v10 }
 0x77d   :  { %v1098_v13 = vsel %vm617_vm3, %v1073_v12, -inf  ;;  %v1089_v16 = vsel %vm617_vm3, %v3290_v11, -inf }
 0x77e   :  { %1099 = vmax.xlane.f32.xlu0 %v1098_v13 }
 0x782   :  { %v1027_v14 = vpop.f32.mrf.mxu2  ;;  %v1051_v15 = vpop.f32.mrf.mxu3 }
 0x784   :  { %v1003_v17 = vpop.f32.mrf.mxu1  ;;  %v1075_v21 = vpop.f32.mrf.mxu0  ;;  %1090 = vmax.xlane.f32.xlu2 %v1089_v16 }
 0x792   :  { %1230 = vrot.lane.b32.xlu0 %v3249_v3, %s3015_s4 }
 0x795   :  { %1211 = vrot.lane.b32.xlu1 %v3245_v60, %s3015_s4 }
 0x7d3   :  { %v1085_v22 = vpop.xlane.xlu2 %1084 }
 0x7d4   :  { %v1103_v23 = vsub.f32 %v953_v61, %v1085_v22 }
 0x7d5   :  { %v1088_v24 = vpop.xlane.xlu0 %1087 }
 0x7d6   :  { %v1113_v25 = vmul.f32 1.442695, %v1103_v23  ;;  %v1104_v26 = vsub.f32 %v977_v63, %v1088_v24 }
 0x7d8   :  { %2815 = vpow2.f32 %v1113_v25  ;;  %v1115_v29 = vmul.f32 1.442695, %v1104_v26 }
 0x7da   :  { %2817 = vpow2.f32 %v1115_v29 }
 0x7de   :  { %v2816_v32 = vpop.eup %2815 }
 0x7df   :  { %v1131_v33 = vsel %vm617_vm3, %v2816_v32, 0.0 }
 0x7e0   :  { %v2818_v36 = vpop.eup %2817  ;;  %1132 = vadd.xlane.f32.xlu0 %v1131_v33 }
 0x7e1   :  { %v1082_v37 = vpop.xlane.xlu1 %1081  ;;  %v1134_v3 = vsel %vm617_vm3, %v2818_v36, 0.0 }
 0x7e2   :  { %v1102_v39 = vsub.f32 %v929_v34, %v1082_v37  ;;  %1135 = vadd.xlane.f32.xlu1 %v1134_v3 }
 0x7e4   :  { %v1111_v60 = vmul.f32 1.442695, %v1102_v39 }
 0x7e6   :  { %2819 = vpow2.f32 %v1111_v60 }
 0x7ec   :  { %v3301_v41 = vpop.eup %2819 }
 0x7ed   :  { %v1128_v2 = vsel %vm617_vm3, %v3301_v41, 0.0 }
 0x7ee   :  { %1129 = vadd.xlane.f32.xlu2 %v1128_v2 }
 0x7ef   :  { %v1097_v42 = vpop.xlane.xlu2 %1096  ;;  %v1094_v50 = vpop.xlane.xlu1 %1093 }
 0x7f0   :  { %v1107_v43 = vsub.f32 %v1049_v38, %v1097_v42  ;;  %v1106_v51 = vsub.f32 %v1025_v8, %v1094_v50 }
 0x7f1   :  { %v1100_v44 = vpop.xlane.xlu0 %1099 }
 0x7f2   :  { %v1121_v45 = vmul.f32 1.442695, %v1107_v43  ;;  %v1108_v46 = vsub.f32 %v1073_v12, %v1100_v44  ;;  %v1119_v27 = vmul.f32 1.442695, %v1106_v51 }
 0x7f4   :  { %2821 = vpow2.f32 %v1121_v45  ;;  %1268 = vrot.lane.b32.xlu0 %v3262_v20, %s3015_s4  ;;  %v1123_v49 = vmul.f32 1.442695, %v1108_v46 }
 0x7f6   :  { %2823 = vpow2.f32 %v1123_v49 }
 0x7f7   :  { %2825 = vpow2.f32 %v1119_v27  ;;  %v1091_v59 = vpop.xlane.xlu2 %1090 }
 0x7f8   :  { %v1105_v62 = vsub.f32 %v3290_v11, %v1091_v59 }
 0x7fa   :  { %v2822_v19 = vpop.eup %2821  ;;  %v1117_v63 = vmul.f32 1.442695, %v1105_v62  ;;  %v2646_v62 = vld [vmem:[#allocation5 + $0x78] sm:$0xff] }
 0x7fb   :  { %1287 = vrot.lane.b32.xlu1 %v3267_v35, %s3015_s4  ;;  %v1143_v52 = vsel %vm617_vm3, %v2822_v19, 0.0  ;;  %v1101_v35 = vsub.f32 %v3279_v31, %v1079_v30 }
 0x7fc   :  { %1144 = vadd.xlane.f32.xlu2 %v1143_v52  ;;  %v2824_v53 = vpop.eup %2823 }
 0x7fd   :  { %v1146_v54 = vsel %vm617_vm3, %v2824_v53, 0.0  ;;  %v2826_v56 = vpop.eup %2825  ;;  %v1109_v57 = vmul.f32 1.442695, %v1101_v35 }
 0x7fe   :  { %v1140_v58 = vsel %vm617_vm3, %v2826_v56, 0.0 }
 0x7ff   :  { %2827 = vpow2.f32 %v1109_v57 }
 0x800   :  { %2829 = vpow2.f32 %v1117_v63 }
 0x803   :  { %1173 = vrot.lane.b32.xlu1 %v3225_v5, %s3015_s4 }
 0x804   :  { %v1231_v20 = vpop.permute.xlu0 %1230  ;;  %1147 = vadd.xlane.f32.xlu2 %v1146_v54 }
 0x805   :  { %1243 = vmatpush.bf16.msra.mxu0 %v1231_v20  ;;  %v2828_v61 = vpop.eup %2827 }
 0x806   :  { %v1125_v5 = vsel %vm617_vm3, %v2828_v61, 0.0  ;;  %v2830_v0 = vpop.eup %2829 }
 0x807   :  { %v1212_v55 = vpop.permute.xlu1 %1211  ;;  %v1137_v31 = vsel %vm617_vm3, %v2830_v0, 0.0 }
 0x808   :  { %1224 = vmatpush.bf16.msra.mxu3 %v1212_v55 }
 0x80c   :  { %1141 = vadd.xlane.f32.xlu2 %v1140_v58 }
 0x81e   :  { %1126 = vadd.xlane.f32.xlu0 %v1125_v5  ;;  %v2645_v5 = vld [vmem:[#allocation5 + $0x70] sm:$0xff] }
 0x824   :  { %1306 = vrot.lane.b32.xlu2 %v3272_v47, %s3015_s4 }
 0x82c   :  { %1249 = vrot.lane.b32.xlu2 %v3240_v48, %s3015_s4 }
 0x82d   :  { %1138 = vadd.xlane.f32.xlu1 %v1137_v31 }
 0x853   :  { %v1133_v1 = vpop.xlane.xlu0 %1132 }
 0x854   :  { %2831 = vrcp.f32 %v1133_v1 }
 0x855   :  { %v1136_v4 = vpop.xlane.xlu1 %1135 }
 0x856   :  { %2833 = vrcp.f32 %v1136_v4 }
 0x85a   :  { %v2832_v34 = vpop.eup %2831 }
 0x85b   :  { %v1159_v6 = vmul.f32 %v2832_v34, %v2816_v32 }
 0x85c   :  { %v2834_v7 = vpop.eup %2833 }
 0x85d   :  { %v1167_v8 = vpack.c.bf16 %v1159_v6, %v1159_v6  ;;  %v1160_v38 = vmul.f32 %v2834_v7, %v2818_v36 }
 0x85f   :  { %v1168_v9 = vpack.c.bf16 %v1160_v38, %v1160_v38  ;;  %2527 = vmatmul.msk.bf16.vlgmr.msra.gmra.mxu3 %vm617_vm3, %v1167_v8 }
 0x861   :  { %v1130_v47 = vpop.xlane.xlu2 %1129  ;;  %2528 = vmatmul.msk.bf16.vlgmr.msra.gmra.mxu0 %vm617_vm3, %v1168_v9 }
 0x862   :  { %2835 = vrcp.f32 %v1130_v47 }
 0x866   :  { %v1269_v48 = vpop.permute.xlu0 %1268 }
 0x867   :  { %1281 = vmatpush.bf16.msra.mxu2 %v1269_v48 }
 0x868   :  { %v2836_v10 = vpop.eup %2835 }
 0x869   :  { %v1158_v11 = vmul.f32 %v2836_v10, %v3301_v41 }
 0x86b   :  { %v1166_v12 = vpack.c.bf16 %v1158_v11, %v1158_v11 }
 0x86d   :  { %2526 = vmatmul.msk.bf16.vlgmr.msrb.gmra.mxu2 %vm617_vm3, %v1166_v12  ;;  %v1288_v13 = vpop.permute.xlu1 %1287 }
 0x86e   :  { %1300 = vmatpush.bf16.msrb.mxu3 %v1288_v13  ;;  %v2761_v13 = vld [vmem:[#allocation7 + $0x58] ss:$0 sm:$0xff] }
 0x86f   :  { %v1145_v14 = vpop.xlane.xlu2 %1144 }
 0x870   :  { %2837 = vrcp.f32 %v1145_v14 }
 0x875   :  { %v1174_v15 = vpop.permute.xlu1 %1173 }
 0x876   :  { %v2838_v16 = vpop.eup %2837  ;;  %1186 = vmatpush.bf16.msrb.mxu1 %v1174_v15 }
 0x877   :  { %v1163_v17 = vmul.f32 %v2838_v16, %v2822_v19  ;;  %v1148_v21 = vpop.xlane.xlu2 %1147 }
 0x878   :  { %2839 = vrcp.f32 %v1148_v21 }
 0x879   :  { %v1171_v22 = vpack.c.bf16 %v1163_v17, %v1163_v17 }
 0x87b   :  { %2531 = vmatmul.msk.bf16.vlgmr.msrb.gmra.mxu3 %vm617_vm3, %v1171_v22 }
 0x87e   :  { %v2840_v24 = vpop.eup %2839 }
 0x87f   :  { %v1142_v23 = vpop.xlane.xlu2 %1141  ;;  %v1164_v25 = vmul.f32 %v2840_v24, %v2824_v53 }
 0x880   :  { %2841 = vrcp.f32 %v1142_v23 }
 0x881   :  { %v1172_v32 = vpack.c.bf16 %v1164_v25, %v1164_v25 }
 0x886   :  { %v2842_v26 = vpop.eup %2841 }
 0x887   :  { %v1162_v29 = vmul.f32 %v2842_v26, %v2826_v56  ;;  %v1307_v30 = vpop.permute.xlu2 %1306 }
 0x888   :  { %1319 = vmatpush.bf16.msrb.mxu0 %v1307_v30 }
 0x889   :  { %v1170_v33 = vpack.c.bf16 %v1162_v29, %v1162_v29 }
 0x88b   :  { %2530 = vmatmul.msk.bf16.vlgmr.msra.gmra.mxu2 %vm617_vm3, %v1170_v33  ;;  %2532 = vmatmul.msk.bf16.vlgmr.msrb.gmra.mxu0 %vm617_vm3, %v1172_v32 }
 0x88f   :  { %v1250_v36 = vpop.permute.xlu2 %1249 }
 0x890   :  { %1262 = vmatpush.bf16.msra.mxu1 %v1250_v36 }
 0x891   :  { %v1127_v37 = vpop.xlane.xlu0 %1126 }
 0x892   :  { %2843 = vrcp.f32 %v1127_v37 }
 0x898   :  { %v2844_v3 = vpop.eup %2843 }
 0x899   :  { %v1157_v39 = vmul.f32 %v2844_v3, %v2828_v61 }
 0x89b   :  { %v1165_v60 = vpack.c.bf16 %v1157_v39, %v1157_v39 }
 0x89d   :  { %2525 = vmatmul.msk.bf16.vlgmr.msrb.gmra.mxu1 %vm617_vm3, %v1165_v60 }
 0x89e   :  { %1383 = vmatpush.bf16.msrb.mxu1 %v2646_v62 }
 0x8a0   :  { %v1139_v41 = vpop.xlane.xlu1 %1138 }
 0x8a1   :  { %2845 = vrcp.f32 %v1139_v41 }
 0x8a2   :  { %1384 = vmatpush.bf16.msrb.mxu1 %v2645_v5 }
 0x8a7   :  { %v2846_v2 = vpop.eup %2845 }
 0x8a8   :  { %v1161_v42 = vmul.f32 %v2846_v2, %v2830_v0  ;;  %v2647_v2 = vld [vmem:[#allocation5 + $0x20] sm:$0xff] }
 0x8aa   :  { %v1169_v43 = vpack.c.bf16 %v1161_v42, %v1161_v42 }
 0x8ad   :  { %2529 = vmatmul.msk.bf16.vlgmr.msra.gmra.mxu1 %vm617_vm3, %v1169_v43 }
 0x8de   :  { %v1245_v44 = vpop.f32.mrf.mxu0 }
 0x8e2   :  { %v1226_v45 = vpop.f32.mrf.mxu3 }
 0x8e6   :  { %v1247_v46 = vpop.f32.mrf.mxu0 }
 0x8ea   :  { %v1228_v49 = vpop.f32.mrf.mxu3 }
 0x8f0   :  { %v1207_v50 = vpop.f32.mrf.mxu2 }
 0x8f8   :  { %v1209_v19 = vpop.f32.mrf.mxu2 }
 0x8fe   :  { %v1302_v51 = vpop.f32.mrf.mxu3 }
 0x8ff   :  { %v2730_v58 = vpack.i.bf16 %v1302_v51, %v1226_v45 }
 0x906   :  { %v1304_v52 = vpop.f32.mrf.mxu3 }
 0x908   :  { %v1321_v27 = vpop.f32.mrf.mxu0 }
 0x909   :  { %v2735_v53 = vpack.i.bf16 %v1321_v27, %v1245_v44 }
 0x90b   :  { %2736 = vrot.lane.b32.xlu0 %v2735_v53, %s3017_s6 }
 0x90e   :  { %v1283_v54 = vpop.f32.mrf.mxu2 }
 0x90f   :  { %v2725_v20 = vpack.i.bf16 %v1283_v54, %v1207_v50 }
 0x910   :  { %v1323_v55 = vpop.f32.mrf.mxu0 }
 0x911   :  { %2726 = vrot.lane.b32.xlu2 %v2725_v20, %s3010_s1 }
 0x916   :  { %v1285_v56 = vpop.f32.mrf.mxu2 }
 0x917   :  { %v2762_v56 = vld [vmem:[#allocation7 + $0x60] ss:$0 sm:$0xff] }
 0x919   :  { %2731 = vrot.lane.b32.xlu2 %v2730_v58, %s3016_s5 }
 0x91a   :  { %v1188_v35 = vpop.f32.mrf.mxu1 }
 0x922   :  { %v1190_v57 = vpop.f32.mrf.mxu1 }
 0x92a   :  { %v1264_v59 = vpop.f32.mrf.mxu1 }
 0x932   :  { %v1266_v61 = vpop.f32.mrf.mxu1 }
 0x96b   :  { %v2727_v63 = vpop.permute.xlu2 %2726 }
 0x96c   :  { %v2729_v31 = vunpack.i.h.bf16 %v2727_v63  ;;  %v2728_v1 = vunpack.i.l.bf16 %v2727_v63 }
 0x96e   :  { %v1350_v7 = vsel %vm138_vm1, %v1264_v59, %v2729_v31  ;;  %v1349_v8 = vsel %vm138_vm1, %v1188_v35, %v2728_v1  ;;  %v2763_v59 = vld [vmem:[#allocation7 + $0x68] ss:$0 sm:$0xff] }
 0x96f   :  { %v2652_v1 = vld [vmem:[#allocation5 + $0x48] sm:$0xff] }
 0x970   :  { %1542 = vmatpush.bf16.msra.mxu3 %v2652_v1 }
 0x973   :  { %v2732_v0 = vpop.permute.xlu2 %2731 }
 0x974   :  { %v2734_v4 = vunpack.i.h.bf16 %v2732_v0  ;;  %v2733_v34 = vunpack.i.l.bf16 %v2732_v0 }
 0x976   :  { %v1351_v47 = vsel %vm617_vm3, %v1349_v8, %v2733_v34  ;;  %v1352_v48 = vsel %vm617_vm3, %v1350_v7, %v2734_v4  ;;  %v2651_v4 = vld [vmem:[#allocation5 + $0x40] sm:$0xff]  ;;  %v2650_v34 = vld [vmem:[#allocation5 + $0x38] sm:$0xff]  ;;  %v2649_v8 = vld [vmem:[#allocation5 + $0x30] sm:$0xff] }
 0x977   :  { %1543 = vmatpush.bf16.msra.mxu3 %v2651_v4 }
 0x97b   :  { %1544 = vmatpush.bf16.msra.mxu3 %v2650_v34 }
 0x97d   :  { %v2737_v6 = vpop.permute.xlu0 %2736 }
 0x97e   :  { %v2739_v38 = vunpack.i.h.bf16 %v2737_v6  ;;  %v2738_v9 = vunpack.i.l.bf16 %v2737_v6  ;;  %v2764_v6 = vld [vmem:[#allocation7 + $0x28] ss:$0 sm:$0xff] }
 0x97f   :  { %1545 = vmatpush.bf16.msra.mxu3 %v2649_v8 }
 0x980   :  { %v1353_v10 = vsel %vm620_vm4, %v1351_v47, %v2738_v9  ;;  %v1354_v11 = vsel %vm620_vm4, %v1352_v48, %v2739_v38 }
 0x981   :  { %v1355_v12 = vpack.c.bf16 %v1354_v11, %v1353_v10 }
 0x983   :  { %2541 = vmatmul.msk.bf16.vlgmr.msrb.gmra.mxu1 %vm87_vm0, %v1355_v12 }
 0xa00   :  { %v1386_v14 = vpop.f32.mrf.mxu1 }
 0xa01   :  { %v1387_v15 = vadd.f32 %v2761_v13, %v1386_v14 }
 0xa03   :  { %v1391_v16 = vadd.f32 %v1387_v15, %v3231_v18 }
 0xa05   :  { %v1393_v17 = vsel %vm87_vm0, %v1391_v16, 0.0 }
 0xa06   :  { %1394 = vadd.xlane.f32.xlu2 %v1393_v17 }
 0xa08   :  { %v1388_v21 = vpop.f32.mrf.mxu1 }
 0xa09   :  { %v1389_v22 = vadd.f32 %v2761_v13, %v1388_v21 }
 0xa0b   :  { %v1392_v23 = vadd.f32 %v1389_v22, %v3233_v28  ;;  %v2648_v28 = vld [vmem:[#allocation5 + $0x28] sm:$0xff] }
 0xa0c   :  { %1473 = vmatpush.bf16.msrb.mxu2 %v2648_v28 }
 0xa0d   :  { %v1396_v24 = vsel %vm87_vm0, %v1392_v23, 0.0 }
 0xa0e   :  { %1397 = vadd.xlane.f32.xlu1 %v1396_v24 }
 0xa10   :  { %1474 = vmatpush.bf16.msrb.mxu2 %v2647_v2 }
 0xa79   :  { %v1395_v25 = vpop.xlane.xlu2 %1394 }
 0xa7a   :  { %v1399_v26 = vmul.f32 %v1395_v25, %v3215_v40 }
 0xa7c   :  { %v1401_v29 = vsub.f32 %v1391_v16, %v1399_v26 }
 0xa7e   :  { %v1403_v30 = vmul.f32 %v1401_v29, %v1401_v29 }
 0xa80   :  { %v1405_v32 = vsel %vm87_vm0, %v1403_v30, 0.0 }
 0xa81   :  { %v1398_v33 = vpop.xlane.xlu1 %1397  ;;  %1406 = vadd.xlane.f32.xlu1 %v1405_v32 }
 0xa82   :  { %v1400_v18 = vmul.f32 %v1398_v33, %v3215_v40 }
 0xa84   :  { %v1402_v36 = vsub.f32 %v1392_v23, %v1400_v18  ;;  %v2765_v18 = vld [vmem:[#allocation7 + $0x30] ss:$0 sm:$0xff] }
 0xa86   :  { %v1404_v37 = vmul.f32 %v1402_v36, %v1402_v36 }
 0xa88   :  { %v1408_v3 = vsel %vm87_vm0, %v1404_v37, 0.0 }
 0xa89   :  { %1409 = vadd.xlane.f32.xlu0 %v1408_v3 }
 0xaf4   :  { %v1407_v39 = vpop.xlane.xlu1 %1406 }
 0xaf5   :  { %v1411_v60 = vmul.f32 %v1407_v39, %v3215_v40 }
 0xaf7   :  { %v1413_v41 = vadd.f32 1e-12, %v1411_v60 }
 0xaf9   :  { %2847 = vrsqrt.f32 %v1413_v41  ;;  %vm1421_vm13 = vweird.f32 %v1413_v41 }
 0xafc   :  { %v1410_v42 = vpop.xlane.xlu0 %1409 }
 0xafd   :  { %v1412_v43 = vmul.f32 %v1410_v42, %v3215_v40 }
 0xaff   :  { %v2848_v44 = vpop.eup %2847  ;;  %v1414_v45 = vadd.f32 1e-12, %v1412_v43 }
 0xb00   :  { %v1416_v46 = vmul.f32 %v2848_v44, %v1413_v41  ;;  %vm1422_vm12 = vweird.f32 %v2848_v44 }
 0xb01   :  { %2849 = vrsqrt.f32 %v1414_v45  ;;  %vm1423_vm14 = vmor %vm1421_vm13, %vm1422_vm12  ;;  %vm1431_vm5 = vweird.f32 %v1414_v45 }
 0xb02   :  { %v1417_v49 = vmul.f32 %v2848_v44, %v1416_v46 }
 0xb04   :  { %v1418_v50 = vmul.f32 0.5, %v1417_v49 }
 0xb06   :  { %v1419_v19 = vsub.f32 1.5, %v1418_v50 }
 0xb07   :  { %v2850_v51 = vpop.eup %2849 }
 0xb08   :  { %v1420_v52 = vmul.f32 %v2848_v44, %v1419_v19  ;;  %v1426_v27 = vmul.f32 %v2850_v51, %v1414_v45  ;;  %vm1432_vm15 = vweird.f32 %v2850_v51 }
 0xb09   :  { %vm1433_vm6 = vmor %vm1431_vm5, %vm1432_vm15 }
 0xb0a   :  { %v1427_v53 = vmul.f32 %v2850_v51, %v1426_v27  ;;  %v1424_v54 = vsel %vm1423_vm14, %v2848_v44, %v1420_v52  ;;  %v2654_v27 = vld [vmem:[#allocation5 + $0x88] sm:$0xff] }
 0xb0b   :  { %v1435_v58 = vmul.f32 %v1424_v54, %v1401_v29  ;;  %1634 = vmatpush.bf16.msra.mxu0 %v2654_v27 }
 0xb0c   :  { %v1428_v20 = vmul.f32 0.5, %v1427_v53 }
 0xb0d   :  { %v1439_v61 = vmul.f32 %v2762_v56, %v1435_v58 }
 0xb0e   :  { %v1429_v55 = vsub.f32 1.5, %v1428_v20 }
 0xb0f   :  { %v1443_v63 = vadd.f32 %v2763_v59, %v1439_v61 }
 0xb10   :  { %v1430_v35 = vmul.f32 %v2850_v51, %v1429_v55  ;;  %v2653_v55 = vld [vmem:[#allocation5 + $0x80] sm:$0xff] }
 0xb11   :  { %1635 = vmatpush.bf16.msra.mxu0 %v2653_v55 }
 0xb12   :  { %v1434_v57 = vsel %vm1433_vm6, %v2850_v51, %v1430_v35 }
 0xb13   :  { %v1436_v62 = vmul.f32 %v1434_v57, %v1402_v36 }
 0xb15   :  { %v1440_v5 = vmul.f32 %v2762_v56, %v1436_v62 }
 0xb17   :  { %v1444_v0 = vadd.f32 %v2763_v59, %v1440_v5 }
 0xb19   :  { %v1445_v31 = vpack.c.bf16 %v1444_v0, %v1443_v63 }
 0xb1b   :  { %2550 = vmatmul.msk.bf16.vlgmr.msrb.gmra.mxu2 %vm87_vm0, %v1445_v31 }
 0xb9e   :  { %v1476_v7 = vpop.f32.mrf.mxu2 }
 0xb9f   :  { %v1477_v38 = vadd.f32 %v2764_v6, %v1476_v7  ;;  %v2766_v7 = vld [vmem:[#allocation7 + $0x38] ss:$0 sm:$0xff] }
 0xba1   :  { %v1481_v9 = vmul.f32 %v1477_v38, %v1477_v38 }
 0xba3   :  { %v1483_v47 = vmul.f32 %v1481_v9, %v1477_v38 }
 0xba5   :  { %v1485_v48 = vmul.f32 0.044715, %v1483_v47  ;;  %v2767_v47 = vld [vmem:[#allocation7 + $0x40] ss:$0 sm:$0xff] }
 0xba6   :  { %v1478_v10 = vpop.f32.mrf.mxu2 }
 0xba7   :  { %v1487_v11 = vadd.f32 %v1485_v48, %v1477_v38  ;;  %v1479_v12 = vadd.f32 %v2764_v6, %v1478_v10 }
 0xba9   :  { %v1489_v13 = vmul.f32 0.7978846, %v1487_v11  ;;  %v1482_v14 = vmul.f32 %v1479_v12, %v1479_v12 }
 0xbab   :  { %v1484_v15 = vmul.f32 %v1482_v14, %v1479_v12  ;;  %2851 = vtanh.f32 %v1489_v13 }
 0xbad   :  { %v1486_v16 = vmul.f32 0.044715, %v1484_v15  ;;  %v2768_v15 = vld [vmem:[#allocation7 + $0x70] ss:$0 sm:$0xff] }
 0xbaf   :  { %v1488_v17 = vadd.f32 %v1486_v16, %v1479_v12 }
 0xbb1   :  { %v1490_v21 = vmul.f32 0.7978846, %v1488_v17  ;;  %v2852_v22 = vpop.eup %2851 }
 0xbb2   :  { %v1493_v23 = vadd.f32 1.0, %v2852_v22 }
 0xbb3   :  { %2853 = vtanh.f32 %v1490_v21 }
 0xbb4   :  { %v1495_v25 = vmul.f32 0.5, %v1493_v23 }
 0xbb6   :  { %v1497_v30 = vmul.f32 %v1495_v25, %v1477_v38 }
 0xbb9   :  { %v2854_v24 = vpop.eup %2853 }
 0xbba   :  { %v1494_v26 = vadd.f32 1.0, %v2854_v24 }
 0xbbc   :  { %v1496_v29 = vmul.f32 0.5, %v1494_v26 }
 0xbbe   :  { %v1498_v32 = vmul.f32 %v1496_v29, %v1479_v12 }
 0xbc0   :  { %v1499_v33 = vpack.c.bf16 %v1498_v32, %v1497_v30 }
 0xbc2   :  { %2567 = vmatmul.msk.bf16.vlgmr.msra.gmra.mxu3 %vm1534_vm7, %v1499_v33 }
 0xc45   :  { %v1547_v36 = vpop.f32.mrf.mxu3 }
 0xc46   :  { %v1548_v37 = vadd.f32 %v2765_v18, %v1547_v36 }
 0xc48   :  { %v1552_v3 = vadd.f32 %v1548_v37, %v1443_v63 }
 0xc4a   :  { %v1554_v28 = vsel %vm87_vm0, %v1552_v3, 0.0 }
 0xc4b   :  { %1555 = vadd.xlane.f32.xlu1 %v1554_v28 }
 0xc4d   :  { %v1549_v39 = vpop.f32.mrf.mxu3 }
 0xc4e   :  { %v1550_v60 = vadd.f32 %v2765_v18, %v1549_v39 }
 0xc50   :  { %v1553_v41 = vadd.f32 %v1550_v60, %v1444_v0 }
 0xc52   :  { %v1557_v2 = vsel %vm87_vm0, %v1553_v41, 0.0 }
 0xc53   :  { %1558 = vadd.xlane.f32.xlu1 %v1557_v2 }
 0xcbe   :  { %v1556_v42 = vpop.xlane.xlu1 %1555 }
 0xcbf   :  { %v1560_v43 = vmul.f32 %v1556_v42, %v3215_v40 }
 0xcc1   :  { %v1562_v44 = vsub.f32 %v1552_v3, %v1560_v43 }
 0xcc3   :  { %v1564_v45 = vmul.f32 %v1562_v44, %v1562_v44 }
 0xcc5   :  { %v1566_v46 = vsel %vm87_vm0, %v1564_v45, 0.0 }
 0xcc6   :  { %1567 = vadd.xlane.f32.xlu2 %v1566_v46  ;;  %v1559_v49 = vpop.xlane.xlu1 %1558 }
 0xcc7   :  { %v1561_v50 = vmul.f32 %v1559_v49, %v3215_v40 }
 0xcc9   :  { %v1563_v19 = vsub.f32 %v1553_v41, %v1561_v50 }
 0xccb   :  { %v1565_v51 = vmul.f32 %v1563_v19, %v1563_v19 }
 0xccd   :  { %v1569_v52 = vsel %vm87_vm0, %v1565_v51, 0.0 }
 0xcce   :  { %1570 = vadd.xlane.f32.xlu1 %v1569_v52 }
 0xd39   :  { %v1568_v53 = vpop.xlane.xlu2 %1567 }
 0xd3a   :  { %v1572_v54 = vmul.f32 %v1568_v53, %v3215_v40 }
 0xd3c   :  { %v1574_v20 = vadd.f32 1e-12, %v1572_v54 }
 0xd3e   :  { %2855 = vrsqrt.f32 %v1574_v20  ;;  %vm1582_vm9 = vweird.f32 %v1574_v20 }
 0xd41   :  { %v1571_v56 = vpop.xlane.xlu1 %1570 }
 0xd42   :  { %v1573_v58 = vmul.f32 %v1571_v56, %v3215_v40 }
 0xd44   :  { %v2856_v35 = vpop.eup %2855  ;;  %v1575_v57 = vadd.f32 1e-12, %v1573_v58 }
 0xd45   :  { %v1577_v59 = vmul.f32 %v2856_v35, %v1574_v20  ;;  %vm1583_vm8 = vweird.f32 %v2856_v35 }
 0xd46   :  { %2857 = vrsqrt.f32 %v1575_v57  ;;  %vm1584_vm10 = vmor %vm1582_vm9, %vm1583_vm8  ;;  %vm1592_vm12 = vweird.f32 %v1575_v57 }
 0xd47   :  { %v1578_v61 = vmul.f32 %v2856_v35, %v1577_v59 }
 0xd49   :  { %v1579_v62 = vmul.f32 0.5, %v1578_v61 }
 0xd4b   :  { %v1580_v5 = vsub.f32 1.5, %v1579_v62 }
 0xd4c   :  { %v2858_v63 = vpop.eup %2857 }
 0xd4d   :  { %v1581_v0 = vmul.f32 %v2856_v35, %v1580_v5  ;;  %v1587_v31 = vmul.f32 %v2858_v63, %v1575_v57  ;;  %vm1593_vm11 = vweird.f32 %v2858_v63 }
 0xd4e   :  { %vm1594_vm13 = vmor %vm1592_vm12, %vm1593_vm11 }
 0xd4f   :  { %v1588_v1 = vmul.f32 %v2858_v63, %v1587_v31  ;;  %v1585_v4 = vsel %vm1584_vm10, %v2856_v35, %v1581_v0 }
 0xd50   :  { %v1596_v8 = vmul.f32 %v1585_v4, %v1562_v44 }
 0xd51   :  { %v1589_v34 = vmul.f32 0.5, %v1588_v1 }
 0xd52   :  { %v1600_v48 = vmul.f32 %v2766_v7, %v1596_v8 }
 0xd53   :  { %v1590_v6 = vsub.f32 1.5, %v1589_v34 }
 0xd54   :  { %v3361_v12 = vadd.f32 %v2767_v47, %v1600_v48 }
 0xd55   :  { %v1591_v38 = vmul.f32 %v2858_v63, %v1590_v6 }
 0xd57   :  { %v1595_v9 = vsel %vm1594_vm13, %v2858_v63, %v1591_v38 }
 0xd58   :  { %v1597_v10 = vmul.f32 %v1595_v9, %v1563_v19 }
 0xd5a   :  { %v1601_v11 = vmul.f32 %v2766_v7, %v1597_v10 }
 0xd5c   :  { %v3363_v13 = vadd.f32 %v2767_v47, %v1601_v11 }
 0xd5e   :  { %v1606_v14 = vpack.c.bf16 %v3363_v13, %v3361_v12 }
 0xd60   :  { %2576 = vmatmul.msk.bf16.vlgmr.msra.gmra.mxu0 %vm87_vm0, %v1606_v14 }
 0xddd   :  { %v1637_v16 = vpop.f32.mrf.mxu0 }
 0xdde   :  { %v1638_v17 = vadd.f32 %v2768_v15, %v1637_v16 }
 0xde0   :  { %1656 = vrot.lane.b32.xlu0 %v1638_v17, %s3012_s2  ;;  %1650 = vrot.lane.b32.xlu1 %v1638_v17, %s3014_s30  ;;  %v1662_v18 = vpack.c.bf16 %v1638_v17, %v1638_v17 }
 0xde1   :  { %1644 = vrot.lane.b32.xlu2 %v1638_v17, %s3013_s29 }
 0xde2   :  { %v1671_v36 = vunpack.c.l.b16 %v1662_v18 }
 0xde4   :  { %v3382_v37 = vpack.c.b16 %v1671_v36, %v1671_v36 }
 0xde5   :  { %v1639_v21 = vpop.f32.mrf.mxu0 }
 0xde6   :  { %v1640_v22 = vadd.f32 %v2768_v15, %v1639_v21 }
 0xde8   :  { %1652 = vrot.lane.b32.xlu1 %v1640_v22, %s3014_s30  ;;  %v1666_v27 = vpack.c.bf16 %v1640_v22, %v1640_v22 }
 0xde9   :  { %1646 = vrot.lane.b32.xlu2 %v1640_v22, %s3013_s29 }
 0xdea   :  { %v1767_v53 = vunpack.c.l.b16 %v1666_v27 }
 0xdec   :  { %v3402_v54 = vpack.c.b16 %v1767_v53, %v1767_v53 }
 0xdf1   :  { %1658 = vrot.lane.b32.xlu2 %v1640_v22, %s3012_s2 }
 0xe3b   :  { %v1645_v23 = vpop.permute.xlu2 %1644 }
 0xe3c   :  { %v1663_v24 = vpack.c.bf16 %v1645_v23, %v1645_v23 }
 0xe3e   :  { %v1695_v25 = vunpack.c.l.b16 %v1663_v24 }
 0xe40   :  { %v3374_v26 = vpack.c.b16 %v1695_v25, %v1695_v25 }
 0xe42   :  { %1697 = vrot.lane.b32.xlu0 %v3374_v26, %s3015_s4 }
 0xe43   :  { %v1647_v29 = vpop.permute.xlu2 %1646 }
 0xe44   :  { %v1667_v30 = vpack.c.bf16 %v1647_v29, %v1647_v29 }
 0xe46   :  { %v1791_v32 = vunpack.c.l.b16 %v1667_v30 }
 0xe48   :  { %v3378_v33 = vpack.c.b16 %v1791_v32, %v1791_v32 }
 0xe4a   :  { %1793 = vrot.lane.b32.xlu0 %v3378_v33, %s3015_s4 }
 0xe4b   :  { %v1659_v41 = vpop.permute.xlu2 %1658 }
 0xe4c   :  { %v1669_v43 = vpack.c.bf16 %v1659_v41, %v1659_v41 }
 0xe4e   :  { %v1839_v49 = vunpack.c.l.b16 %v1669_v43 }
 0xe50   :  { %v3394_v51 = vpack.c.b16 %v1839_v49, %v1839_v49 }
 0xe52   :  { %1673 = vrot.lane.b32.xlu0 %v3382_v37, %s3015_s4  ;;  %v1657_v3 = vpop.permute.xlu0 %1656  ;;  %v1651_v28 = vpop.permute.xlu1 %1650 }
 0xe53   :  { %v1665_v39 = vpack.c.bf16 %v1657_v3, %v1657_v3  ;;  %v1664_v60 = vpack.c.bf16 %v1651_v28, %v1651_v28 }
 0xe55   :  { %v1743_v2 = vunpack.c.l.b16 %v1665_v39  ;;  %v1719_v42 = vunpack.c.l.b16 %v1664_v60 }
 0xe57   :  { %v3386_v44 = vpack.c.b16 %v1743_v2, %v1743_v2  ;;  %v3388_v45 = vpack.c.b16 %v1719_v42, %v1719_v42 }
 0xe59   :  { %1721 = vrot.lane.b32.xlu1 %v3388_v45, %s3015_s4  ;;  %1745 = vrot.lane.b32.xlu2 %v3386_v44, %s3015_s4 }
 0xe5a   :  { %v1653_v46 = vpop.permute.xlu1 %1652 }
 0xe5b   :  { %v1668_v50 = vpack.c.bf16 %v1653_v46, %v1653_v46 }
 0xe5d   :  { %v1815_v19 = vunpack.c.l.b16 %v1668_v50 }
 0xe5f   :  { %v3396_v52 = vpack.c.b16 %v1815_v19, %v1815_v19 }
 0xe61   :  { %1817 = vrot.lane.b32.xlu1 %v3396_v52, %s3015_s4  ;;  %1841 = vrot.lane.b32.xlu2 %v3394_v51, %s3015_s4 }
 0xe69   :  { %1769 = vrot.lane.b32.xlu1 %v3402_v54, %s3015_s4 }
 0xeb3   :  { %v1746_v20 = vpop.permute.xlu2 %1745 }
 0xeb4   :  { %v1698_v55 = vpop.permute.xlu0 %1697  ;;  %v1751_v56 = vsel %vm138_vm1, %v1746_v20, 0 }
 0xeb5   :  { %v1703_v58 = vsel %vm138_vm1, %v1698_v55, 0  ;;  %1760 = vmatpush.bf16.xpose.msrb.mxu0 %v1751_v56 }
 0xeb6   :  { %1712 = vmatpush.bf16.xpose.msra.mxu2 %v1703_v58 }
 0xebb   :  { %v1842_v35 = vpop.permute.xlu2 %1841 }
 0xebc   :  { %v1794_v57 = vpop.permute.xlu0 %1793  ;;  %v1847_v59 = vsel %vm138_vm1, %v1842_v35, 0  ;;  %2580 = vmatmul.msk.bf16.vlgmr.msrb.gmra.mxu0 %vm138_vm1, %v1665_v39 }
 0xebd   :  { %v1799_v61 = vsel %vm138_vm1, %v1794_v57, 0  ;;  %2578 = vmatmul.msk.bf16.vlgmr.msra.gmra.mxu2 %vm138_vm1, %v1663_v24  ;;  %1856 = vmatpush.bf16.xpose.msra.mxu0 %v1847_v59 }
 0xebe   :  { %1808 = vmatpush.bf16.xpose.msrb.mxu2 %v1799_v61 }
 0xec4   :  { %v1674_v62 = vpop.permute.xlu0 %1673 }
 0xec5   :  { %v1679_v5 = vsel %vm138_vm1, %v1674_v62, 0 }
 0xec6   :  { %1688 = vmatpush.bf16.xpose.msra.mxu1 %v1679_v5 }
 0xecb   :  { %v1722_v63 = vpop.permute.xlu1 %1721 }
 0xecc   :  { %v1727_v0 = vsel %vm138_vm1, %v1722_v63, 0  ;;  %2584 = vmatmul.msk.bf16.vlgmr.msra.gmra.mxu0 %vm138_vm1, %v1669_v43 }
 0xecd   :  { %2577 = vmatmul.msk.bf16.vlgmr.msra.gmra.mxu1 %vm138_vm1, %v1662_v18  ;;  %2582 = vmatmul.msk.bf16.vlgmr.msrb.gmra.mxu2 %vm138_vm1, %v1667_v30 }
 0xece   :  { %1736 = vmatpush.bf16.xpose.msrb.mxu3 %v1727_v0 }
 0xed3   :  { %v1818_v31 = vpop.permute.xlu1 %1817 }
 0xed4   :  { %v1823_v1 = vsel %vm138_vm1, %v1818_v31, 0 }
 0xed5   :  { %2579 = vmatmul.msk.bf16.vlgmr.msrb.gmra.mxu3 %vm138_vm1, %v1664_v60 }
 0xed6   :  { %1832 = vmatpush.bf16.xpose.msra.mxu3 %v1823_v1 }
 0xedb   :  { %v1770_v4 = vpop.permute.xlu1 %1769 }
 0xedc   :  { %v1775_v34 = vsel %vm138_vm1, %v1770_v4, 0 }
 0xedd   :  { %1784 = vmatpush.bf16.xpose.msrb.mxu1 %v1775_v34 }
 0xee4   :  { %2581 = vmatmul.msk.bf16.vlgmr.msrb.gmra.mxu1 %vm138_vm1, %v1666_v27 }
 0xee5   :  { %2583 = vmatmul.msk.bf16.vlgmr.msra.gmra.mxu3 %vm138_vm1, %v1668_v50 }
 0xf39   :  { %v1762_v6 = vpop.f32.mrf.mxu0 }
 0xf3a   :  { %v1871_v7 = vsel %vm138_vm1, %v1762_v6, -inf }
 0xf3b   :  { %1872 = vmax.xlane.f32.xlu1 %v1871_v7 }
 0xf40   :  { %v1714_v8 = vpop.f32.mrf.mxu2 }
 0xf41   :  { %v1764_v38 = vpop.f32.mrf.mxu0  ;;  %v1865_v17 = vsel %vm138_vm1, %v1714_v8, -inf }
 0xf48   :  { %v1716_v9 = vpop.f32.mrf.mxu2 }
 0xf49   :  { %v1858_v47 = vpop.f32.mrf.mxu0 }
 0xf4a   :  { %v3423_v48 = vpop.f32.mrf.mxu1  ;;  %v1883_v10 = vsel %vm138_vm1, %v1858_v47, -inf }
 0xf4b   :  { %1884 = vmax.xlane.f32.xlu1 %v1883_v10  ;;  %v1862_v11 = vsel %vm138_vm1, %v3423_v48, -inf }
 0xf4c   :  { %1863 = vmax.xlane.f32.xlu2 %v1862_v11 }
 0xf50   :  { %v1810_v14 = vpop.f32.mrf.mxu2 }
 0xf51   :  { %v1860_v15 = vpop.f32.mrf.mxu0  ;;  %v1877_v24 = vsel %vm138_vm1, %v1810_v14, -inf }
 0xf52   :  { %v1692_v16 = vpop.f32.mrf.mxu1 }
 0xf54   :  { %1866 = vmax.xlane.f32.xlu2 %v1865_v17 }
 0xf58   :  { %v1738_v21 = vpop.f32.mrf.mxu3  ;;  %v1812_v22 = vpop.f32.mrf.mxu2 }
 0xf59   :  { %v1868_v23 = vsel %vm138_vm1, %v1738_v21, -inf }
 0xf5a   :  { %1869 = vmax.xlane.f32.xlu0 %v1868_v23 }
 0xf5c   :  { %1878 = vmax.xlane.f32.xlu2 %v1877_v24 }
 0xf60   :  { %v1740_v25 = vpop.f32.mrf.mxu3 }
 0xf61   :  { %v3431_v29 = vpop.f32.mrf.mxu1 }
 0xf62   :  { %v1874_v30 = vsel %vm138_vm1, %v3431_v29, -inf }
 0xf63   :  { %1875 = vmax.xlane.f32.xlu1 %v1874_v30 }
 0xf68   :  { %v1834_v32 = vpop.f32.mrf.mxu3 }
 0xf69   :  { %v1880_v18 = vsel %vm138_vm1, %v1834_v32, -inf  ;;  %v1788_v36 = vpop.f32.mrf.mxu1 }
 0xf6a   :  { %1881 = vmax.xlane.f32.xlu0 %v1880_v18 }
 0xf70   :  { %v1836_v3 = vpop.f32.mrf.mxu3 }
 0xf7c   :  { %2021 = vrot.lane.b32.xlu1 %v3386_v44, %s3006_s20 }
 0xfae   :  { %v1873_v28 = vpop.xlane.xlu1 %1872 }
 0xfaf   :  { %v1889_v39 = vsub.f32 %v1762_v6, %v1873_v28 }
 0xfb1   :  { %v1900_v60 = vmul.f32 1.442695, %v1889_v39 }
 0xfb3   :  { %2859 = vpow2.f32 %v1900_v60 }
 0xfb9   :  { %v3438_v41 = vpop.eup %2859 }
 0xfba   :  { %v1919_v2 = vsel %vm138_vm1, %v3438_v41, 0.0 }
 0xfbb   :  { %1920 = vadd.xlane.f32.xlu2 %v1919_v2 }
 0xfbe   :  { %v1885_v59 = vpop.xlane.xlu1 %1884 }
 0xfbf   :  { %v1864_v42 = vpop.xlane.xlu2 %1863 }
 0xfc0   :  { %v1886_v6 = vsub.f32 %v3423_v48, %v1864_v42 }
 0xfc2   :  { %v1894_v7 = vmul.f32 1.442695, %v1886_v6 }
 0xfc7   :  { %v1867_v43 = vpop.xlane.xlu2 %1866 }
 0xfc8   :  { %v1887_v46 = vsub.f32 %v1714_v8, %v1867_v43 }
 0xfca   :  { %v1896_v49 = vmul.f32 1.442695, %v1887_v46 }
 0xfcc   :  { %2861 = vpow2.f32 %v1896_v49 }
 0xfcd   :  { %v1870_v50 = vpop.xlane.xlu0 %1869 }
 0xfce   :  { %v1888_v19 = vsub.f32 %v1738_v21, %v1870_v50 }
 0xfcf   :  { %v1879_v27 = vpop.xlane.xlu2 %1878 }
 0xfd0   :  { %v1898_v53 = vmul.f32 1.442695, %v1888_v19  ;;  %v1891_v44 = vsub.f32 %v1810_v14, %v1879_v27 }
 0xfd2   :  { %v3442_v20 = vpop.eup %2861  ;;  %2863 = vpow2.f32 %v1898_v53  ;;  %v1904_v56 = vmul.f32 1.442695, %v1891_v44 }
 0xfd3   :  { %2000 = vrot.lane.b32.xlu2 %v3388_v45, %s3006_s20  ;;  %v1913_v55 = vsel %vm138_vm1, %v3442_v20, 0.0  ;;  %v1893_v45 = vsub.f32 %v1858_v47, %v1885_v59 }
 0xfd4   :  { %1914 = vadd.xlane.f32.xlu0 %v1913_v55  ;;  %2865 = vpow2.f32 %v1904_v56 }
 0xfd5   :  { %v1908_v5 = vmul.f32 1.442695, %v1893_v45 }
 0xfd6   :  { %v1876_v62 = vpop.xlane.xlu1 %1875 }
 0xfd7   :  { %2867 = vpow2.f32 %v1908_v5 }
 0xfd8   :  { %v2864_v58 = vpop.eup %2863 }
 0xfd9   :  { %v1916_v35 = vsel %vm138_vm1, %v2864_v58, 0.0 }
 0xfda   :  { %1917 = vadd.xlane.f32.xlu1 %v1916_v35  ;;  %v3449_v57 = vpop.eup %2865 }
 0xfdb   :  { %v1925_v61 = vsel %vm138_vm1, %v3449_v57, 0.0 }
 0xfdd   :  { %v3456_v31 = vpop.eup %2867  ;;  %v1882_v4 = vpop.xlane.xlu0 %1881 }
 0xfde   :  { %v1931_v1 = vsel %vm138_vm1, %v3456_v31, 0.0  ;;  %v1892_v34 = vsub.f32 %v1834_v32, %v1882_v4 }
 0xfe2   :  { %1926 = vadd.xlane.f32.xlu1 %v1925_v61 }
 0xfe8   :  { %1979 = vrot.lane.b32.xlu0 %v3374_v26, %s3006_s20  ;;  %v1906_v26 = vmul.f32 1.442695, %v1892_v34 }
 0xfea   :  { %2869 = vpow2.f32 %v1906_v26 }
 0xfeb   :  { %2871 = vpow2.f32 %v1894_v7 }
 0xfee   :  { %v2022_v63 = vpop.permute.xlu1 %2021 }
 0xfef   :  { %v2027_v0 = vsel %vm427_vm2, %v2022_v63, 0 }
 0xff0   :  { %2036 = vmatpush.bf16.msrb.mxu0 %v2027_v0  ;;  %v3467_v8 = vpop.eup %2869 }
 0xff1   :  { %v1928_v38 = vsel %vm138_vm1, %v3467_v8, 0.0  ;;  %v3476_v9 = vpop.eup %2871 }
 0xffb   :  { %2063 = vrot.lane.b32.xlu1 %v3378_v33, %s3006_s20  ;;  %v1890_v33 = vsub.f32 %v3431_v29, %v1876_v62 }
 0xffc   :  { %1932 = vadd.xlane.f32.xlu2 %v1931_v1 }
0x1003   :  { %2084 = vrot.lane.b32.xlu1 %v3396_v52, %s3006_s20  ;;  %v1902_v52 = vmul.f32 1.442695, %v1890_v33 }
0x1005   :  { %2873 = vpow2.f32 %v1902_v52 }
0x100b   :  { %2105 = vrot.lane.b32.xlu1 %v3394_v51, %s3006_s20  ;;  %v1910_v51 = vsel %vm138_vm1, %v3476_v9, 0.0  ;;  %v3480_v47 = vpop.eup %2873 }
0x100c   :  { %v1922_v48 = vsel %vm138_vm1, %v3480_v47, 0.0 }
0x1012   :  { %1929 = vadd.xlane.f32.xlu0 %v1928_v38 }
0x1013   :  { %1958 = vrot.lane.b32.xlu1 %v3382_v37, %s3006_s20 }
0x1014   :  { %2042 = vrot.lane.b32.xlu2 %v3402_v54, %s3006_s20 }
0x101a   :  { %1911 = vadd.xlane.f32.xlu0 %v1910_v51 }
0x1022   :  { %1923 = vadd.xlane.f32.xlu0 %v1922_v48 }
0x102e   :  { %v1921_v10 = vpop.xlane.xlu2 %1920 }
0x102f   :  { %2875 = vrcp.f32 %v1921_v10 }
0x1035   :  { %v2876_v37 = vpop.eup %2875 }
0x1036   :  { %v1945_v11 = vmul.f32 %v2876_v37, %v3438_v41  ;;  %v2001_v14 = vpop.permute.xlu2 %2000 }
0x1037   :  { %v2006_v54 = vsel %vm427_vm2, %v2001_v14, 0 }
0x1038   :  { %v1953_v15 = vpack.c.bf16 %v1945_v11, %v1945_v11  ;;  %2015 = vmatpush.bf16.msrb.mxu3 %v2006_v54  ;;  %v2656_v54 = vld [vmem:[#allocation5 + $0x98] sm:$0xff] }
0x103a   :  { %2588 = vmatmul.msk.bf16.vlgmr.msrb.gmra.mxu0 %vm138_vm1, %v1953_v15  ;;  %v2655_v15 = vld [vmem:[#allocation5 + $0x90] sm:$0xff] }
0x1047   :  { %v1915_v16 = vpop.xlane.xlu0 %1914 }
0x104d   :  { %v1918_v17 = vpop.xlane.xlu1 %1917 }
0x104e   :  { %2877 = vrcp.f32 %v1918_v17 }
0x104f   :  { %2879 = vrcp.f32 %v1915_v16 }
0x1054   :  { %v2878_v21 = vpop.eup %2877 }
0x1055   :  { %v1944_v22 = vmul.f32 %v2878_v21, %v2864_v58  ;;  %v2880_v23 = vpop.eup %2879  ;;  %v1927_v18 = vpop.xlane.xlu1 %1926 }
0x1056   :  { %v1943_v25 = vmul.f32 %v2880_v23, %v3442_v20  ;;  %2881 = vrcp.f32 %v1927_v18 }
0x1057   :  { %v1952_v24 = vpack.c.bf16 %v1944_v22, %v1944_v22 }
0x1058   :  { %v1951_v32 = vpack.c.bf16 %v1943_v25, %v1943_v25 }
0x1059   :  { %2587 = vmatmul.msk.bf16.vlgmr.msrb.gmra.mxu3 %vm138_vm1, %v1952_v24 }
0x105a   :  { %v1980_v29 = vpop.permute.xlu0 %1979 }
0x105b   :  { %v1985_v30 = vsel %vm427_vm2, %v1980_v29, 0 }
0x105c   :  { %1994 = vmatpush.bf16.msra.mxu2 %v1985_v30  ;;  %v2882_v36 = vpop.eup %2881 }
0x105d   :  { %v1947_v3 = vmul.f32 %v2882_v36, %v3449_v57 }
0x105f   :  { %2586 = vmatmul.msk.bf16.vlgmr.msra.gmra.mxu2 %vm138_vm1, %v1951_v32  ;;  %v1955_v60 = vpack.c.bf16 %v1947_v3, %v1947_v3 }
0x106d   :  { %v2064_v28 = vpop.permute.xlu1 %2063 }
0x106e   :  { %v2069_v39 = vsel %vm427_vm2, %v2064_v28, 0 }
0x106f   :  { %2078 = vmatpush.bf16.msrb.mxu2 %v2069_v39  ;;  %v1933_v41 = vpop.xlane.xlu2 %1932 }
0x1070   :  { %2883 = vrcp.f32 %v1933_v41  ;;  %v2769_v41 = vld [vmem:[#allocation7 + $0x78] ss:$0 sm:$0xff] }
0x1072   :  { %2590 = vmatmul.msk.bf16.vlgmr.msrb.gmra.mxu2 %vm138_vm1, %v1955_v60 }
0x1075   :  { %v2085_v2 = vpop.permute.xlu1 %2084 }
0x1076   :  { %v2090_v42 = vsel %vm427_vm2, %v2085_v2, 0  ;;  %v2884_v43 = vpop.eup %2883 }
0x1077   :  { %2099 = vmatpush.bf16.msra.mxu3 %v2090_v42  ;;  %v1949_v46 = vmul.f32 %v2884_v43, %v3456_v31  ;;  %v2043_v27 = vpop.permute.xlu2 %2042 }
0x1078   :  { %v2048_v55 = vsel %vm427_vm2, %v2043_v27, 0 }
0x1079   :  { %v1957_v19 = vpack.c.bf16 %v1949_v46, %v1949_v46 }
0x107d   :  { %v2106_v49 = vpop.permute.xlu1 %2105 }
0x107e   :  { %v2111_v50 = vsel %vm427_vm2, %v2106_v49, 0 }
0x107f   :  { %2120 = vmatpush.bf16.msra.mxu0 %v2111_v50 }
0x1082   :  { %2592 = vmatmul.msk.bf16.vlgmr.msra.gmra.mxu0 %vm138_vm1, %v1957_v19 }
0x1085   :  { %v1959_v53 = vpop.permute.xlu1 %1958  ;;  %v1930_v44 = vpop.xlane.xlu0 %1929 }
0x1086   :  { %v1964_v20 = vsel %vm427_vm2, %v1959_v53, 0  ;;  %2885 = vrcp.f32 %v1930_v44 }
0x1087   :  { %1973 = vmatpush.bf16.msra.mxu1 %v1964_v20 }
0x108b   :  { %2057 = vmatpush.bf16.msrb.mxu1 %v2048_v55 }
0x108c   :  { %v2886_v56 = vpop.eup %2885 }
0x108d   :  { %v1948_v58 = vmul.f32 %v2886_v56, %v3467_v8  ;;  %v1912_v35 = vpop.xlane.xlu0 %1911 }
0x108e   :  { %2887 = vrcp.f32 %v1912_v35 }
0x108f   :  { %v1956_v57 = vpack.c.bf16 %v1948_v58, %v1948_v58 }
0x1091   :  { %2591 = vmatmul.msk.bf16.vlgmr.msra.gmra.mxu3 %vm138_vm1, %v1956_v57 }
0x1094   :  { %v2888_v59 = vpop.eup %2887 }
0x1095   :  { %v1942_v61 = vmul.f32 %v2888_v59, %v3476_v9  ;;  %v1924_v45 = vpop.xlane.xlu0 %1923 }
0x1096   :  { %2889 = vrcp.f32 %v1924_v45  ;;  %v2657_v45 = vld [vmem:[#allocation5 + $0xa0] sm:$0xff] }
0x1097   :  { %v1950_v62 = vpack.c.bf16 %v1942_v61, %v1942_v61 }
0x1099   :  { %2585 = vmatmul.msk.bf16.vlgmr.msra.gmra.mxu1 %vm138_vm1, %v1950_v62 }
0x109a   :  { %2184 = vmatpush.bf16.msra.mxu1 %v2656_v54 }
0x109c   :  { %v2890_v5 = vpop.eup %2889 }
0x109d   :  { %v1946_v63 = vmul.f32 %v2890_v5, %v3480_v47 }
0x109e   :  { %2185 = vmatpush.bf16.msra.mxu1 %v2655_v15 }
0x109f   :  { %v1954_v0 = vpack.c.bf16 %v1946_v63, %v1946_v63 }
0x10a9   :  { %2589 = vmatmul.msk.bf16.vlgmr.msrb.gmra.mxu1 %vm138_vm1, %v1954_v0 }
0x10b7   :  { %v2038_v31 = vpop.f32.mrf.mxu0 }
0x10bf   :  { %v2040_v1 = vpop.f32.mrf.mxu0 }
0x10dc   :  { %v2017_v4 = vpop.f32.mrf.mxu3 }
0x10e2   :  { %v1996_v34 = vpop.f32.mrf.mxu2 }
0x10e4   :  { %v2019_v26 = vpop.f32.mrf.mxu3 }
0x10ea   :  { %v1998_v6 = vpop.f32.mrf.mxu2 }
0x10f5   :  { %v2080_v7 = vpop.f32.mrf.mxu2 }
0x10f6   :  { %v2740_v8 = vpack.i.bf16 %v2080_v7, %v1996_v34 }
0x10f8   :  { %2741 = vrot.lane.b32.xlu1 %v2740_v8, %s3010_s1 }
0x10fd   :  { %v2082_v33 = vpop.f32.mrf.mxu2 }
0x10ff   :  { %v2122_v38 = vpop.f32.mrf.mxu0 }
0x1100   :  { %v2750_v52 = vpack.i.bf16 %v2122_v38, %v2038_v31 }
0x1102   :  { %2751 = vrot.lane.b32.xlu1 %v2750_v52, %s3017_s6 }
0x1107   :  { %v2124_v9 = vpop.f32.mrf.mxu0 }
0x1114   :  { %v2101_v51 = vpop.f32.mrf.mxu3 }
0x1115   :  { %v2745_v47 = vpack.i.bf16 %v2101_v51, %v2017_v4 }
0x1116   :  { %v1975_v48 = vpop.f32.mrf.mxu1 }
0x1117   :  { %2746 = vrot.lane.b32.xlu0 %v2745_v47, %s3016_s5  ;;  %v2770_v47 = vld [vmem:[#allocation7 + $0x80] ss:$0 sm:$0xff] }
0x111c   :  { %v2103_v10 = vpop.f32.mrf.mxu3 }
0x111e   :  { %v1977_v37 = vpop.f32.mrf.mxu1 }
0x1126   :  { %v2059_v11 = vpop.f32.mrf.mxu1 }
0x112e   :  { %v2061_v14 = vpop.f32.mrf.mxu1 }
0x116a   :  { %v2742_v16 = vpop.permute.xlu1 %2741 }
0x116b   :  { %v2744_v17 = vunpack.i.h.bf16 %v2742_v16  ;;  %v2743_v21 = vunpack.i.l.bf16 %v2742_v16 }
0x116d   :  { %v2150_v29 = vsel %vm138_vm1, %v1975_v48, %v2743_v21  ;;  %v2151_v30 = vsel %vm138_vm1, %v2059_v11, %v2744_v17  ;;  %v2771_v11 = vld [vmem:[#allocation7 + $0x88] ss:$0 sm:$0xff] }
0x1174   :  { %v2752_v22 = vpop.permute.xlu1 %2751 }
0x1175   :  { %v2754_v32 = vunpack.i.h.bf16 %v2752_v22  ;;  %v2753_v18 = vunpack.i.l.bf16 %v2752_v22  ;;  %v2662_v22 = vld [vmem:[#allocation5 + $0xc8] sm:$0xff] }
0x1176   :  { %2342 = vmatpush.bf16.msrb.mxu3 %v2662_v22 }
0x1189   :  { %v2747_v23 = vpop.permute.xlu0 %2746 }
0x118a   :  { %v2749_v24 = vunpack.i.h.bf16 %v2747_v23  ;;  %v2748_v25 = vunpack.i.l.bf16 %v2747_v23  ;;  %v2661_v23 = vld [vmem:[#allocation5 + $0xc0] sm:$0xff] }
0x118b   :  { %2343 = vmatpush.bf16.msrb.mxu3 %v2661_v23 }
0x118c   :  { %v2153_v36 = vsel %vm617_vm3, %v2151_v30, %v2749_v24  ;;  %v2152_v3 = vsel %vm617_vm3, %v2150_v29, %v2748_v25  ;;  %v2660_v24 = vld [vmem:[#allocation5 + $0xb8] sm:$0xff]  ;;  %v2772_v25 = vld [vmem:[#allocation7 + $0x90] ss:$0 sm:$0xff] }
0x118d   :  { %v2155_v28 = vsel %vm620_vm4, %v2153_v36, %v2754_v32  ;;  %v2154_v39 = vsel %vm620_vm4, %v2152_v3, %v2753_v18  ;;  %v2659_v29 = vld [vmem:[#allocation5 + $0xb0] sm:$0xff] }
0x118e   :  { %v2156_v60 = vpack.c.bf16 %v2155_v28, %v2154_v39 }
0x118f   :  { %2344 = vmatpush.bf16.msrb.mxu3 %v2660_v24 }
0x1190   :  { %2601 = vmatmul.msk.bf16.vlgmr.msra.gmra.mxu1 %vm87_vm0, %v2156_v60 }
0x1193   :  { %2345 = vmatpush.bf16.msrb.mxu3 %v2659_v29  ;;  %v2774_v29 = vld [vmem:[#allocation7 + $0xa0] ss:$0 sm:$0xff] }
0x120d   :  { %v2187_v2 = vpop.f32.mrf.mxu1 }
0x120e   :  { %v2188_v42 = vadd.f32 %v2769_v41, %v2187_v2 }
0x1210   :  { %v2192_v43 = vadd.f32 %v2188_v42, %v3361_v12 }
0x1212   :  { %v2194_v46 = vsel %vm87_vm0, %v2192_v43, 0.0 }
0x1213   :  { %2195 = vadd.xlane.f32.xlu1 %v2194_v46 }
0x1215   :  { %v2189_v49 = vpop.f32.mrf.mxu1 }
0x1216   :  { %v2190_v50 = vadd.f32 %v2769_v41, %v2189_v49 }
0x1218   :  { %v2193_v19 = vadd.f32 %v2190_v50, %v3363_v13  ;;  %v2658_v13 = vld [vmem:[#allocation5 + $0xa8] sm:$0xff] }
0x1219   :  { %2274 = vmatpush.bf16.msra.mxu2 %v2658_v13 }
0x121a   :  { %v2197_v27 = vsel %vm87_vm0, %v2193_v19, 0.0 }
0x121b   :  { %2198 = vadd.xlane.f32.xlu2 %v2197_v27 }
0x121d   :  { %2275 = vmatpush.bf16.msra.mxu2 %v2657_v45 }
0x1286   :  { %v2196_v53 = vpop.xlane.xlu1 %2195 }
0x1287   :  { %v2200_v44 = vmul.f32 %v2196_v53, %v3215_v40 }
0x1289   :  { %v2202_v20 = vsub.f32 %v2192_v43, %v2200_v44 }
0x128b   :  { %v2204_v55 = vmul.f32 %v2202_v20, %v2202_v20 }
0x128d   :  { %v2206_v56 = vsel %vm87_vm0, %v2204_v55, 0.0 }
0x128e   :  { %v2199_v58 = vpop.xlane.xlu2 %2198  ;;  %2207 = vadd.xlane.f32.xlu0 %v2206_v56 }
0x128f   :  { %v2201_v12 = vmul.f32 %v2199_v58, %v3215_v40 }
0x1291   :  { %v2203_v35 = vsub.f32 %v2193_v19, %v2201_v12  ;;  %v2773_v12 = vld [vmem:[#allocation7 + $0x98] ss:$0 sm:$0xff] }
0x1293   :  { %v2205_v57 = vmul.f32 %v2203_v35, %v2203_v35 }
0x1295   :  { %v2209_v59 = vsel %vm87_vm0, %v2205_v57, 0.0 }
0x1296   :  { %2210 = vadd.xlane.f32.xlu1 %v2209_v59 }
0x1301   :  { %v2208_v61 = vpop.xlane.xlu0 %2207 }
0x1302   :  { %v2212_v62 = vmul.f32 %v2208_v61, %v3215_v40 }
0x1304   :  { %v2214_v5 = vadd.f32 1e-12, %v2212_v62 }
0x1306   :  { %2891 = vrsqrt.f32 %v2214_v5  ;;  %vm2222_vm2 = vweird.f32 %v2214_v5 }
0x1309   :  { %v2211_v63 = vpop.xlane.xlu1 %2210 }
0x130a   :  { %v2213_v0 = vmul.f32 %v2211_v63, %v3215_v40 }
0x130c   :  { %v2892_v31 = vpop.eup %2891  ;;  %v2215_v1 = vadd.f32 1e-12, %v2213_v0 }
0x130d   :  { %v2217_v4 = vmul.f32 %v2892_v31, %v2214_v5  ;;  %vm2223_vm1 = vweird.f32 %v2892_v31 }
0x130e   :  { %2893 = vrsqrt.f32 %v2215_v1  ;;  %vm2224_vm3 = vmor %vm2222_vm2, %vm2223_vm1  ;;  %vm2232_vm14 = vweird.f32 %v2215_v1 }
0x130f   :  { %v2218_v34 = vmul.f32 %v2892_v31, %v2217_v4 }
0x1311   :  { %v2219_v26 = vmul.f32 0.5, %v2218_v34 }
0x1313   :  { %v2220_v6 = vsub.f32 1.5, %v2219_v26 }
0x1314   :  { %v2894_v7 = vpop.eup %2893 }
0x1315   :  { %v2221_v8 = vmul.f32 %v2892_v31, %v2220_v6  ;;  %v2227_v33 = vmul.f32 %v2894_v7, %v2215_v1  ;;  %vm2233_vm4 = vweird.f32 %v2894_v7 }
0x1316   :  { %vm2234_vm15 = vmor %vm2232_vm14, %vm2233_vm4 }
0x1317   :  { %v2228_v38 = vmul.f32 %v2894_v7, %v2227_v33  ;;  %v2225_v52 = vsel %vm2224_vm3, %v2892_v31, %v2221_v8  ;;  %v2664_v33 = vld [vmem:[#allocation5 + $0xd8] sm:$0xff] }
0x1318   :  { %v2236_v48 = vmul.f32 %v2225_v52, %v2202_v20  ;;  %2434 = vmatpush.bf16.msrb.mxu0 %v2664_v33 }
0x1319   :  { %v2229_v9 = vmul.f32 0.5, %v2228_v38 }
0x131a   :  { %v2240_v14 = vmul.f32 %v2770_v47, %v2236_v48 }
0x131b   :  { %v2230_v51 = vsub.f32 1.5, %v2229_v9  ;;  %v2663_v9 = vld [vmem:[#allocation5 + $0xd0] sm:$0xff] }
0x131c   :  { %v2244_v16 = vadd.f32 %v2771_v11, %v2240_v14  ;;  %2435 = vmatpush.bf16.msrb.mxu0 %v2663_v9 }
0x131d   :  { %v2231_v10 = vmul.f32 %v2894_v7, %v2230_v51 }
0x131f   :  { %v2235_v37 = vsel %vm2234_vm15, %v2894_v7, %v2231_v10 }
0x1320   :  { %v2237_v54 = vmul.f32 %v2235_v37, %v2203_v35 }
0x1322   :  { %v2241_v15 = vmul.f32 %v2770_v47, %v2237_v54 }
0x1324   :  { %v2245_v17 = vadd.f32 %v2771_v11, %v2241_v15 }
0x1326   :  { %v2246_v21 = vpack.c.bf16 %v2245_v17, %v2244_v16 }
0x1328   :  { %2610 = vmatmul.msk.bf16.vlgmr.msra.gmra.mxu2 %vm87_vm0, %v2246_v21 }
0x13ab   :  { %v2277_v30 = vpop.f32.mrf.mxu2 }
0x13ac   :  { %v2278_v32 = vadd.f32 %v2772_v25, %v2277_v30 }
0x13ae   :  { %v2282_v18 = vmul.f32 %v2278_v32, %v2278_v32 }
0x13b0   :  { %v2284_v36 = vmul.f32 %v2282_v18, %v2278_v32  ;;  %v2775_v18 = vld [vmem:[#allocation7 + $0xa8] ss:$0 sm:$0xff] }
0x13b2   :  { %v2286_v3 = vmul.f32 0.044715, %v2284_v36 }
0x13b3   :  { %v2279_v28 = vpop.f32.mrf.mxu2 }
0x13b4   :  { %v2288_v39 = vadd.f32 %v2286_v3, %v2278_v32  ;;  %v2280_v60 = vadd.f32 %v2772_v25, %v2279_v28 }
0x13b6   :  { %v2290_v41 = vmul.f32 0.7978846, %v2288_v39  ;;  %v2283_v2 = vmul.f32 %v2280_v60, %v2280_v60 }
0x13b8   :  { %v2285_v42 = vmul.f32 %v2283_v2, %v2280_v60  ;;  %2895 = vtanh.f32 %v2290_v41  ;;  %v2776_v2 = vld [vmem:[#allocation7 + $0xb0] ss:$0 sm:$0xff] }
0x13ba   :  { %v2287_v43 = vmul.f32 0.044715, %v2285_v42 }
0x13bc   :  { %v2289_v46 = vadd.f32 %v2287_v43, %v2280_v60 }
0x13be   :  { %v2291_v49 = vmul.f32 0.7978846, %v2289_v46  ;;  %v2896_v50 = vpop.eup %2895 }
0x13bf   :  { %v2294_v19 = vadd.f32 1.0, %v2896_v50 }
0x13c0   :  { %2897 = vtanh.f32 %v2291_v49 }
0x13c1   :  { %v2296_v53 = vmul.f32 0.5, %v2294_v19 }
0x13c3   :  { %v2298_v55 = vmul.f32 %v2296_v53, %v2278_v32 }
0x13c6   :  { %v2898_v27 = vpop.eup %2897 }
0x13c7   :  { %v2295_v44 = vadd.f32 1.0, %v2898_v27 }
0x13c9   :  { %v2297_v20 = vmul.f32 0.5, %v2295_v44 }
0x13cb   :  { %v2299_v56 = vmul.f32 %v2297_v20, %v2280_v60 }
0x13cd   :  { %v2300_v58 = vpack.c.bf16 %v2299_v56, %v2298_v55 }
0x13cf   :  { %2627 = vmatmul.msk.bf16.vlgmr.msrb.gmra.mxu3 %vm1534_vm7, %v2300_v58 }
0x1452   :  { %v2347_v35 = vpop.f32.mrf.mxu3 }
0x1453   :  { %v2348_v57 = vadd.f32 %v2773_v12, %v2347_v35 }
0x1455   :  { %v2352_v59 = vadd.f32 %v2348_v57, %v2244_v16 }
0x1457   :  { %v2354_v13 = vsel %vm87_vm0, %v2352_v59, 0.0 }
0x1458   :  { %2355 = vadd.xlane.f32.xlu2 %v2354_v13 }
0x145a   :  { %v2349_v61 = vpop.f32.mrf.mxu3 }
0x145b   :  { %v2350_v62 = vadd.f32 %v2773_v12, %v2349_v61 }
0x145d   :  { %v2353_v45 = vadd.f32 %v2350_v62, %v2245_v17 }
0x145f   :  { %v2357_v5 = vsel %vm87_vm0, %v2353_v45, 0.0 }
0x1460   :  { %2358 = vadd.xlane.f32.xlu0 %v2357_v5 }
0x14cb   :  { %v2356_v63 = vpop.xlane.xlu2 %2355 }
0x14cc   :  { %v2360_v0 = vmul.f32 %v2356_v63, %v3215_v40 }
0x14ce   :  { %v2362_v31 = vsub.f32 %v2352_v59, %v2360_v0 }
0x14d0   :  { %v2364_v1 = vmul.f32 %v2362_v31, %v2362_v31 }
0x14d2   :  { %v2366_v4 = vsel %vm87_vm0, %v2364_v1, 0.0 }
0x14d3   :  { %v2359_v34 = vpop.xlane.xlu0 %2358  ;;  %2367 = vadd.xlane.f32.xlu1 %v2366_v4 }
0x14d4   :  { %v2361_v26 = vmul.f32 %v2359_v34, %v3215_v40 }
0x14d6   :  { %v2363_v6 = vsub.f32 %v2353_v45, %v2361_v26 }
0x14d8   :  { %v2365_v7 = vmul.f32 %v2363_v6, %v2363_v6 }
0x14da   :  { %v2369_v8 = vsel %vm87_vm0, %v2365_v7, 0.0 }
0x14db   :  { %2370 = vadd.xlane.f32.xlu2 %v2369_v8 }
0x1546   :  { %v2368_v38 = vpop.xlane.xlu1 %2367 }
0x1547   :  { %v2372_v52 = vmul.f32 %v2368_v38, %v3215_v40 }
0x1549   :  { %v2374_v51 = vadd.f32 1e-12, %v2372_v52 }
0x154b   :  { %2899 = vrsqrt.f32 %v2374_v51  ;;  %vm2382_vm6 = vweird.f32 %v2374_v51 }
0x154e   :  { %v2371_v47 = vpop.xlane.xlu2 %2370 }
0x154f   :  { %v2373_v48 = vmul.f32 %v2371_v47, %v3215_v40 }
0x1551   :  { %v2900_v10 = vpop.eup %2899  ;;  %v2375_v37 = vadd.f32 1e-12, %v2373_v48 }
0x1552   :  { %v2377_v11 = vmul.f32 %v2900_v10, %v2374_v51  ;;  %vm2383_vm5 = vweird.f32 %v2900_v10 }
0x1553   :  { %2901 = vrsqrt.f32 %v2375_v37  ;;  %vm2384_vm8 = vmor %vm2382_vm6, %vm2383_vm5  ;;  %vm2392_vm10 = vweird.f32 %v2375_v37 }
0x1554   :  { %v2378_v14 = vmul.f32 %v2900_v10, %v2377_v11 }
0x1556   :  { %v2379_v54 = vmul.f32 0.5, %v2378_v14 }
0x1558   :  { %v2380_v15 = vsub.f32 1.5, %v2379_v54 }
0x1559   :  { %v2902_v16 = vpop.eup %2901 }
0x155a   :  { %v2381_v17 = vmul.f32 %v2900_v10, %v2380_v15  ;;  %v2387_v21 = vmul.f32 %v2902_v16, %v2375_v37  ;;  %vm2393_vm9 = vweird.f32 %v2902_v16 }
0x155b   :  { %vm2394_vm11 = vmor %vm2392_vm10, %vm2393_vm9 }
0x155c   :  { %v2388_v22 = vmul.f32 %v2902_v16, %v2387_v21  ;;  %v2385_v23 = vsel %vm2384_vm8, %v2900_v10, %v2381_v17 }
0x155d   :  { %v2396_v40 = vmul.f32 %v2385_v23, %v2362_v31 }
0x155e   :  { %v2389_v24 = vmul.f32 0.5, %v2388_v22 }
0x155f   :  { %v2400_v36 = vmul.f32 %v2774_v29, %v2396_v40 }
0x1560   :  { %v2390_v25 = vsub.f32 1.5, %v2389_v24 }
0x1561   :  { %v2404_v39 = vadd.f32 %v2775_v18, %v2400_v36 }
0x1562   :  { %v2391_v30 = vmul.f32 %v2902_v16, %v2390_v25 }
0x1564   :  { %v2395_v32 = vsel %vm2394_vm11, %v2902_v16, %v2391_v30 }
0x1565   :  { %v2397_v3 = vmul.f32 %v2395_v32, %v2363_v6 }
0x1567   :  { %v2401_v28 = vmul.f32 %v2774_v29, %v2397_v3 }
0x1569   :  { %v2405_v60 = vadd.f32 %v2775_v18, %v2401_v28 }
0x156b   :  { %v2406_v41 = vpack.c.bf16 %v2405_v60, %v2404_v39 }
0x156d   :  { %2636 = vmatmul.msk.bf16.vlgmr.msrb.gmra.mxu0 %vm87_vm0, %v2406_v41 }
0x15ea   :  { %v2437_v42 = vpop.f32.mrf.mxu0 }
0x15eb   :  { %v2438_v43 = vadd.f32 %v2776_v2, %v2437_v42 }
0x15ed   :  { %2442 = vst.msk [vmem:[#allocation8] sm:$0xff] %vm1534_vm7, %v2438_v43 }
0x15f2   :  { %v2439_v46 = vpop.f32.mrf.mxu0 }
0x15f3   :  { %v2440_v49 = vadd.f32 %v2776_v2, %v2439_v46 }
0x15f5   :  { %2443 = vst.msk [vmem:[#allocation8 + $0x8] sm:$0xff] %vm1534_vm7, %v2440_v49 }
0x15f6   :  { %2456 = dma.vmem_to_hbm [thread:$0]  %s2449_s8, 256, %s2451_s11, [#allocation4], %s3009_s24, %s3009_s24, %s3010_s1  }
0x15f7   :  { %3003 = dma.done.wait [#allocation4], 256  }
0x15f8   :  { %3004 = vsyncadd [#allocation4], 4294967040 }
0x15f9   :  { %2461 = vsyncpa [#allocation3], 1 }
0x15fa   :  { %2462 = vsyncpa [#allocation6], 1 }
0x15fb   :  { %2463 = vsyncpa [#allocation4], 1 }

</bundles_post_ra>
